<compile_context>
chip_gen: v7x
topology: tpu7x:2x2x1
jax: 0.10.0
libtpu: 0.0.40
codegen_flags: <defaults>
</compile_context>

<pallas_src>
import functools

import jax
import jax.numpy as jnp
from jax.experimental import pallas as pl
from jax.experimental.pallas import tpu as pltpu

IMG = 32                       # CIFAR spatial size (fc1 expects 16*5*5)
KS = 5                         # conv kernel size
CPAD = 8                       # channel padding -> 8-aligned sublane stacking
COMPUTE_DTYPE = jnp.bfloat16   # MXU operand dtype (accumulation is f32)


# ---------------------------------------------------------------------------
# Fused forward kernel: one image per grid step, everything VMEM-resident.
# ---------------------------------------------------------------------------
def _lenet_fused_kernel(x_ref, w1_ref, b1_ref, w2_ref, b2_ref,
                        wf1_ref, bf1_ref, wf2_ref, bf2_ref, wf3_ref, bf3_ref,
                        o_ref, *, img, ks, cdt):
    """Activations are (channels, spatial) with the flattened 32x32 grid on
    lanes.  Stride-2 pooling keeps values on the original grid ("diluted"), so
    a 5x5 valid conv at dilution `dil` is 25 statically shifted lane-slices
    stacked along the contraction axis and fed to a single MXU dot.  Columns
    past a stage's valid region hold garbage no valid downstream position
    reads (each stage's width shrinks by exactly its maximum shift)."""
    W = img
    f32 = jnp.float32

    def conv5x5(src, w_ref, b_ref, dil):
        # src: (C, L_in) f32 -> ReLU(conv + bias), f32, width L_in - dil*(ks-1)*(W+1)
        max_off = dil * (ks - 1) * (W + 1)
        L = src.shape[1] - max_off
        taps = [src[:, dil * (i * W + j): dil * (i * W + j) + L]
                for i in range(ks) for j in range(ks)]
        # One K-stacked bf16 MXU dot (K = 25*C) instead of 25 tiny dots + adds.
        stacked = jnp.concatenate(taps, axis=0).astype(cdt)        # (25*C, L)
        acc = jnp.dot(w_ref[...], stacked, preferred_element_type=f32)
        return jnp.maximum(acc + b_ref[...], 0.0)

    def maxpool2x2(src, dil):
        # 2x2 / stride-2 max pool on a dilution-`dil` map (output dilution 2*dil).
        L = src.shape[1] - dil * (W + 1)
        return jnp.maximum(
            jnp.maximum(src[:, 0:L], src[:, dil:dil + L]),
            jnp.maximum(src[:, dil * W:dil * W + L],
                        src[:, dil * W + dil:dil * W + dil + L]))

    x = x_ref[...]                                     # (8, 1024) f32
    a1 = conv5x5(x, w1_ref, b1_ref, dil=1)             # (8, 892)   conv1+ReLU
    p1 = maxpool2x2(a1, dil=1)                         # (8, 859)   dilution 2
    a2 = conv5x5(p1, w2_ref, b2_ref, dil=2)            # (16, 595)  conv2+ReLU
    p2 = maxpool2x2(a2, dil=2)                         # (16, 529)  dilution 4

    # Gather the 16 x 5 x 5 valid pooled features of this image into (400, 1).
    # Pooled position (q, p) lives at column q*4*W + p*4 of the dilution-4 map.
    assert p2.shape[1] >= (ks - 1) * 4 * (W + 1) + 1, "pooled slab too narrow"
    gtaps = [p2[:, q * 4 * W + p * 4: q * 4 * W + p * 4 + 1]
             for q in range(ks) for p in range(ks)]
    feat = jnp.concatenate(gtaps, axis=0).astype(cdt)              # (400, 1)

    h1 = jnp.maximum(jnp.dot(wf1_ref[...], feat,
                             preferred_element_type=f32) + bf1_ref[...], 0.0)
    h2 = jnp.maximum(jnp.dot(wf2_ref[...], h1.astype(cdt),
                             preferred_element_type=f32) + bf2_ref[...], 0.0)
    logits = jnp.dot(wf3_ref[...], h2.astype(cdt),
                     preferred_element_type=f32) + bf3_ref[...]    # (10, 1)
    o_ref[...] = logits.reshape(1, 10, 1)


# ---------------------------------------------------------------------------
# Parameters
# ---------------------------------------------------------------------------
def init_params(key):
    """Deterministic PyTorch-style (kaiming-uniform-ish) init, PyTorch layouts."""
    ks = jax.random.split(key, 10)

    def u(k, shape, fan_in):
        bound = 1.0 / jnp.sqrt(float(fan_in))
        return jax.random.uniform(k, shape, jnp.float32, -bound, bound)

    return {
        "conv1_w": u(ks[0], (6, 3, 5, 5), 3 * 25),
        "conv1_b": u(ks[1], (6,), 3 * 25),
        "conv2_w": u(ks[2], (16, 6, 5, 5), 6 * 25),
        "conv2_b": u(ks[3], (16,), 6 * 25),
        "fc1_w":   u(ks[4], (120, 400), 400),
        "fc1_b":   u(ks[5], (120,), 400),
        "fc2_w":   u(ks[6], (84, 120), 120),
        "fc2_b":   u(ks[7], (84,), 120),
        "fc3_w":   u(ks[8], (10, 84), 84),
        "fc3_b":   u(ks[9], (10,), 84),
    }


def prepare_params(p, cdt=COMPUTE_DTYPE):
    """One-time reorg of PyTorch-layout params into the K-stacked, channel-
    padded layouts the fused kernel consumes (all transposes hoisted)."""
    def conv_stacked(w, cpad, opad):
        # (O, C, k, k) -> (O_pad, k*k*C_pad): column = (i*k + j)*C_pad + c
        o, c, kh, kw = w.shape
        w = jnp.transpose(w, (0, 2, 3, 1))                        # (O, kh, kw, C)
        w = jnp.pad(w, ((0, opad - o), (0, 0), (0, 0), (0, cpad - c)))
        return w.reshape(opad, kh * kw * cpad).astype(cdt)

    def col(b, rows=None):
        if rows is not None and rows != b.shape[0]:
            b = jnp.pad(b, (0, rows - b.shape[0]))
        return b.reshape(-1, 1).astype(jnp.float32)

    # fc1 feature index c*25 + q*5 + p  ->  stacked row (q*5 + p)*16 + c
    wf1 = jnp.transpose(p["fc1_w"].reshape(120, 16, KS, KS),
                        (0, 2, 3, 1)).reshape(120, 16 * KS * KS)
    return {
        "w1": conv_stacked(p["conv1_w"], CPAD, CPAD), "b1": col(p["conv1_b"], CPAD),
        "w2": conv_stacked(p["conv2_w"], CPAD, 16),   "b2": col(p["conv2_b"]),
        "wf1": wf1.astype(cdt),                       "bf1": col(p["fc1_b"]),
        "wf2": p["fc2_w"].astype(cdt),                "bf2": col(p["fc2_b"]),
        "wf3": p["fc3_w"].astype(cdt),                "bf3": col(p["fc3_b"]),
    }


# ---------------------------------------------------------------------------
# Forward
# ---------------------------------------------------------------------------
def _const_spec(shape):
    n = len(shape)
    return pl.BlockSpec(shape, lambda t: (0,) * n)   # resident across the grid


def net_forward(x, pp, cdt=COMPUTE_DTYPE):
    """x: (B, 3, 32, 32) NCHW float32 -> logits (B, 10) float32."""
    B, C, H, W = x.shape
    assert (C, H, W) == (3, IMG, IMG)
    # Glue: pad channels 3 -> 8 (weights are zero on the pad) and flatten to a
    # channels x (batch*spatial) slab with batch*spatial on lanes.
    xp = jnp.pad(x, ((0, 0), (0, CPAD - C), (0, 0), (0, 0)))
    xmat = jnp.transpose(xp, (1, 0, 2, 3)).reshape(CPAD, B * H * W)

    weights = (pp["w1"], pp["b1"], pp["w2"], pp["b2"], pp["wf1"], pp["bf1"],
               pp["wf2"], pp["bf2"], pp["wf3"], pp["bf3"])
    out = pl.pallas_call(
        functools.partial(_lenet_fused_kernel, img=IMG, ks=KS, cdt=cdt),
        out_shape=jax.ShapeDtypeStruct((B, 10, 1), jnp.float32),
        grid=(B,),                                    # one image per grid step
        in_specs=[pl.BlockSpec((CPAD, H * W), lambda t: (0, t))]
                 + [_const_spec(w.shape) for w in weights],
        out_specs=pl.BlockSpec((1, 10, 1), lambda t: (t, 0, 0)),
        compiler_params=pltpu.CompilerParams(
            dimension_semantics=("parallel",)),       # both TCs on v7x
    )(xmat, *weights)
    return out.reshape(B, 10)


# ---------------------------------------------------------------------------
# Pure-JAX reference (matches the PyTorch Net.forward, f32)
# ---------------------------------------------------------------------------
def net_reference(x, p):
    def conv(x, w, b):
        y = jax.lax.conv_general_dilated(
            x, w, (1, 1), "VALID", dimension_numbers=("NCHW", "OIHW", "NCHW"))
        return jax.nn.relu(y + b[None, :, None, None])

    def pool(x):
        return jax.lax.reduce_window(x, -jnp.inf, jax.lax.max,
                                     (1, 1, 2, 2), (1, 1, 2, 2), "VALID")

    x = pool(conv(x, p["conv1_w"], p["conv1_b"]))
    x = pool(conv(x, p["conv2_w"], p["conv2_b"]))
    x = x.reshape(x.shape[0], -1)
    x = jax.nn.relu(x @ p["fc1_w"].T + p["fc1_b"])
    x = jax.nn.relu(x @ p["fc2_w"].T + p["fc2_b"])
    return x @ p["fc3_w"].T + p["fc3_b"]


if __name__ == "__main__":
    key = jax.random.PRNGKey(0)
    xkey, pkey = jax.random.split(key)
    # fc1 expects 16*5*5 features => input must be 32x32 (CIFAR); batch = 2.
    x = jax.random.normal(xkey, (2, 3, 32, 32), jnp.float32)
    params = init_params(pkey)
    prepped = prepare_params(params)          # weight reorg hoisted, done once

    fwd = jax.jit(net_forward)
    out = fwd(x, prepped)
    jax.block_until_ready(out)
    assert out.shape == (2, 10) and out.dtype == jnp.float32
    assert bool(jnp.isfinite(out).all())
    # bf16 MXU operands -> compare against the f32 reference at loose tolerance.
    ref = net_reference(x, params)
    assert bool(jnp.allclose(out, ref, atol=0.1, rtol=0.1))
    print("KERNEL_OK")
</pallas_src>

<mosaic_0001>
module attributes {stable_mosaic.version = 11 : i64} {
  func.func @_lenet_fused_kernel(%arg0: i32, %arg1: memref<8x1024xf32, #tpu.memory_space<vmem>>, %arg2: memref<8x200xbf16, #tpu.memory_space<vmem>>, %arg3: memref<8x1xf32, #tpu.memory_space<vmem>>, %arg4: memref<16x200xbf16, #tpu.memory_space<vmem>>, %arg5: memref<16x1xf32, #tpu.memory_space<vmem>>, %arg6: memref<120x400xbf16, #tpu.memory_space<vmem>>, %arg7: memref<120x1xf32, #tpu.memory_space<vmem>>, %arg8: memref<84x120xbf16, #tpu.memory_space<vmem>>, %arg9: memref<84x1xf32, #tpu.memory_space<vmem>>, %arg10: memref<10x84xbf16, #tpu.memory_space<vmem>>, %arg11: memref<10x1xf32, #tpu.memory_space<vmem>>, %arg12: memref<1x10x1xf32, #tpu.memory_space<vmem>>) attributes {dimension_semantics = [#tpu.dimension_semantics<parallel>], iteration_bounds = array<i64: 2>, scalar_prefetch = 0 : i64, scratch_operands = 0 : i64, tpu.core_type = #tpu.core_type<tc>, window_params = [{transform_indices = @transform_0, window_bounds = array<i64: 8, 1024>}, {pipeline_mode = #tpu.pipeline_mode<synchronous>, transform_indices = @transform_1, window_bounds = array<i64: 8, 200>}, {pipeline_mode = #tpu.pipeline_mode<synchronous>, transform_indices = @transform_2, window_bounds = array<i64: 8, 1>}, {pipeline_mode = #tpu.pipeline_mode<synchronous>, transform_indices = @transform_3, window_bounds = array<i64: 16, 200>}, {pipeline_mode = #tpu.pipeline_mode<synchronous>, transform_indices = @transform_4, window_bounds = array<i64: 16, 1>}, {pipeline_mode = #tpu.pipeline_mode<synchronous>, transform_indices = @transform_5, window_bounds = array<i64: 120, 400>}, {pipeline_mode = #tpu.pipeline_mode<synchronous>, transform_indices = @transform_6, window_bounds = array<i64: 120, 1>}, {pipeline_mode = #tpu.pipeline_mode<synchronous>, transform_indices = @transform_7, window_bounds = array<i64: 84, 120>}, {pipeline_mode = #tpu.pipeline_mode<synchronous>, transform_indices = @transform_8, window_bounds = array<i64: 84, 1>}, {pipeline_mode = #tpu.pipeline_mode<synchronous>, transform_indices = @transform_9, window_bounds = array<i64: 10, 84>}, {pipeline_mode = #tpu.pipeline_mode<synchronous>, transform_indices = @transform_10, window_bounds = array<i64: 10, 1>}, {transform_indices = @transform_11, window_bounds = array<i64: 1, 10, 1>}]} {
    %c0 = arith.constant 0 : index
    %c0_0 = arith.constant 0 : index
    %0 = vector.load %arg1[%c0, %c0_0] : memref<8x1024xf32, #tpu.memory_space<vmem>>, vector<8x1024xf32>
    %1 = vector.extract_strided_slice %0 {offsets = [0, 0], sizes = [8, 892], strides = [1, 1]} : vector<8x1024xf32> to vector<8x892xf32>
    %2 = vector.extract_strided_slice %0 {offsets = [0, 1], sizes = [8, 892], strides = [1, 1]} : vector<8x1024xf32> to vector<8x892xf32>
    %3 = vector.extract_strided_slice %0 {offsets = [0, 2], sizes = [8, 892], strides = [1, 1]} : vector<8x1024xf32> to vector<8x892xf32>
    %4 = vector.extract_strided_slice %0 {offsets = [0, 3], sizes = [8, 892], strides = [1, 1]} : vector<8x1024xf32> to vector<8x892xf32>
    %5 = vector.extract_strided_slice %0 {offsets = [0, 4], sizes = [8, 892], strides = [1, 1]} : vector<8x1024xf32> to vector<8x892xf32>
    %6 = vector.extract_strided_slice %0 {offsets = [0, 32], sizes = [8, 892], strides = [1, 1]} : vector<8x1024xf32> to vector<8x892xf32>
    %7 = vector.extract_strided_slice %0 {offsets = [0, 33], sizes = [8, 892], strides = [1, 1]} : vector<8x1024xf32> to vector<8x892xf32>
    %8 = vector.extract_strided_slice %0 {offsets = [0, 34], sizes = [8, 892], strides = [1, 1]} : vector<8x1024xf32> to vector<8x892xf32>
    %9 = vector.extract_strided_slice %0 {offsets = [0, 35], sizes = [8, 892], strides = [1, 1]} : vector<8x1024xf32> to vector<8x892xf32>
    %10 = vector.extract_strided_slice %0 {offsets = [0, 36], sizes = [8, 892], strides = [1, 1]} : vector<8x1024xf32> to vector<8x892xf32>
    %11 = vector.extract_strided_slice %0 {offsets = [0, 64], sizes = [8, 892], strides = [1, 1]} : vector<8x1024xf32> to vector<8x892xf32>
    %12 = vector.extract_strided_slice %0 {offsets = [0, 65], sizes = [8, 892], strides = [1, 1]} : vector<8x1024xf32> to vector<8x892xf32>
    %13 = vector.extract_strided_slice %0 {offsets = [0, 66], sizes = [8, 892], strides = [1, 1]} : vector<8x1024xf32> to vector<8x892xf32>
    %14 = vector.extract_strided_slice %0 {offsets = [0, 67], sizes = [8, 892], strides = [1, 1]} : vector<8x1024xf32> to vector<8x892xf32>
    %15 = vector.extract_strided_slice %0 {offsets = [0, 68], sizes = [8, 892], strides = [1, 1]} : vector<8x1024xf32> to vector<8x892xf32>
    %16 = vector.extract_strided_slice %0 {offsets = [0, 96], sizes = [8, 892], strides = [1, 1]} : vector<8x1024xf32> to vector<8x892xf32>
    %17 = vector.extract_strided_slice %0 {offsets = [0, 97], sizes = [8, 892], strides = [1, 1]} : vector<8x1024xf32> to vector<8x892xf32>
    %18 = vector.extract_strided_slice %0 {offsets = [0, 98], sizes = [8, 892], strides = [1, 1]} : vector<8x1024xf32> to vector<8x892xf32>
    %19 = vector.extract_strided_slice %0 {offsets = [0, 99], sizes = [8, 892], strides = [1, 1]} : vector<8x1024xf32> to vector<8x892xf32>
    %20 = vector.extract_strided_slice %0 {offsets = [0, 100], sizes = [8, 892], strides = [1, 1]} : vector<8x1024xf32> to vector<8x892xf32>
    %21 = vector.extract_strided_slice %0 {offsets = [0, 128], sizes = [8, 892], strides = [1, 1]} : vector<8x1024xf32> to vector<8x892xf32>
    %22 = vector.extract_strided_slice %0 {offsets = [0, 129], sizes = [8, 892], strides = [1, 1]} : vector<8x1024xf32> to vector<8x892xf32>
    %23 = vector.extract_strided_slice %0 {offsets = [0, 130], sizes = [8, 892], strides = [1, 1]} : vector<8x1024xf32> to vector<8x892xf32>
    %24 = vector.extract_strided_slice %0 {offsets = [0, 131], sizes = [8, 892], strides = [1, 1]} : vector<8x1024xf32> to vector<8x892xf32>
    %25 = vector.extract_strided_slice %0 {offsets = [0, 132], sizes = [8, 892], strides = [1, 1]} : vector<8x1024xf32> to vector<8x892xf32>
    %26 = tpu.concatenate %1, %2, %3, %4, %5, %6, %7, %8, %9, %10, %11, %12, %13, %14, %15, %16 in 0 : vector<8x892xf32>, vector<8x892xf32>, vector<8x892xf32>, vector<8x892xf32>, vector<8x892xf32>, vector<8x892xf32>, vector<8x892xf32>, vector<8x892xf32>, vector<8x892xf32>, vector<8x892xf32>, vector<8x892xf32>, vector<8x892xf32>, vector<8x892xf32>, vector<8x892xf32>, vector<8x892xf32>, vector<8x892xf32> -> vector<128x892xf32>
    %27 = tpu.concatenate %17, %18, %19, %20, %21, %22, %23, %24, %25 in 0 : vector<8x892xf32>, vector<8x892xf32>, vector<8x892xf32>, vector<8x892xf32>, vector<8x892xf32>, vector<8x892xf32>, vector<8x892xf32>, vector<8x892xf32>, vector<8x892xf32> -> vector<72x892xf32>
    %28 = tpu.concatenate %26, %27 in 0 : vector<128x892xf32>, vector<72x892xf32> -> vector<200x892xf32>
    %29 = arith.truncf %28 : vector<200x892xf32> to vector<200x892xbf16>
    %c0_1 = arith.constant 0 : index
    %c0_2 = arith.constant 0 : index
    %30 = vector.load %arg2[%c0_1, %c0_2] : memref<8x200xbf16, #tpu.memory_space<vmem>>, vector<8x200xbf16>
    %cst = arith.constant dense<0.000000e+00> : vector<8x892xf32>
    %31 = tpu.matmul %30, %29, %cst {dimension_numbers = #tpu.dot_dimension_numbers<[1], [0], [0], [1], [0, 0, 1, 1], [], []>} : vector<8x200xbf16>, vector<200x892xbf16>, vector<8x892xf32> -> vector<8x892xf32>
    %c0_3 = arith.constant 0 : index
    %c0_4 = arith.constant 0 : index
    %32 = vector.load %arg3[%c0_3, %c0_4] : memref<8x1xf32, #tpu.memory_space<vmem>>, vector<8x1xf32>
    %33 = vector.broadcast %32 : vector<8x1xf32> to vector<8x892xf32>
    %34 = arith.addf %31, %33 : vector<8x892xf32>
    %cst_5 = arith.constant 0.000000e+00 : f32
    %35 = vector.broadcast %cst_5 : f32 to vector<8x892xf32>
    %36 = arith.maximumf %34, %35 : vector<8x892xf32>
    %37 = vector.extract_strided_slice %36 {offsets = [0, 0], sizes = [8, 859], strides = [1, 1]} : vector<8x892xf32> to vector<8x859xf32>
    %38 = vector.extract_strided_slice %36 {offsets = [0, 1], sizes = [8, 859], strides = [1, 1]} : vector<8x892xf32> to vector<8x859xf32>
    %39 = arith.maximumf %37, %38 : vector<8x859xf32>
    %40 = vector.extract_strided_slice %36 {offsets = [0, 32], sizes = [8, 859], strides = [1, 1]} : vector<8x892xf32> to vector<8x859xf32>
    %41 = vector.extract_strided_slice %36 {offsets = [0, 33], sizes = [8, 859], strides = [1, 1]} : vector<8x892xf32> to vector<8x859xf32>
    %42 = arith.maximumf %40, %41 : vector<8x859xf32>
    %43 = arith.maximumf %39, %42 : vector<8x859xf32>
    %44 = vector.extract_strided_slice %43 {offsets = [0, 0], sizes = [8, 595], strides = [1, 1]} : vector<8x859xf32> to vector<8x595xf32>
    %45 = vector.extract_strided_slice %43 {offsets = [0, 2], sizes = [8, 595], strides = [1, 1]} : vector<8x859xf32> to vector<8x595xf32>
    %46 = vector.extract_strided_slice %43 {offsets = [0, 4], sizes = [8, 595], strides = [1, 1]} : vector<8x859xf32> to vector<8x595xf32>
    %47 = vector.extract_strided_slice %43 {offsets = [0, 6], sizes = [8, 595], strides = [1, 1]} : vector<8x859xf32> to vector<8x595xf32>
    %48 = vector.extract_strided_slice %43 {offsets = [0, 8], sizes = [8, 595], strides = [1, 1]} : vector<8x859xf32> to vector<8x595xf32>
    %49 = vector.extract_strided_slice %43 {offsets = [0, 64], sizes = [8, 595], strides = [1, 1]} : vector<8x859xf32> to vector<8x595xf32>
    %50 = vector.extract_strided_slice %43 {offsets = [0, 66], sizes = [8, 595], strides = [1, 1]} : vector<8x859xf32> to vector<8x595xf32>
    %51 = vector.extract_strided_slice %43 {offsets = [0, 68], sizes = [8, 595], strides = [1, 1]} : vector<8x859xf32> to vector<8x595xf32>
    %52 = vector.extract_strided_slice %43 {offsets = [0, 70], sizes = [8, 595], strides = [1, 1]} : vector<8x859xf32> to vector<8x595xf32>
    %53 = vector.extract_strided_slice %43 {offsets = [0, 72], sizes = [8, 595], strides = [1, 1]} : vector<8x859xf32> to vector<8x595xf32>
    %54 = vector.extract_strided_slice %43 {offsets = [0, 128], sizes = [8, 595], strides = [1, 1]} : vector<8x859xf32> to vector<8x595xf32>
    %55 = vector.extract_strided_slice %43 {offsets = [0, 130], sizes = [8, 595], strides = [1, 1]} : vector<8x859xf32> to vector<8x595xf32>
    %56 = vector.extract_strided_slice %43 {offsets = [0, 132], sizes = [8, 595], strides = [1, 1]} : vector<8x859xf32> to vector<8x595xf32>
    %57 = vector.extract_strided_slice %43 {offsets = [0, 134], sizes = [8, 595], strides = [1, 1]} : vector<8x859xf32> to vector<8x595xf32>
    %58 = vector.extract_strided_slice %43 {offsets = [0, 136], sizes = [8, 595], strides = [1, 1]} : vector<8x859xf32> to vector<8x595xf32>
    %59 = vector.extract_strided_slice %43 {offsets = [0, 192], sizes = [8, 595], strides = [1, 1]} : vector<8x859xf32> to vector<8x595xf32>
    %60 = vector.extract_strided_slice %43 {offsets = [0, 194], sizes = [8, 595], strides = [1, 1]} : vector<8x859xf32> to vector<8x595xf32>
    %61 = vector.extract_strided_slice %43 {offsets = [0, 196], sizes = [8, 595], strides = [1, 1]} : vector<8x859xf32> to vector<8x595xf32>
    %62 = vector.extract_strided_slice %43 {offsets = [0, 198], sizes = [8, 595], strides = [1, 1]} : vector<8x859xf32> to vector<8x595xf32>
    %63 = vector.extract_strided_slice %43 {offsets = [0, 200], sizes = [8, 595], strides = [1, 1]} : vector<8x859xf32> to vector<8x595xf32>
    %64 = vector.extract_strided_slice %43 {offsets = [0, 256], sizes = [8, 595], strides = [1, 1]} : vector<8x859xf32> to vector<8x595xf32>
    %65 = vector.extract_strided_slice %43 {offsets = [0, 258], sizes = [8, 595], strides = [1, 1]} : vector<8x859xf32> to vector<8x595xf32>
    %66 = vector.extract_strided_slice %43 {offsets = [0, 260], sizes = [8, 595], strides = [1, 1]} : vector<8x859xf32> to vector<8x595xf32>
    %67 = vector.extract_strided_slice %43 {offsets = [0, 262], sizes = [8, 595], strides = [1, 1]} : vector<8x859xf32> to vector<8x595xf32>
    %68 = vector.extract_strided_slice %43 {offsets = [0, 264], sizes = [8, 595], strides = [1, 1]} : vector<8x859xf32> to vector<8x595xf32>
    %69 = tpu.concatenate %44, %45, %46, %47, %48, %49, %50, %51, %52, %53, %54, %55, %56, %57, %58, %59 in 0 : vector<8x595xf32>, vector<8x595xf32>, vector<8x595xf32>, vector<8x595xf32>, vector<8x595xf32>, vector<8x595xf32>, vector<8x595xf32>, vector<8x595xf32>, vector<8x595xf32>, vector<8x595xf32>, vector<8x595xf32>, vector<8x595xf32>, vector<8x595xf32>, vector<8x595xf32>, vector<8x595xf32>, vector<8x595xf32> -> vector<128x595xf32>
    %70 = tpu.concatenate %60, %61, %62, %63, %64, %65, %66, %67, %68 in 0 : vector<8x595xf32>, vector<8x595xf32>, vector<8x595xf32>, vector<8x595xf32>, vector<8x595xf32>, vector<8x595xf32>, vector<8x595xf32>, vector<8x595xf32>, vector<8x595xf32> -> vector<72x595xf32>
    %71 = tpu.concatenate %69, %70 in 0 : vector<128x595xf32>, vector<72x595xf32> -> vector<200x595xf32>
    %72 = arith.truncf %71 : vector<200x595xf32> to vector<200x595xbf16>
    %c0_6 = arith.constant 0 : index
    %c0_7 = arith.constant 0 : index
    %73 = vector.load %arg4[%c0_6, %c0_7] : memref<16x200xbf16, #tpu.memory_space<vmem>>, vector<16x200xbf16>
    %cst_8 = arith.constant dense<0.000000e+00> : vector<16x595xf32>
    %74 = tpu.matmul %73, %72, %cst_8 {dimension_numbers = #tpu.dot_dimension_numbers<[1], [0], [0], [1], [0, 0, 1, 1], [], []>} : vector<16x200xbf16>, vector<200x595xbf16>, vector<16x595xf32> -> vector<16x595xf32>
    %c0_9 = arith.constant 0 : index
    %c0_10 = arith.constant 0 : index
    %75 = vector.load %arg5[%c0_9, %c0_10] : memref<16x1xf32, #tpu.memory_space<vmem>>, vector<16x1xf32>
    %76 = vector.broadcast %75 : vector<16x1xf32> to vector<16x595xf32>
    %77 = arith.addf %74, %76 : vector<16x595xf32>
    %cst_11 = arith.constant 0.000000e+00 : f32
    %78 = vector.broadcast %cst_11 : f32 to vector<16x595xf32>
    %79 = arith.maximumf %77, %78 : vector<16x595xf32>
    %80 = vector.extract_strided_slice %79 {offsets = [0, 0], sizes = [16, 529], strides = [1, 1]} : vector<16x595xf32> to vector<16x529xf32>
    %81 = vector.extract_strided_slice %79 {offsets = [0, 2], sizes = [16, 529], strides = [1, 1]} : vector<16x595xf32> to vector<16x529xf32>
    %82 = arith.maximumf %80, %81 : vector<16x529xf32>
    %83 = vector.extract_strided_slice %79 {offsets = [0, 64], sizes = [16, 529], strides = [1, 1]} : vector<16x595xf32> to vector<16x529xf32>
    %84 = vector.extract_strided_slice %79 {offsets = [0, 66], sizes = [16, 529], strides = [1, 1]} : vector<16x595xf32> to vector<16x529xf32>
    %85 = arith.maximumf %83, %84 : vector<16x529xf32>
    %86 = arith.maximumf %82, %85 : vector<16x529xf32>
    %87 = vector.extract_strided_slice %86 {offsets = [0, 0], sizes = [16, 1], strides = [1, 1]} : vector<16x529xf32> to vector<16x1xf32>
    %88 = vector.extract_strided_slice %86 {offsets = [0, 4], sizes = [16, 1], strides = [1, 1]} : vector<16x529xf32> to vector<16x1xf32>
    %89 = vector.extract_strided_slice %86 {offsets = [0, 8], sizes = [16, 1], strides = [1, 1]} : vector<16x529xf32> to vector<16x1xf32>
    %90 = vector.extract_strided_slice %86 {offsets = [0, 12], sizes = [16, 1], strides = [1, 1]} : vector<16x529xf32> to vector<16x1xf32>
    %91 = vector.extract_strided_slice %86 {offsets = [0, 16], sizes = [16, 1], strides = [1, 1]} : vector<16x529xf32> to vector<16x1xf32>
    %92 = vector.extract_strided_slice %86 {offsets = [0, 128], sizes = [16, 1], strides = [1, 1]} : vector<16x529xf32> to vector<16x1xf32>
    %93 = vector.extract_strided_slice %86 {offsets = [0, 132], sizes = [16, 1], strides = [1, 1]} : vector<16x529xf32> to vector<16x1xf32>
    %94 = vector.extract_strided_slice %86 {offsets = [0, 136], sizes = [16, 1], strides = [1, 1]} : vector<16x529xf32> to vector<16x1xf32>
    %95 = vector.extract_strided_slice %86 {offsets = [0, 140], sizes = [16, 1], strides = [1, 1]} : vector<16x529xf32> to vector<16x1xf32>
    %96 = vector.extract_strided_slice %86 {offsets = [0, 144], sizes = [16, 1], strides = [1, 1]} : vector<16x529xf32> to vector<16x1xf32>
    %97 = vector.extract_strided_slice %86 {offsets = [0, 256], sizes = [16, 1], strides = [1, 1]} : vector<16x529xf32> to vector<16x1xf32>
    %98 = vector.extract_strided_slice %86 {offsets = [0, 260], sizes = [16, 1], strides = [1, 1]} : vector<16x529xf32> to vector<16x1xf32>
    %99 = vector.extract_strided_slice %86 {offsets = [0, 264], sizes = [16, 1], strides = [1, 1]} : vector<16x529xf32> to vector<16x1xf32>
    %100 = vector.extract_strided_slice %86 {offsets = [0, 268], sizes = [16, 1], strides = [1, 1]} : vector<16x529xf32> to vector<16x1xf32>
    %101 = vector.extract_strided_slice %86 {offsets = [0, 272], sizes = [16, 1], strides = [1, 1]} : vector<16x529xf32> to vector<16x1xf32>
    %102 = vector.extract_strided_slice %86 {offsets = [0, 384], sizes = [16, 1], strides = [1, 1]} : vector<16x529xf32> to vector<16x1xf32>
    %103 = vector.extract_strided_slice %86 {offsets = [0, 388], sizes = [16, 1], strides = [1, 1]} : vector<16x529xf32> to vector<16x1xf32>
    %104 = vector.extract_strided_slice %86 {offsets = [0, 392], sizes = [16, 1], strides = [1, 1]} : vector<16x529xf32> to vector<16x1xf32>
    %105 = vector.extract_strided_slice %86 {offsets = [0, 396], sizes = [16, 1], strides = [1, 1]} : vector<16x529xf32> to vector<16x1xf32>
    %106 = vector.extract_strided_slice %86 {offsets = [0, 400], sizes = [16, 1], strides = [1, 1]} : vector<16x529xf32> to vector<16x1xf32>
    %107 = vector.extract_strided_slice %86 {offsets = [0, 512], sizes = [16, 1], strides = [1, 1]} : vector<16x529xf32> to vector<16x1xf32>
    %108 = vector.extract_strided_slice %86 {offsets = [0, 516], sizes = [16, 1], strides = [1, 1]} : vector<16x529xf32> to vector<16x1xf32>
    %109 = vector.extract_strided_slice %86 {offsets = [0, 520], sizes = [16, 1], strides = [1, 1]} : vector<16x529xf32> to vector<16x1xf32>
    %110 = vector.extract_strided_slice %86 {offsets = [0, 524], sizes = [16, 1], strides = [1, 1]} : vector<16x529xf32> to vector<16x1xf32>
    %111 = vector.extract_strided_slice %86 {offsets = [0, 528], sizes = [16, 1], strides = [1, 1]} : vector<16x529xf32> to vector<16x1xf32>
    %112 = tpu.concatenate %87, %88, %89, %90, %91, %92, %93, %94, %95, %96, %97, %98, %99, %100, %101, %102 in 0 : vector<16x1xf32>, vector<16x1xf32>, vector<16x1xf32>, vector<16x1xf32>, vector<16x1xf32>, vector<16x1xf32>, vector<16x1xf32>, vector<16x1xf32>, vector<16x1xf32>, vector<16x1xf32>, vector<16x1xf32>, vector<16x1xf32>, vector<16x1xf32>, vector<16x1xf32>, vector<16x1xf32>, vector<16x1xf32> -> vector<256x1xf32>
    %113 = tpu.concatenate %103, %104, %105, %106, %107, %108, %109, %110, %111 in 0 : vector<16x1xf32>, vector<16x1xf32>, vector<16x1xf32>, vector<16x1xf32>, vector<16x1xf32>, vector<16x1xf32>, vector<16x1xf32>, vector<16x1xf32>, vector<16x1xf32> -> vector<144x1xf32>
    %114 = tpu.concatenate %112, %113 in 0 : vector<256x1xf32>, vector<144x1xf32> -> vector<400x1xf32>
    %115 = arith.truncf %114 : vector<400x1xf32> to vector<400x1xbf16>
    %c0_12 = arith.constant 0 : index
    %c0_13 = arith.constant 0 : index
    %116 = vector.load %arg6[%c0_12, %c0_13] : memref<120x400xbf16, #tpu.memory_space<vmem>>, vector<120x400xbf16>
    %cst_14 = arith.constant dense<0.000000e+00> : vector<120x1xf32>
    %117 = tpu.matmul %116, %115, %cst_14 {dimension_numbers = #tpu.dot_dimension_numbers<[1], [0], [0], [1], [0, 0, 1, 1], [], []>} : vector<120x400xbf16>, vector<400x1xbf16>, vector<120x1xf32> -> vector<120x1xf32>
    %c0_15 = arith.constant 0 : index
    %c0_16 = arith.constant 0 : index
    %118 = vector.load %arg7[%c0_15, %c0_16] : memref<120x1xf32, #tpu.memory_space<vmem>>, vector<120x1xf32>
    %119 = arith.addf %117, %118 : vector<120x1xf32>
    %cst_17 = arith.constant 0.000000e+00 : f32
    %120 = vector.broadcast %cst_17 : f32 to vector<120x1xf32>
    %121 = arith.maximumf %119, %120 : vector<120x1xf32>
    %c0_18 = arith.constant 0 : index
    %c0_19 = arith.constant 0 : index
    %122 = vector.load %arg8[%c0_18, %c0_19] : memref<84x120xbf16, #tpu.memory_space<vmem>>, vector<84x120xbf16>
    %123 = arith.truncf %121 : vector<120x1xf32> to vector<120x1xbf16>
    %cst_20 = arith.constant dense<0.000000e+00> : vector<84x1xf32>
    %124 = tpu.matmul %122, %123, %cst_20 {dimension_numbers = #tpu.dot_dimension_numbers<[1], [0], [0], [1], [0, 0, 1, 1], [], []>} : vector<84x120xbf16>, vector<120x1xbf16>, vector<84x1xf32> -> vector<84x1xf32>
    %c0_21 = arith.constant 0 : index
    %c0_22 = arith.constant 0 : index
    %125 = vector.load %arg9[%c0_21, %c0_22] : memref<84x1xf32, #tpu.memory_space<vmem>>, vector<84x1xf32>
    %126 = arith.addf %124, %125 : vector<84x1xf32>
    %cst_23 = arith.constant 0.000000e+00 : f32
    %127 = vector.broadcast %cst_23 : f32 to vector<84x1xf32>
    %128 = arith.maximumf %126, %127 : vector<84x1xf32>
    %c0_24 = arith.constant 0 : index
    %c0_25 = arith.constant 0 : index
    %129 = vector.load %arg10[%c0_24, %c0_25] : memref<10x84xbf16, #tpu.memory_space<vmem>>, vector<10x84xbf16>
    %130 = arith.truncf %128 : vector<84x1xf32> to vector<84x1xbf16>
    %cst_26 = arith.constant dense<0.000000e+00> : vector<10x1xf32>
    %131 = tpu.matmul %129, %130, %cst_26 {dimension_numbers = #tpu.dot_dimension_numbers<[1], [0], [0], [1], [0, 0, 1, 1], [], []>} : vector<10x84xbf16>, vector<84x1xbf16>, vector<10x1xf32> -> vector<10x1xf32>
    %c0_27 = arith.constant 0 : index
    %c0_28 = arith.constant 0 : index
    %132 = vector.load %arg11[%c0_27, %c0_28] : memref<10x1xf32, #tpu.memory_space<vmem>>, vector<10x1xf32>
    %133 = arith.addf %131, %132 : vector<10x1xf32>
    %134 = vector.shape_cast %133 : vector<10x1xf32> to vector<1x10x1xf32>
    %c0_29 = arith.constant 0 : index
    %c0_30 = arith.constant 0 : index
    %c0_31 = arith.constant 0 : index
    %135 = vector.load %arg12[%c0_29, %c0_30, %c0_31] : memref<1x10x1xf32, #tpu.memory_space<vmem>>, vector<1x10x1xf32>
    tpu.vector_store %arg12[%c0_29, %c0_30, %c0_31], %134 {strides = array<i32>} : memref<1x10x1xf32, #tpu.memory_space<vmem>>, vector<1x10x1xf32>,
    return
  }
  func.func @transform_0(%arg0: i32) -> (i32, i32) {
    %c0_i32 = arith.constant 0 : i32
    %c0_i32_0 = arith.constant 0 : i32
    return %c0_i32, %arg0 : i32, i32
  }
  func.func @transform_1(%arg0: i32) -> (i32, i32) {
    %c0_i32 = arith.constant 0 : i32
    %c0_i32_0 = arith.constant 0 : i32
    %c0_i32_1 = arith.constant 0 : i32
    return %c0_i32, %c0_i32_0 : i32, i32
  }
  func.func @transform_2(%arg0: i32) -> (i32, i32) {
    %c0_i32 = arith.constant 0 : i32
    %c0_i32_0 = arith.constant 0 : i32
    %c0_i32_1 = arith.constant 0 : i32
    return %c0_i32, %c0_i32_0 : i32, i32
  }
  func.func @transform_3(%arg0: i32) -> (i32, i32) {
    %c0_i32 = arith.constant 0 : i32
    %c0_i32_0 = arith.constant 0 : i32
    %c0_i32_1 = arith.constant 0 : i32
    return %c0_i32, %c0_i32_0 : i32, i32
  }
  func.func @transform_4(%arg0: i32) -> (i32, i32) {
    %c0_i32 = arith.constant 0 : i32
    %c0_i32_0 = arith.constant 0 : i32
    %c0_i32_1 = arith.constant 0 : i32
    return %c0_i32, %c0_i32_0 : i32, i32
  }
  func.func @transform_5(%arg0: i32) -> (i32, i32) {
    %c0_i32 = arith.constant 0 : i32
    %c0_i32_0 = arith.constant 0 : i32
    %c0_i32_1 = arith.constant 0 : i32
    return %c0_i32, %c0_i32_0 : i32, i32
  }
  func.func @transform_6(%arg0: i32) -> (i32, i32) {
    %c0_i32 = arith.constant 0 : i32
    %c0_i32_0 = arith.constant 0 : i32
    %c0_i32_1 = arith.constant 0 : i32
    return %c0_i32, %c0_i32_0 : i32, i32
  }
  func.func @transform_7(%arg0: i32) -> (i32, i32) {
    %c0_i32 = arith.constant 0 : i32
    %c0_i32_0 = arith.constant 0 : i32
    %c0_i32_1 = arith.constant 0 : i32
    return %c0_i32, %c0_i32_0 : i32, i32
  }
  func.func @transform_8(%arg0: i32) -> (i32, i32) {
    %c0_i32 = arith.constant 0 : i32
    %c0_i32_0 = arith.constant 0 : i32
    %c0_i32_1 = arith.constant 0 : i32
    return %c0_i32, %c0_i32_0 : i32, i32
  }
  func.func @transform_9(%arg0: i32) -> (i32, i32) {
    %c0_i32 = arith.constant 0 : i32
    %c0_i32_0 = arith.constant 0 : i32
    %c0_i32_1 = arith.constant 0 : i32
    return %c0_i32, %c0_i32_0 : i32, i32
  }
  func.func @transform_10(%arg0: i32) -> (i32, i32) {
    %c0_i32 = arith.constant 0 : i32
    %c0_i32_0 = arith.constant 0 : i32
    %c0_i32_1 = arith.constant 0 : i32
    return %c0_i32, %c0_i32_0 : i32, i32
  }
  func.func @transform_11(%arg0: i32) -> (i32, i32, i32) {
    %c0_i32 = arith.constant 0 : i32
    %c0_i32_0 = arith.constant 0 : i32
    %c0_i32_1 = arith.constant 0 : i32
    return %arg0, %c0_i32, %c0_i32_0 : i32, i32, i32
  }
}

</mosaic_0001>

<bundles_post_ra>
// kernel: net_forward.1
= control target key start
LH: loop header
LB: loop body
LE: loop exit
PB: predicated region body
PF: predicated region fallthrough
CT: control target
= control target key end

     0   :  { %s4572_s17 = smov 0   ;;  %s6451_s0 = inlined_call_operand.vmem [shape: f32[8,2048], index: 0, kind: input, shape index: {}]   ;;  %s6452_s1 = inlined_call_operand.vmem [shape: bf16[8,200], index: 1, kind: input, shape index: {}]   ;;  %s6453_s2 = inlined_call_operand.vmem [shape: f32[8,1], index: 2, kind: input, shape index: {}]   ;;  %s6454_s3 = inlined_call_operand.vmem [shape: bf16[16,200], index: 3, kind: input, shape index: {}]   ;;  %s6455_s4 = inlined_call_operand.vmem [shape: f32[16,1], index: 4, kind: input, shape index: {}]   ;;  %s6456_s5 = inlined_call_operand.vmem [shape: bf16[120,400], index: 5, kind: input, shape index: {}]   ;;  %s6457_s6 = inlined_call_operand.vmem [shape: f32[120,1], index: 6, kind: input, shape index: {}]   ;;  %s6458_s7 = inlined_call_operand.vmem [shape: bf16[84,120], index: 7, kind: input, shape index: {}]   ;;  %s6459_s8 = inlined_call_operand.vmem [shape: f32[84,1], index: 8, kind: input, shape index: {}]   ;;  %s6460_s9 = inlined_call_operand.vmem [shape: bf16[10,84], index: 9, kind: input, shape index: {}]   ;;  %s6461_s10 = inlined_call_operand.vmem [shape: f32[10,1], index: 10, kind: input, shape index: {}]   ;;  %s6462_s11 = inlined_call_operand.vmem [shape: f32[2,10,1], index: 11, kind: output, shape index: {}]  }
   0x1 LB: > { %s4578_s18 = sadd.s32 4294967295, %s4482_s17   ;;  %p3224_p0 = scmp.ge.s32.totalorder %s4482_s17, 1  ;;  %s4482_s17 = sphi %s4572_s17, %s21_s17  }
   0x2   : > { %p338_p1 = scmp.lt.s32.totalorder %s4482_s17, 3 }
   0x4   : > { %p339_p2 = pnand %p3224_p0, %p338_p1 }
   0x5   : > { %s3225_s19 = sshll.u32 (!%p339_p2), %s4578_s18, 3  ;;  %s6463_s24 = smov (!%p339_p2), 127   ;;  %vm6466_vm0 = vcmask (!%p339_p2), 1039360   ;;  %vm447_vm1 = vcmask (!%p339_p2), 1031168   ;;  %vm475_vm2 = vcmask (!%p339_p2), 1022976   ;;  %vm882_vm3 = vcmask (!%p339_p2), 793600  }
   0x6   : > { %342 = sbr.rel (%p339_p2) target bundleno = 2722 (0xaa2), region = 64  ;;  %p379_p3 = scmp.lt.s32.totalorder (!%p339_p2), %s3225_s19, 15  ;;  %vm534_vm4 = vcmask (!%p339_p2), 785408   ;;  %vm565_vm5 = vcmask (!%p339_p2), 777216   ;;  %vm596_vm6 = vcmask (!%p339_p2), 769024   ;;  %vm627_vm7 = vcmask (!%p339_p2), 760832  }
   0x7   : > { %s4485_s25 = smov (!%p339_p2), 126   ;;  %s4486_s26 = smov (!%p339_p2), 125   ;;  %vm503_vm8 = vcmask (!%p339_p2), 1014784   ;;  %vm658_vm9 = vcmask (!%p339_p2), 752640   ;;  %vm1264_vm10 = vcmask (!%p339_p2), 588800   ;;  %vm720_vm11 = vcmask (!%p339_p2), 515072  }
   0x8   : > { %s4487_s27 = smov (!%p339_p2), 96   ;;  %s4488_s28 = smov (!%p339_p2), 97   ;;  %vm689_vm12 = vcmask (!%p339_p2), 523264   ;;  %vm751_vm13 = vcmask (!%p339_p2), 506880   ;;  %vm782_vm14 = vcmask (!%p339_p2), 498688   ;;  %vm813_vm15 = vcmask (!%p339_p2), 490496  }
   0x9   : > { %s4489_s29 = smov (!%p339_p2), 95   ;;  %s4490_s30 = smov (!%p339_p2), 94  }
   0xa   : > { %s4491_s12 = smov (!%p339_p2), 93   ;;  %s4492_s13 = smov (!%p339_p2), 124  }
   0xb   : > { %s4493_s14 = smov (!%p339_p2), 92   ;;  %s4494_s15 = smov (!%p339_p2), 63  }
   0xc   : > { %s4495_s16 = smov (!%p339_p2), 64   ;;  %s4498_s21 = smov (!%p339_p2), 60  }
   0xd   : > { %s6529_s19 = smov (!%p379_p3, %s3225_s19), 15  ;;  %s4499_s22 = smov 32  }
   0xe   : > { %s3226_s20 = sshll.u32 %s6529_s19, 3  ;;  %s4496_s19 = smov 61  }
   0xf   : > { %s4586_s23 = scalar_lea.vmem %s6451_s0, %s3226_s20  ;;  %s4497_s20 = smov 62  }
  0x10   : > { %v4589_v0 = vld [vmem:[%s4586_s23 + $0x20] sm:$0xff]  ;;  %v4592_v1 = vld [vmem:[%s4586_s23 + $0x28] sm:$0xff]  ;;  %v4602_v4 = vld [vmem:[%s4586_s23 + $0x10] sm:$0xff]  ;;  %p384_p4 = scmp.lt.s32.totalorder %s4578_s18, 1 }
  0x11   : > { %v4595_v2 = vld [vmem:[%s4586_s23 + $0x8] sm:$0xff]  ;;  %v4599_v3 = vpack.i.bf16 %v4592_v1, %v4589_v0  ;;  %v4605_v5 = vld [vmem:[%s4586_s23] sm:$0xff]  ;;  %v4608_v6 = vld [vmem:[%s4586_s23 + $0x18] sm:$0xff] }
  0x12   : > { %v4612_v7 = vpack.i.bf16 %v4602_v4, %v4595_v2  ;;  %v3473_v8 = vpack.i.bf16 %v4605_v5, %v4608_v6  ;;  %v3518_v9 = vpack.i.bf16 %v4589_v0, %v4608_v6  ;;  %v3533_v10 = vpack.i.bf16 %v4605_v5, %v4592_v1  ;;  %v4641_v11 = vld [vmem:[%s4586_s23 + $0x30] sm:$0xff]  ;;  %v4686_v14 = vld [vmem:[%s4586_s23 + $0x38] sm:$0xff]  ;;  %s6531_s18 = smov (!%p384_p4, %s4578_s18), 1 }
  0x13   : > { %3479 = vrot.lane.b32.xlu1 %v4599_v3, %s6463_s24  ;;  %v4647_v12 = vpack.i.bf16 %v4641_v11, %v4592_v1  ;;  %v3593_v13 = vpack.i.bf16 %v4608_v6, %v4605_v5  ;;  %v4694_v15 = vpack.i.bf16 %v4686_v14, %v4641_v11 }
  0x14   : > { %3469 = vrot.lane.b32.xlu0 %v4612_v7, %s6463_s24 }
  0x17   : > { %3484 = vrot.lane.b32.xlu1 %v4612_v7, %s4485_s25 }
  0x18   : > { %3474 = vrot.lane.b32.xlu0 %v3473_v8, %s6463_s24 }
  0x1b   : > { %3494 = vrot.lane.b32.xlu1 %v4612_v7, %s4486_s26 }
  0x1c   : > { %3489 = vrot.lane.b32.xlu0 %v3473_v8, %s4485_s25 }
  0x1f   : > { %3504 = vrot.lane.b32.xlu1 %v4599_v3, %s4485_s25 }
  0x20   : > { %3499 = vrot.lane.b32.xlu0 %v3473_v8, %s4486_s26 }
  0x23   : > { %3514 = vrot.lane.b32.xlu1 %v4612_v7, %s4487_s27 }
  0x24   : > { %3509 = vrot.lane.b32.xlu0 %v4599_v3, %s4486_s26 }
  0x27   : > { %3524 = vrot.lane.b32.xlu1 %v4612_v7, %s4488_s28 }
  0x28   : > { %3519 = vrot.lane.b32.xlu0 %v3518_v9, %s4487_s27 }
  0x2b   : > { %3534 = vrot.lane.b32.xlu1 %v3533_v10, %s4487_s27 }
  0x2c   : > { %3529 = vrot.lane.b32.xlu0 %v3518_v9, %s4488_s28 }
  0x2f   : > { %3544 = vrot.lane.b32.xlu1 %v4612_v7, %s4489_s29 }
  0x30   : > { %3539 = vrot.lane.b32.xlu0 %v4647_v12, %s4488_s28 }
  0x33   : > { %3554 = vrot.lane.b32.xlu1 %v4612_v7, %s4490_s30 }
  0x34   : > { %3549 = vrot.lane.b32.xlu0 %v3518_v9, %s4489_s29 }
  0x37   : > { %3564 = vrot.lane.b32.xlu1 %v3533_v10, %s4489_s29 }
  0x38   : > { %3559 = vrot.lane.b32.xlu0 %v3518_v9, %s4490_s30 }
  0x3b   : > { %3574 = vrot.lane.b32.xlu1 %v4612_v7, %s4491_s12 }
  0x3c   : > { %3569 = vrot.lane.b32.xlu0 %v3533_v10, %s4490_s30 }
  0x3f   : > { %3584 = vrot.lane.b32.xlu1 %v3533_v10, %s4491_s12 }
  0x40   : > { %3579 = vrot.lane.b32.xlu0 %v3518_v9, %s4491_s12 }
  0x43   : > { %3594 = vrot.lane.b32.xlu1 %v3593_v13, %s4492_s13 }
  0x44   : > { %3589 = vrot.lane.b32.xlu0 %v4612_v7, %s4492_s13 }
  0x47   : > { %3604 = vrot.lane.b32.xlu1 %v4612_v7, %s4493_s14 }
  0x48   : > { %3599 = vrot.lane.b32.xlu0 %v4599_v3, %s4492_s13 }
  0x4b   : > { %3614 = vrot.lane.b32.xlu1 %v4599_v3, %s4493_s14 }
  0x4c   : > { %3609 = vrot.lane.b32.xlu0 %v3593_v13, %s4493_s14 }
  0x4f   : > { %3624 = vrot.lane.b32.xlu1 %v4612_v7, %s4494_s15 }
  0x50   : > { %3619 = vrot.lane.b32.xlu0 %v4612_v7, %s4495_s16 }
  0x53   : > { %3634 = vrot.lane.b32.xlu1 %v4599_v3, %s4495_s16 }
  0x54   : > { %3629 = vrot.lane.b32.xlu0 %v3593_v13, %s4495_s16 }
  0x57   : > { %3644 = vrot.lane.b32.xlu1 %v4599_v3, %s4494_s15 }
  0x58   : > { %3639 = vrot.lane.b32.xlu0 %v3593_v13, %s4494_s15 }
  0x5b   : > { %3654 = vrot.lane.b32.xlu1 %v4612_v7, %s4496_s19 }
  0x5c   : > { %3649 = vrot.lane.b32.xlu0 %v4612_v7, %s4497_s20 }
  0x5f   : > { %3664 = vrot.lane.b32.xlu1 %v3593_v13, %s4497_s20 }
  0x60   : > { %3659 = vrot.lane.b32.xlu0 %v4694_v15, %s6463_s24  ;;  %s4500_s24 = smov 31  }
  0x63   : > { %3674 = vrot.lane.b32.xlu1 %v3593_v13, %s4496_s19 }
  0x64   : > { %3669 = vrot.lane.b32.xlu0 %v4599_v3, %s4497_s20 }
  0x67   : > { %3679 = vrot.lane.b32.xlu1 %v4612_v7, %s4498_s21 }
  0x68   : > { %774 = vrot.lane.b32.xlu0 %v4589_v0, %s4496_s19 }
  0x6b   : > { %3689 = vrot.lane.b32.xlu1 %v4694_v15, %s4485_s25 }
  0x6c   : > { %3684 = vrot.lane.b32.xlu0 %v4612_v7, %s4499_s22 }
  0x6f   : > { %3699 = vrot.lane.b32.xlu1 %v3593_v13, %s4498_s21 }
  0x70   : > { %3694 = vrot.lane.b32.xlu0 %v4694_v15, %s4486_s26 }
  0x73   : > { %3704 = vrot.lane.b32.xlu1 %v3593_v13, %s4499_s22 }
  0x74   : > { %805 = vrot.lane.b32.xlu0 %v4589_v0, %s4498_s21 }
  0x77   : > { %3709 = vrot.lane.b32.xlu1 %v4612_v7, %s4500_s24 }
  0x78   : > { %836 = vrot.lane.b32.xlu0 %v4589_v0, %s4499_s22 }
  0x7b   : > { %3714 = vrot.lane.b32.xlu1 %v4694_v15, %s4487_s27 }
  0x7c   : > { %880 = vrot.lane.b32.xlu0 %v4686_v14, %s4488_s28 }
  0x7f   : > { %3719 = vrot.lane.b32.xlu1 %v3593_v13, %s4500_s24 }
  0x80   : > { %3724 = vrot.lane.b32.xlu0 %v4694_v15, %s4489_s29 }
  0x83   : > { %3729 = vrot.lane.b32.xlu1 %v4694_v15, %s4490_s30 }
  0x85   : > { %v4729_v16 = vpop.permute.xlu1 %3479 }
  0x86   : > { %v3470_v17 = vpop.permute.xlu0 %3469  ;;  %v3482_v20 = vunpack.i.h.bf16 %v4729_v16  ;;  %v3481_v21 = vunpack.i.l.bf16 %v4729_v16 }
  0x87   : > { %v3472_v18 = vunpack.i.h.bf16 %v3470_v17  ;;  %v3471_v19 = vunpack.i.l.bf16 %v3470_v17 }
  0x88   : > { %v4738_v30 = vsel %vm6466_vm0, %v3481_v21, %v3482_v20 }
  0x89   : > { %v3485_v22 = vpop.permute.xlu1 %3484  ;;  %v421_v23 = vsel %vm6466_vm0, %v3471_v19, %v3472_v18 }
  0x8a   : > { %v3487_v24 = vunpack.i.h.bf16 %v3485_v22  ;;  %v3486_v25 = vunpack.i.l.bf16 %v3485_v22  ;;  %v3475_v26 = vpop.permute.xlu0 %3474  ;;  %v1161_v27 = vpack.c.bf16 %v421_v23, %v4595_v2 }
  0x8b   : > { %v3477_v28 = vunpack.i.h.bf16 %v3475_v26  ;;  %v3476_v29 = vunpack.i.l.bf16 %v3475_v26 }
  0x8c   : > { %1290 = vmatprep.subr.bf16.mxu0 %v1161_v27  ;;  %v449_v39 = vsel %vm447_vm1, %v3486_v25, %v3487_v24 }
  0x8d   : > { %v422_v31 = vsel %vm6466_vm0, %v3472_v18, %v3476_v29  ;;  %v3495_v32 = vpop.permute.xlu1 %3494  ;;  %v420_v33 = vsel %vm6466_vm0, %v3477_v28, %v3471_v19  ;;  %v423_v34 = vsel %vm6466_vm0, %v3476_v29, %v3481_v21 }
  0x8e   : > { %v3733_v35 = vpack.i.bf16 %v422_v31, %v421_v23  ;;  %v3497_v36 = vunpack.i.h.bf16 %v3495_v32  ;;  %v3496_v37 = vunpack.i.l.bf16 %v3495_v32  ;;  %v3490_v38 = vpop.permute.xlu0 %3489  ;;  %v1160_v40 = vpack.c.bf16 %v420_v33, %v4605_v5 }
  0x8f   : > { %v3743_v41 = vpack.i.bf16 %v4738_v30, %v423_v34  ;;  %v3491_v42 = vunpack.i.l.bf16 %v3490_v38  ;;  %v1163_v43 = vpack.c.bf16 %v423_v34, %v4608_v6  ;;  %v1162_v44 = vpack.c.bf16 %v422_v31, %v4602_v4 }
  0x90   : > { %3734 = vrot.lane.b32.xlu0 %v3733_v35, %s4500_s24  ;;  %v477_v45 = vsel %vm475_vm2, %v3496_v37, %v3497_v36  ;;  %v3492_v46 = vunpack.i.h.bf16 %v3490_v38  ;;  %1291 = vmatpush1.bf16.msra.mxu0 %v1160_v40  ;;  %v3738_v49 = vpack.i.bf16 %v420_v33, %v4589_v0 }
  0x91   : > { %3744 = vrot.lane.b32.xlu1 %v3743_v41, %s4500_s24  ;;  %v4751_v47 = vpop.permute.xlu1 %3504  ;;  %v1168_v48 = vpack.c.bf16 %v477_v45, %v449_v39  ;;  %1331 = vmatprep.subr.bf16.mxu1 %v1163_v43  ;;  %v450_v55 = vsel %vm447_vm1, %v3487_v24, %v3491_v42 }
  0x92   : > { %v3500_v50 = vpop.permute.xlu0 %3499  ;;  %1332 = vmatpush1.bf16.msra.mxu1 %v1162_v44  ;;  %v3507_v51 = vunpack.i.h.bf16 %v4751_v47  ;;  %v3506_v52 = vunpack.i.l.bf16 %v4751_v47  ;;  %v448_v57 = vsel %vm447_vm1, %v3492_v46, %v3486_v25  ;;  %v3748_v2 = vpack.i.bf16 %v450_v55, %v449_v39 }
  0x93   : > { %v3502_v53 = vunpack.i.h.bf16 %v3500_v50  ;;  %v3501_v54 = vunpack.i.l.bf16 %v3500_v50  ;;  %1292 = vmatprep.subr.bf16.mxu0 %v1168_v48 }
  0x94   : > { %3739 = vrot.lane.b32.xlu0 %v3738_v49, %s4500_s24  ;;  %v4768_v3 = vsel %vm447_vm1, %v3506_v52, %v3507_v51  ;;  %v451_v4 = vsel %vm447_vm1, %v3491_v42, %v3506_v52 }
  0x95   : > { %v3515_v56 = vpop.permute.xlu1 %3514  ;;  %v476_v58 = vsel %vm475_vm2, %v3502_v53, %v3496_v37  ;;  %v478_v59 = vsel %vm475_vm2, %v3497_v36, %v3501_v54  ;;  %v3758_v19 = vpack.i.bf16 %v451_v4, %v448_v57 }
  0x96   : > { %v4761_v60 = vpop.permute.xlu0 %3509  ;;  %v1167_v61 = vpack.c.bf16 %v476_v58, %v448_v57  ;;  %v3753_v62 = vpack.i.bf16 %v478_v59, %v477_v45  ;;  %v3763_v9 = vpack.i.bf16 %v476_v58, %v4768_v3  ;;  %v1169_v21 = vpack.c.bf16 %v478_v59, %v450_v55 }
  0x97   : > { %v3512_v63 = vunpack.i.h.bf16 %v4761_v60  ;;  %v3511_v0 = vunpack.i.l.bf16 %v4761_v60  ;;  %v3517_v22 = vunpack.i.h.bf16 %v3515_v56  ;;  %v4782_v23 = vunpack.i.l.bf16 %v3515_v56 }
  0x98   : > { %1293 = vmatpush1.bf16.msra.mxu0 %v1167_v61  ;;  %3754 = vrot.lane.b32.xlu1 %v3753_v62, %s4500_s24 }
  0x99   : > { %3749 = vrot.lane.b32.xlu0 %v3748_v2, %s4500_s24  ;;  %v3525_v5 = vpop.permute.xlu1 %3524  ;;  %v479_v6 = vsel %vm475_vm2, %v3501_v54, %v3511_v0  ;;  %v4777_v7 = vsel %vm475_vm2, %v3511_v0, %v3512_v63  ;;  %v4792_v32 = vsel %vm534_vm4, %v4782_v23, %v3517_v22 }
  0x9a   : > { %v3520_v8 = vpop.permute.xlu0 %3519  ;;  %v1170_v10 = vpack.c.bf16 %v479_v6, %v451_v4  ;;  %v3527_v17 = vunpack.i.h.bf16 %v3525_v5  ;;  %v3526_v18 = vunpack.i.l.bf16 %v3525_v5  ;;  %v3768_v29 = vpack.i.bf16 %v4777_v7, %v479_v6 }
  0x9b   : > { %v3521_v24 = vunpack.i.l.bf16 %v3520_v8  ;;  %v3522_v45 = vunpack.i.h.bf16 %v3520_v8 }
  0x9c   : > { %3764 = vrot.lane.b32.xlu1 %v3763_v9, %s4500_s24  ;;  %1333 = vmatprep.subr.bf16.mxu1 %v1170_v10  ;;  %v883_v31 = vsel %vm882_vm3, %v3526_v18, %v3527_v17 }
  0x9d   : > { %3759 = vrot.lane.b32.xlu0 %v3758_v19, %s4500_s24  ;;  %1334 = vmatpush1.bf16.msra.mxu1 %v1169_v21  ;;  %v4786_v25 = vpop.permute.xlu1 %3534  ;;  %v4795_v33 = vsel %vm534_vm4, %v3517_v22, %v3521_v24  ;;  %v4835_v0 = vsel %vm534_vm4, %v3521_v24, %v3522_v45 }
  0x9e   : > { %v3530_v26 = vpop.permute.xlu0 %3529  ;;  %v3778_v39 = vpack.i.bf16 %v4795_v33, %v4792_v32  ;;  %v3536_v41 = vunpack.i.l.bf16 %v4786_v25 }
  0x9f   : > { %v3532_v27 = vunpack.i.h.bf16 %v3530_v26  ;;  %v3531_v28 = vunpack.i.l.bf16 %v3530_v26 }
  0xa0   : > { %v4820_v54 = vsel %vm534_vm4, %v3522_v45, %v3536_v41 }
  0xa1   : > { %3769 = vrot.lane.b32.xlu0 %v3768_v29, %s4500_s24  ;;  %v3545_v34 = vpop.permute.xlu1 %3544  ;;  %v884_v35 = vsel %vm882_vm3, %v3527_v17, %v3531_v28  ;;  %v885_v40 = vsel %vm882_vm3, %v3531_v28, %v3532_v27  ;;  %v3798_v4 = vpack.i.bf16 %v4820_v54, %v4835_v0 }
  0xa2   : > { %v4799_v36 = vpop.permute.xlu0 %3539  ;;  %v3773_v37 = vpack.i.bf16 %v884_v35, %v883_v31  ;;  %v3547_v42 = vunpack.i.h.bf16 %v3545_v34  ;;  %v4807_v43 = vunpack.i.l.bf16 %v3545_v34  ;;  %v3788_v48 = vpack.i.bf16 %v885_v40, %v3526_v18 }
  0xa3   : > { %v3541_v38 = vunpack.i.l.bf16 %v4799_v36  ;;  %v3537_v35 = vunpack.i.h.bf16 %v4786_v25  ;;  %v3542_v47 = vunpack.i.h.bf16 %v4799_v36 }
  0xa4   : > { %3774 = vrot.lane.b32.xlu1 %v3773_v37, %s4500_s24  ;;  %v4827_v57 = vsel %vm565_vm5, %v4807_v43, %v3547_v42 }
  0xa5   : > { %3779 = vrot.lane.b32.xlu0 %v3778_v39, %s4500_s24  ;;  %v3555_v44 = vpop.permute.xlu1 %3554  ;;  %v886_v53 = vsel %vm882_vm3, %v3532_v27, %v3541_v38 }
  0xa6   : > { %v3550_v46 = vpop.permute.xlu0 %3549  ;;  %v3557_v49 = vunpack.i.h.bf16 %v3555_v44  ;;  %v4810_v50 = vunpack.i.l.bf16 %v3555_v44  ;;  %v3793_v62 = vpack.i.bf16 %v4782_v23, %v886_v53 }
  0xa7   : > { %v3551_v52 = vunpack.i.l.bf16 %v3550_v46  ;;  %v3552_v55 = vunpack.i.h.bf16 %v3550_v46 }
  0xa8   : > { %3784 = vrot.lane.b32.xlu1 %v4694_v15, %s4491_s12  ;;  %v4841_v5 = vsel %vm596_vm6, %v4810_v50, %v3557_v49  ;;  %s4504_s12 = smov 58  }
  0xa9   : > { %3789 = vrot.lane.b32.xlu0 %v3788_v48, %s4500_s24  ;;  %v4823_v56 = vpop.permute.xlu1 %3564  ;;  %v4830_v58 = vsel %vm565_vm5, %v3547_v42, %v3551_v52  ;;  %v4851_v17 = vsel %vm565_vm5, %v3551_v52, %v3552_v55 }
  0xaa   : > { %v3566_v59 = vunpack.i.l.bf16 %v4823_v56  ;;  %v3560_v61 = vpop.permute.xlu0 %3559  ;;  %v3803_v6 = vpack.i.bf16 %v4830_v58, %v4827_v57  ;;  %v3813_v27 = vpack.i.bf16 %v4851_v17, %v4807_v43  ;;  %v3567_v44 = vunpack.i.h.bf16 %v4823_v56 }
  0xab   : > { %v3561_v2 = vunpack.i.l.bf16 %v3560_v61  ;;  %v3562_v8 = vunpack.i.h.bf16 %v3560_v61 }
  0xac   : > { %3794 = vrot.lane.b32.xlu1 %v3793_v62, %s4500_s24  ;;  %v4862_v24 = vsel %vm565_vm5, %v3552_v55, %v3566_v59 }
  0xad   : > { %3799 = vrot.lane.b32.xlu0 %v3798_v4, %s4500_s24  ;;  %v3575_v9 = vpop.permute.xlu1 %3574  ;;  %v4848_v10 = vsel %vm596_vm6, %v3557_v49, %v3561_v2  ;;  %v3818_v29 = vpack.i.bf16 %v4810_v50, %v4862_v24  ;;  %v4874_v31 = vsel %vm596_vm6, %v3561_v2, %v3562_v8  ;;  %v535_v4 = vsel %vm534_vm4, %v3537_v35, %v4782_v23 }
  0xae   : > { %v3577_v18 = vunpack.i.h.bf16 %v3575_v9  ;;  %v4853_v19 = vunpack.i.l.bf16 %v3575_v9  ;;  %v4855_v21 = vpop.permute.xlu0 %3569  ;;  %v3808_v22 = vpack.i.bf16 %v4848_v10, %v4841_v5 }
  0xaf   : > { %v3571_v26 = vunpack.i.l.bf16 %v4855_v21 }
  0xb0   : > { %3804 = vrot.lane.b32.xlu1 %v3803_v6, %s4500_s24  ;;  %v4887_v42 = vsel %vm627_vm7, %v4853_v19, %v3577_v18  ;;  %v1182_v6 = vpack.c.bf16 %v4841_v5, %v4827_v57 }
  0xb1   : > { %3809 = vrot.lane.b32.xlu0 %v3808_v22, %s4500_s24  ;;  %v4869_v28 = vpop.permute.xlu1 %3584  ;;  %v4879_v34 = vsel %vm596_vm6, %v3562_v8, %v3571_v26  ;;  %v3828_v52 = vpack.i.bf16 %v4887_v42, %v4853_v19  ;;  %v4914_v8 = vld [vmem:[%s6452_s1] sm:$0xff]  ;;  %v566_v22 = vsel %vm565_vm5, %v3567_v44, %v4807_v43 }
  0xb2   : > { %v3586_v37 = vunpack.i.l.bf16 %v4869_v28  ;;  %v3580_v39 = vpop.permute.xlu0 %3579  ;;  %v3823_v48 = vpack.i.bf16 %v4879_v34, %v4874_v31 }
  0xb3   : > { %v3582_v45 = vunpack.i.h.bf16 %v3580_v39  ;;  %v3581_v46 = vunpack.i.l.bf16 %v3580_v39 }
  0xb4   : > { %3814 = vrot.lane.b32.xlu1 %v3813_v27, %s4500_s24  ;;  %v4920_v27 = vcombine.high %v4914_v8, %v4914_v8 }
  0xb5   : > { %3819 = vrot.lane.b32.xlu0 %v3818_v29, %s4500_s24  ;;  %v3595_v49 = vpop.permute.xlu1 %3594  ;;  %v4897_v53 = vsel %vm627_vm7, %v3577_v18, %v3581_v46  ;;  %v4900_v55 = vsel %vm627_vm7, %v3581_v46, %v3582_v45  ;;  %v4905_v2 = vsel %vm627_vm7, %v3582_v45, %v3586_v37  ;;  %v3572_v29 = vunpack.i.h.bf16 %v4855_v21 }
  0xb6   : > { %v3596_v61 = vunpack.i.l.bf16 %v3595_v49  ;;  %v3590_v62 = vpop.permute.xlu0 %3589  ;;  %v3597_v23 = vunpack.i.h.bf16 %v3595_v49  ;;  %v3833_v57 = vpack.i.bf16 %v4900_v55, %v4897_v53  ;;  %v3838_v43 = vpack.i.bf16 %v4592_v1, %v4905_v2  ;;  %3234 = vmatprep.mubr.msk.bf16.mxu1 %vm1264_vm10, %v4920_v27  ;;  %3232 = vmatprep.mubr.msk.bf16.mxu0 %vm1264_vm10, %v4920_v27 }
  0xb7   : > { %v3592_v9 = vunpack.i.h.bf16 %v3590_v62  ;;  %v3591_v18 = vunpack.i.l.bf16 %v3590_v62  ;;  %v3587_v1 = vunpack.i.h.bf16 %v4869_v28 }
  0xb8   : > { %3824 = vrot.lane.b32.xlu1 %v3823_v48, %s4500_s24 }
  0xb9   : > { %3829 = vrot.lane.b32.xlu0 %v3828_v52, %s4500_s24  ;;  %v4927_v5 = vpop.permute.xlu1 %3604  ;;  %v505_v35 = vsel %vm503_vm8, %v3591_v18, %v3592_v9  ;;  %v504_v39 = vsel %vm503_vm8, %v3596_v61, %v3591_v18  ;;  %v6477_v52 = vmov 0   ;;  %v1184_v18 = vpack.c.bf16 %v4874_v31, %v4851_v17 }
  0xba   : > { %v3607_v44 = vunpack.i.h.bf16 %v4927_v5  ;;  %v3606_v45 = vunpack.i.l.bf16 %v4927_v5  ;;  %v4937_v46 = vpop.permute.xlu0 %3599  ;;  %v1175_v48 = vpack.c.bf16 %v4792_v32, %v505_v35  ;;  %v1174_v49 = vpack.c.bf16 %v535_v4, %v504_v39  ;;  %3943 = vset.pattern.permute.xlu1 %v6477_v52  ;;  %4234 = vset.pattern.permute.xlu0 %v6477_v52 }
  0xbb   : > { %v6465_v61 = vunpack.i.h.bf16 %v4937_v46  ;;  %v3601_v62 = vunpack.i.l.bf16 %v4937_v46  ;;  %v597_v32 = vsel %vm596_vm6, %v3572_v29, %v4810_v50  ;;  %v506_v4 = vsel %vm503_vm8, %v3592_v9, %v3597_v23 }
  0xbc   : > { %1294 = vmatprep.subr.bf16.mxu0 %v1175_v48  ;;  %3834 = vrot.lane.b32.xlu1 %v3833_v57, %s4500_s24  ;;  %v660_v35 = vsel %vm658_vm9, %v3606_v45, %v3607_v44 }
  0xbd   : > { %v4959_v39 = vsel %vm503_vm8, %v3601_v62, %v6465_v61  ;;  %3839 = vrot.lane.b32.xlu0 %v3838_v43, %s4500_s24  ;;  %1295 = vmatpush1.bf16.msra.mxu0 %v1174_v49  ;;  %v4962_v17 = vpop.permute.xlu1 %3614  ;;  %v507_v31 = vsel %vm503_vm8, %v3597_v23, %v3601_v62  ;;  %v1189_v50 = vpack.c.bf16 %v660_v35, %v4887_v42 }
  0xbe   : > { %v6470_v9 = vunpack.i.h.bf16 %v4962_v17  ;;  %v3616_v29 = vunpack.i.l.bf16 %v4962_v17  ;;  %v3610_v57 = vpop.permute.xlu0 %3609  ;;  %1296 = vmatprep.subr.bf16.mxu0 %v1182_v6  ;;  %v1177_v48 = vpack.c.bf16 %v4835_v0, %v507_v31  ;;  %v1181_v49 = vpack.c.bf16 %v597_v32, %v566_v22 }
  0xbf   : > { %v3612_v13 = vunpack.i.h.bf16 %v3610_v57  ;;  %v3611_v43 = vunpack.i.l.bf16 %v3610_v57  ;;  %v628_v61 = vsel %vm627_vm7, %v3587_v1, %v4853_v19  ;;  %v1176_v0 = vpack.c.bf16 %v4795_v33, %v506_v4 }
  0xc0   : > { %v4976_v42 = vsel %vm658_vm9, %v3616_v29, %v6470_v9  ;;  %501 = vrot.lane.b32.xlu1 %v4641_v11, %s4492_s13  ;;  %1335 = vmatprep.subr.bf16.mxu1 %v1177_v48 }
  0xc1   : > { %3844 = vrot.lane.b32.xlu0 %v4694_v15, %s4493_s14  ;;  %1297 = vmatpush1.bf16.msra.mxu0 %v1181_v49  ;;  %v3625_v6 = vpop.permute.xlu1 %3624  ;;  %v659_v22 = vsel %vm658_vm9, %v3611_v43, %v3606_v45  ;;  %v662_v19 = vsel %vm658_vm9, %v3612_v13, %v3616_v29  ;;  %v1183_v45 = vpack.c.bf16 %v4848_v10, %v4830_v58  ;;  %s4505_s14 = smov 56  }
  0xc2   : > { %1336 = vmatpush1.bf16.msra.mxu1 %v1176_v0  ;;  %v3627_v23 = vunpack.i.h.bf16 %v3625_v6  ;;  %v3626_v1 = vunpack.i.l.bf16 %v3625_v6  ;;  %v3620_v62 = vpop.permute.xlu0 %3619  ;;  %1298 = vmatprep.subr.bf16.mxu0 %v1189_v50  ;;  %v1188_v32 = vpack.c.bf16 %v659_v22, %v628_v61  ;;  %v1191_v33 = vpack.c.bf16 %v662_v19, %v4900_v55 }
  0xc3   : > { %v3622_v35 = vunpack.i.h.bf16 %v3620_v62  ;;  %v3621_v31 = vunpack.i.l.bf16 %v3620_v62  ;;  %1337 = vmatprep.subr.bf16.mxu1 %v1184_v18  ;;  %v661_v55 = vsel %vm658_vm9, %v3607_v44, %v3612_v13 }
  0xc4   : > { %3849 = vrot.lane.b32.xlu1 %v4694_v15, %s4495_s16  ;;  %v722_v29 = vsel %vm720_vm11, %v3626_v1, %v3627_v23  ;;  %v1190_v49 = vpack.c.bf16 %v661_v55, %v4897_v53 }
  0xc5   : > { %3854 = vrot.lane.b32.xlu0 %v4694_v15, %s4494_s15  ;;  %1299 = vmatpush1.bf16.msra.mxu0 %v1188_v32  ;;  %v4995_v61 = vpop.permute.xlu1 %3634  ;;  %v691_v18 = vsel %vm689_vm12, %v3621_v31, %v3622_v35  ;;  %s4506_s15 = smov 120  }
  0xc6   : > { %1338 = vmatpush1.bf16.msra.mxu1 %v1183_v45  ;;  %v6469_v50 = vunpack.i.h.bf16 %v4995_v61  ;;  %v3630_v57 = vpop.permute.xlu0 %3629  ;;  %v1196_v48 = vpack.c.bf16 %v722_v29, %v691_v18  ;;  %v3636_v58 = vunpack.i.l.bf16 %v4995_v61 }
  0xc7   : > { %v3632_v10 = vunpack.i.h.bf16 %v3630_v57  ;;  %v3631_v43 = vunpack.i.l.bf16 %v3630_v57  ;;  %1339 = vmatprep.subr.bf16.mxu1 %v1191_v33 }
  0xc8   : > { %3859 = vrot.lane.b32.xlu1 %v4694_v15, %s4497_s20  ;;  %1300 = vmatprep.subr.bf16.mxu0 %v1196_v48  ;;  %v5013_v5 = vsel %vm689_vm12, %v3636_v58, %v6469_v50 }
  0xc9   : > { %3864 = vrot.lane.b32.xlu0 %v4647_v12, %s4496_s19  ;;  %v5008_v13 = vpop.permute.xlu1 %3644  ;;  %v693_v53 = vsel %vm689_vm12, %v3632_v10, %v3636_v58  ;;  %v690_v19 = vsel %vm689_vm12, %v3631_v43, %v3621_v31  ;;  %v692_v32 = vsel %vm689_vm12, %v3622_v35, %v3632_v10 }
  0xca   : > { %1340 = vmatpush1.bf16.msra.mxu1 %v1190_v49  ;;  %v6468_v44 = vunpack.i.h.bf16 %v5008_v13  ;;  %v3646_v0 = vunpack.i.l.bf16 %v5008_v13  ;;  %v3640_v6 = vpop.permute.xlu0 %3639 }
  0xcb   : > { %v3642_v15 = vunpack.i.h.bf16 %v3640_v6  ;;  %v3641_v22 = vunpack.i.l.bf16 %v3640_v6 }
  0xcc   : > { %v5022_v62 = vsel %vm720_vm11, %v3646_v0, %v6468_v44  ;;  %780 = vrot.lane.b32.xlu1 %v4686_v14, %s4496_s19 }
  0xcd   : > { %3869 = vrot.lane.b32.xlu0 %v4647_v12, %s4498_s21  ;;  %v3655_v33 = vpop.permute.xlu1 %3654  ;;  %v724_v45 = vsel %vm720_vm11, %v3642_v15, %v3646_v0  ;;  %v721_v31 = vsel %vm720_vm11, %v3641_v22, %v3626_v1  ;;  %v723_v29 = vsel %vm720_vm11, %v3627_v23, %v3642_v15 }
  0xce   : > { %v3657_v18 = vunpack.i.h.bf16 %v3655_v33  ;;  %v3656_v57 = vunpack.i.l.bf16 %v3655_v33  ;;  %v3650_v48 = vpop.permute.xlu0 %3649  ;;  %v1198_v58 = vpack.c.bf16 %v724_v45, %v693_v53  ;;  %v1195_v43 = vpack.c.bf16 %v721_v31, %v690_v19 }
  0xcf   : > { %v3652_v35 = vunpack.i.h.bf16 %v3650_v48  ;;  %v3651_v10 = vunpack.i.l.bf16 %v3650_v48  ;;  %v1197_v49 = vpack.c.bf16 %v723_v29, %v692_v32 }
  0xd0   : > { %3874 = vrot.lane.b32.xlu1 %v4647_v12, %s4499_s22  ;;  %1341 = vmatprep.subr.bf16.mxu1 %v1198_v58  ;;  %v784_v0 = vsel %vm782_vm14, %v3656_v57, %v3657_v18 }
  0xd1   : > { %v3665_v1 = vpop.permute.xlu1 %3664  ;;  %811 = vrot.lane.b32.xlu0 %v4686_v14, %s4498_s21  ;;  %1301 = vmatpush1.bf16.msra.mxu0 %v1195_v43  ;;  %v753_v23 = vsel %vm751_vm13, %v3651_v10, %v3652_v35 }
  0xd2   : > { %v3666_v6 = vunpack.i.l.bf16 %v3665_v1  ;;  %v3660_v15 = vpop.permute.xlu0 %3659  ;;  %1342 = vmatpush1.bf16.msra.mxu1 %v1197_v49  ;;  %v1203_v22 = vpack.c.bf16 %v784_v0, %v753_v23  ;;  %v3667_v32 = vunpack.i.h.bf16 %v3665_v1 }
  0xd3   : > { %v3662_v53 = vunpack.i.h.bf16 %v3660_v15  ;;  %v5040_v19 = vunpack.i.l.bf16 %v3660_v15 }
  0xd4   : > { %842 = vrot.lane.b32.xlu1 %v4686_v14, %s4499_s22  ;;  %1302 = vmatprep.subr.bf16.mxu0 %v1203_v22  ;;  %v752_v31 = vsel %vm751_vm13, %v3666_v6, %v3651_v10 }
  0xd5   : > { %v3675_v12 = vpop.permute.xlu1 %3674  ;;  %v861_v33 = vsel %vm6466_vm0, %v5040_v19, %v3662_v53  ;;  %v5050_v45 = vsel %vm6466_vm0, %v3482_v20, %v5040_v19  ;;  %v754_v20 = vsel %vm751_vm13, %v3652_v35, %v3667_v32  ;;  %vm844_vm0 = vcmask 261120  }
  0xd6   : > { %v3677_v29 = vunpack.i.h.bf16 %v3675_v12  ;;  %v3676_v48 = vunpack.i.l.bf16 %v3675_v12  ;;  %v5053_v58 = vpop.permute.xlu0 %3669  ;;  %v3883_v43 = vpack.i.bf16 %v4686_v14, %v861_v33  ;;  %v3878_v49 = vpack.i.bf16 %v5050_v45, %v4641_v11 }
  0xd7   : > { %v6467_v0 = vunpack.i.l.bf16 %v5053_v58 }
  0xd8   : > { %3884 = vrot.lane.b32.xlu1 %v3883_v43, %s4500_s24  ;;  %3879 = vrot.lane.b32.xlu0 %v3878_v49, %s4500_s24  ;;  %v783_v16 = vsel %vm782_vm14, %v3676_v48, %v3656_v57  ;;  %v785_v10 = vsel %vm782_vm14, %v3657_v18, %v3677_v29 }
  0xd9   : > { %v3680_v1 = vpop.permute.xlu1 %3679  ;;  %v755_v14 = vsel %vm751_vm13, %v3667_v32, %v6467_v0  ;;  %v1202_v23 = vpack.c.bf16 %v783_v16, %v752_v31  ;;  %v1204_v12 = vpack.c.bf16 %v785_v10, %v754_v20 }
  0xda   : > { %v5067_v6 = vpop.permute.xlu0 %774  ;;  %v3682_v11 = vunpack.i.h.bf16 %v3680_v1  ;;  %v3681_v15 = vunpack.i.l.bf16 %v3680_v1 }
  0xdb   : > { %v786_v22 = vsel %vm782_vm14, %v3677_v29, %v5067_v6  ;;  %1303 = vmatpush1.bf16.msra.mxu0 %v1202_v23 }
  0xdc   : > { %v1205_v57 = vpack.c.bf16 %v786_v22, %v755_v14  ;;  %v815_v43 = vsel %vm813_vm15, %v3681_v15, %v3682_v11 }
  0xdd   : > { %v3690_v35 = vpop.permute.xlu1 %3689 }
  0xde   : > { %v5071_v33 = vunpack.i.l.bf16 %v3690_v35  ;;  %v3685_v18 = vpop.permute.xlu0 %3684  ;;  %1343 = vmatprep.subr.bf16.mxu1 %v1205_v57  ;;  %v3692_v48 = vunpack.i.h.bf16 %v3690_v35 }
  0xdf   : > { %v3687_v32 = vunpack.i.h.bf16 %v3685_v18  ;;  %v3686_v31 = vunpack.i.l.bf16 %v3685_v18  ;;  %1344 = vmatpush1.bf16.msra.mxu1 %v1204_v12 }
  0xe0   : > { %v5078_v29 = vsel %vm447_vm1, %v3507_v51, %v5071_v33  ;;  %v864_v12 = vsel %vm447_vm1, %v5071_v33, %v3692_v48 }
  0xe1   : > { %v3700_v49 = vpop.permute.xlu1 %3699  ;;  %v3888_v16 = vpack.i.bf16 %v5078_v29, %v3662_v53  ;;  %v846_v20 = vsel %vm844_vm0, %v3686_v31, %v3687_v32 }
  0xe2   : > { %v3701_v10 = vunpack.i.l.bf16 %v3700_v49  ;;  %v3695_v1 = vpop.permute.xlu0 %3694  ;;  %v1210_v14 = vpack.c.bf16 %v846_v20, %v815_v43  ;;  %v3702_v51 = vunpack.i.h.bf16 %v3700_v49 }
  0xe3   : > { %v3697_v23 = vunpack.i.h.bf16 %v3695_v1  ;;  %v5082_v22 = vunpack.i.l.bf16 %v3695_v1  ;;  %3889 = vrot.lane.b32.xlu0 %v3888_v16, %s4500_s24 }
  0xe4   : > { %1304 = vmatprep.subr.bf16.mxu0 %v1210_v14  ;;  %v814_v18 = vsel %vm813_vm15, %v3701_v10, %v3681_v15  ;;  %v816_v15 = vsel %vm813_vm15, %v3682_v11, %v3702_v51 }
  0xe5   : > { %v3705_v57 = vpop.permute.xlu1 %3704  ;;  %v5092_v53 = vsel %vm475_vm2, %v3512_v63, %v5082_v22  ;;  %v867_v35 = vsel %vm475_vm2, %v5082_v22, %v3697_v23  ;;  %vm1033_vm2 = vcmask 252928  }
  0xe6   : > { %v3707_v16 = vunpack.i.h.bf16 %v3705_v57  ;;  %v3706_v20 = vunpack.i.l.bf16 %v3705_v57  ;;  %v5099_v1 = vpop.permute.xlu0 %805  ;;  %v3893_v49 = vpack.i.bf16 %v5092_v53, %v864_v12  ;;  %v3898_v14 = vpack.i.bf16 %v3692_v48, %v867_v35 }
  0xe7   : > { %v817_v57 = vsel %vm813_vm15, %v3702_v51, %v5099_v1  ;;  %v887_v48 = vsel %vm882_vm3, %v3541_v38, %v3542_v47 }
  0xe8   : > { %3894 = vrot.lane.b32.xlu1 %v3893_v49, %s4500_s24  ;;  %3899 = vrot.lane.b32.xlu0 %v3898_v14, %s4500_s24  ;;  %v845_v63 = vsel %vm844_vm0, %v3706_v20, %v3686_v31  ;;  %v847_v10 = vsel %vm844_vm0, %v3687_v32, %v3707_v16  ;;  %v3903_v49 = vpack.i.bf16 %v887_v48, %v3697_v23 }
  0xe9   : > { %v5111_v0 = vpop.permute.xlu1 %3709  ;;  %v1209_v12 = vpack.c.bf16 %v845_v63, %v814_v18  ;;  %v1211_v11 = vpack.c.bf16 %v847_v10, %v816_v15 }
  0xea   : > { %v5116_v35 = vpop.permute.xlu0 %836 }
  0xeb   : > { %v848_v31 = vsel %vm844_vm0, %v3707_v16, %v5116_v35  ;;  %1305 = vmatpush1.bf16.msra.mxu0 %v1209_v12 }
  0xec   : > { %3904 = vrot.lane.b32.xlu1 %v3903_v49, %s4500_s24  ;;  %v1212_v32 = vpack.c.bf16 %v848_v31, %v817_v57 }
  0xed   : > { %v3715_v20 = vpop.permute.xlu1 %3714 }
  0xee   : > { %v3717_v51 = vunpack.i.h.bf16 %v3715_v20  ;;  %v3716_v14 = vunpack.i.l.bf16 %v3715_v20  ;;  %v881_v55 = vpop.permute.xlu0 %880  ;;  %1345 = vmatprep.subr.bf16.mxu1 %v1212_v32  ;;  %v3711_v32 = vunpack.i.l.bf16 %v5111_v0 }
  0xef   : > { %1346 = vmatpush1.bf16.msra.mxu1 %v1211_v11  ;;  %v888_v38 = vsel %vm882_vm3, %v3542_v47, %v881_v55  ;;  %vm1268_vm3 = vcmask 1043456  }
  0xf0   : > { %v5122_v36 = vsel %vm534_vm4, %v3716_v14, %v3717_v51  ;;  %v5128_v23 = vsel %vm534_vm4, %v3536_v41, %v3716_v14 }
  0xf1   : > { %v3913_v18 = vpack.i.bf16 %v881_v55, %v5122_v36  ;;  %v3720_v16 = vpop.permute.xlu1 %3719  ;;  %v3908_v63 = vpack.i.bf16 %v5128_v23, %v888_v38 }
  0xf2   : > { %v3725_v15 = vpop.permute.xlu0 %3724 }
  0xf3   : > { %v3727_v10 = vunpack.i.h.bf16 %v3725_v15  ;;  %v3726_v57 = vunpack.i.l.bf16 %v3725_v15  ;;  %3914 = vrot.lane.b32.xlu1 %v3913_v18, %s4500_s24  ;;  %3909 = vrot.lane.b32.xlu0 %v3908_v63, %s4500_s24  ;;  %v3721_v63 = vunpack.i.l.bf16 %v3720_v16 }
  0xf5   : > { %v5137_v47 = vsel %vm565_vm5, %v3566_v59, %v3726_v57  ;;  %v5139_v25 = vpop.permute.xlu1 %3729  ;;  %v5142_v41 = vsel %vm565_vm5, %v3726_v57, %v3727_v10  ;;  %v1034_v4 = vsel %vm1033_vm2, %v3721_v63, %v3711_v32 }
  0xf6   : > { %v3732_v55 = vunpack.i.h.bf16 %v5139_v25  ;;  %v3731_v48 = vunpack.i.l.bf16 %v5139_v25  ;;  %v3918_v12 = vpack.i.bf16 %v5137_v47, %v3717_v51 }
  0xf8   : > { %v5150_v49 = vsel %vm596_vm6, %v3571_v26, %v3731_v48  ;;  %v5155_v56 = vsel %vm596_vm6, %v3731_v48, %v3732_v55  ;;  %3919 = vrot.lane.b32.xlu0 %v3918_v12, %s4500_s24  ;;  %v3712_v26 = vunpack.i.h.bf16 %v5111_v0  ;;  %v3722_v48 = vunpack.i.h.bf16 %v3720_v16 }
  0xf9   : > { %v3923_v59 = vpack.i.bf16 %v5150_v49, %v5142_v41  ;;  %v3928_v31 = vpack.i.bf16 %v3727_v10, %v5155_v56 }
  0xfa   : > { %v1035_v10 = vsel %vm1033_vm2, %v3711_v32, %v3712_v26  ;;  %v1036_v11 = vsel %vm1033_vm2, %v3712_v26, %v3722_v48 }
  0xfb   : > { %3924 = vrot.lane.b32.xlu1 %v3923_v59, %s4500_s24 }
  0xfc   : > { %3929 = vrot.lane.b32.xlu0 %v3928_v31, %s4500_s24 }
 0x102   : > { %v3735_v20 = vpop.permute.xlu0 %3734 }
 0x103   : > { %v5169_v51 = vpop.permute.xlu1 %3744  ;;  %v3737_v14 = vunpack.i.h.bf16 %v3735_v20  ;;  %v3736_v38 = vunpack.i.l.bf16 %v3735_v20 }
 0x104   : > { %v3746_v18 = vunpack.i.l.bf16 %v5169_v51  ;;  %v6473_v15 = vunpack.i.h.bf16 %v5169_v51 }
 0x105   : > { %v1042_v57 = vsel %vm1033_vm2, %v3736_v38, %v3737_v14 }
 0x106   : > { %v5175_v12 = vpop.permute.xlu0 %3739  ;;  %v1217_v59 = vpack.c.bf16 %v1042_v57, %v1035_v10  ;;  %v1043_v20 = vsel %vm1033_vm2, %v3737_v14, %v3746_v18  ;;  %v1044_v16 = vsel %vm1033_vm2, %v3746_v18, %v6473_v15 }
 0x107   : > { %v3742_v0 = vunpack.i.h.bf16 %v5175_v12  ;;  %v6471_v31 = vunpack.i.l.bf16 %v5175_v12  ;;  %v1218_v40 = vpack.c.bf16 %v1043_v20, %v1036_v11 }
 0x108   : > { %1306 = vmatprep.subr.bf16.mxu0 %v1217_v59 }
 0x109   : > { %v1041_v21 = vsel %vm1033_vm2, %v3742_v0, %v3736_v38  ;;  %v1037_v44 = vsel %vm1033_vm2, %v3722_v48, %v6471_v31 }
 0x10a   : > { %v3755_v10 = vpop.permute.xlu1 %3754  ;;  %v1216_v57 = vpack.c.bf16 %v1041_v21, %v1034_v4  ;;  %v1219_v50 = vpack.c.bf16 %v1044_v16, %v1037_v44 }
 0x10b   : > { %v3757_v59 = vunpack.i.h.bf16 %v3755_v10  ;;  %v3756_v9 = vunpack.i.l.bf16 %v3755_v10  ;;  %v3750_v14 = vpop.permute.xlu0 %3749 }
 0x10c   : > { %v3752_v32 = vunpack.i.h.bf16 %v3750_v14  ;;  %v3751_v63 = vunpack.i.l.bf16 %v3750_v14  ;;  %1307 = vmatpush1.bf16.msra.mxu0 %v1216_v57  ;;  %1347 = vmatprep.subr.bf16.mxu1 %v1219_v50 }
 0x10d   : > { %1348 = vmatpush1.bf16.msra.mxu1 %v1218_v40  ;;  %v1056_v38 = vsel %vm1033_vm2, %v3756_v9, %v3757_v59 }
 0x10e   : > { %v5190_v0 = vpop.permute.xlu1 %3764  ;;  %v1049_v18 = vsel %vm1033_vm2, %v3751_v63, %v3752_v32 }
 0x10f   : > { %v3767_v4 = vunpack.i.h.bf16 %v5190_v0  ;;  %v3760_v44 = vpop.permute.xlu0 %3759  ;;  %v1224_v21 = vpack.c.bf16 %v1056_v38, %v1049_v18  ;;  %v6472_v11 = vunpack.i.l.bf16 %v5190_v0 }
 0x110   : > { %v3761_v26 = vunpack.i.l.bf16 %v3760_v44  ;;  %v3762_v20 = vunpack.i.h.bf16 %v3760_v44 }
 0x111   : > { %1308 = vmatprep.subr.bf16.mxu0 %v1224_v21  ;;  %v1055_v48 = vsel %vm1033_vm2, %v3767_v4, %v3756_v9 }
 0x112   : > { %v1048_v50 = vsel %vm1033_vm2, %v3761_v26, %v3751_v63  ;;  %v1051_v38 = vsel %vm1033_vm2, %v3762_v20, %v6472_v11  ;;  %v1050_v18 = vsel %vm1033_vm2, %v3752_v32, %v3762_v20 }
 0x113   : > { %v5197_v40 = vpop.permute.xlu0 %3769  ;;  %v1223_v16 = vpack.c.bf16 %v1055_v48, %v1048_v50 }
 0x114   : > { %v6474_v10 = vunpack.i.h.bf16 %v5197_v40  ;;  %v3771_v57 = vunpack.i.l.bf16 %v5197_v40 }
 0x115   : > { %1309 = vmatpush1.bf16.msra.mxu0 %v1223_v16 }
 0x116   : > { %v3775_v14 = vpop.permute.xlu1 %3774  ;;  %v1058_v9 = vsel %vm1033_vm2, %v3771_v57, %v6474_v10  ;;  %v1057_v63 = vsel %vm1033_vm2, %v3757_v59, %v3771_v57 }
 0x117   : > { %v3777_v4 = vunpack.i.h.bf16 %v3775_v14  ;;  %v3776_v44 = vunpack.i.l.bf16 %v3775_v14  ;;  %v3780_v21 = vpop.permute.xlu0 %3779  ;;  %v1226_v26 = vpack.c.bf16 %v1058_v9, %v1051_v38  ;;  %v1225_v48 = vpack.c.bf16 %v1057_v63, %v1050_v18 }
 0x118   : > { %v3782_v50 = vunpack.i.h.bf16 %v3780_v21  ;;  %v3781_v16 = vunpack.i.l.bf16 %v3780_v21 }
 0x119   : > { %1349 = vmatprep.subr.bf16.mxu1 %v1226_v26  ;;  %v1063_v31 = vsel %vm1033_vm2, %v3776_v44, %v3777_v4 }
 0x11a   : > { %1350 = vmatpush1.bf16.msra.mxu1 %v1225_v48  ;;  %v3785_v11 = vpop.permute.xlu1 %3784  ;;  %v1070_v15 = vsel %vm1033_vm2, %v3781_v16, %v3782_v50 }
 0x11b   : > { %v3787_v43 = vunpack.i.h.bf16 %v3785_v11  ;;  %v3786_v10 = vunpack.i.l.bf16 %v3785_v11  ;;  %v3790_v60 = vpop.permute.xlu0 %3789  ;;  %v1231_v32 = vpack.c.bf16 %v1070_v15, %v1063_v31 }
 0x11c   : > { %v3791_v57 = vunpack.i.l.bf16 %v3790_v60  ;;  %v3792_v38 = vunpack.i.h.bf16 %v3790_v60 }
 0x11d   : > { %v5212_v59 = vsel %vm627_vm7, %v3786_v10, %v3787_v43  ;;  %v5217_v20 = vsel %vm627_vm7, %v3586_v37, %v3786_v10  ;;  %1310 = vmatprep.subr.bf16.mxu0 %v1231_v32 }
 0x11e   : > { %v3938_v14 = vpack.i.bf16 %v3787_v43, %v5212_v59  ;;  %v5220_v9 = vpop.permute.xlu1 %3794  ;;  %v3933_v11 = vpack.i.bf16 %v5217_v20, %v3732_v55  ;;  %v1062_v43 = vsel %vm1033_vm2, %v3791_v57, %v3776_v44  ;;  %v1252_v55 = vld [vmem:[%s6453_s2] sm:$0xff]  ;;  %v1064_v26 = vsel %vm1033_vm2, %v3777_v4, %v3792_v38 }
 0x11f   : > { %v3797_v15 = vunpack.i.h.bf16 %v5220_v9  ;;  %v6476_v31 = vunpack.i.l.bf16 %v5220_v9  ;;  %v5227_v18 = vpop.permute.xlu0 %3799 }
 0x120   : > { %v6475_v28 = vunpack.i.h.bf16 %v5227_v18  ;;  %v3801_v37 = vunpack.i.l.bf16 %v5227_v18  ;;  %3934 = vrot.lane.b32.xlu1 %v3933_v11, %s4500_s24  ;;  %3939 = vrot.lane.b32.xlu0 %v3938_v14, %s4500_s24  ;;  %s4502_s24 = smov 122  }
 0x121   : > { %v1069_v60 = vsel %vm1033_vm2, %v3797_v15, %v3781_v16  ;;  %v1065_v25 = vsel %vm1033_vm2, %v3792_v38, %v6476_v31 }
 0x122   : > { %v3805_v10 = vpop.permute.xlu1 %3804  ;;  %v1230_v63 = vpack.c.bf16 %v1069_v60, %v1062_v43  ;;  %v1072_v21 = vsel %vm1033_vm2, %v3801_v37, %v6475_v28  ;;  %v1071_v44 = vsel %vm1033_vm2, %v3782_v50, %v3801_v37 }
 0x123   : > { %v3807_v48 = vunpack.i.h.bf16 %v3805_v10  ;;  %v3806_v16 = vunpack.i.l.bf16 %v3805_v10  ;;  %v3810_v32 = vpop.permute.xlu0 %3809  ;;  %v1233_v57 = vpack.c.bf16 %v1072_v21, %v1065_v25  ;;  %v1232_v14 = vpack.c.bf16 %v1071_v44, %v1064_v26 }
 0x124   : > { %v3812_v11 = vunpack.i.h.bf16 %v3810_v32  ;;  %v3811_v15 = vunpack.i.l.bf16 %v3810_v32  ;;  %1311 = vmatpush1.bf16.msra.mxu0 %v1230_v63  ;;  %1255 = vperm.xlu1 %3943, %v1252_v55  }
 0x125   : > { %1351 = vmatprep.subr.bf16.mxu1 %v1233_v57  ;;  %v1077_v43 = vsel %vm1033_vm2, %v3806_v16, %v3807_v48 }
 0x126   : > { %1352 = vmatpush1.bf16.msra.mxu1 %v1232_v14  ;;  %v3815_v60 = vpop.permute.xlu1 %3814  ;;  %v1084_v28 = vsel %vm1033_vm2, %v3811_v15, %v3812_v11 }
 0x127   : > { %v3817_v31 = vunpack.i.h.bf16 %v3815_v60  ;;  %v3816_v4 = vunpack.i.l.bf16 %v3815_v60  ;;  %v5248_v38 = vpop.permute.xlu0 %3819  ;;  %v1238_v50 = vpack.c.bf16 %v1084_v28, %v1077_v43 }
 0x128   : > { %v3822_v37 = vunpack.i.h.bf16 %v5248_v38  ;;  %v3821_v25 = vunpack.i.l.bf16 %v5248_v38 }
 0x129   : > { %1312 = vmatprep.subr.bf16.mxu0 %v1238_v50  ;;  %v1076_v10 = vsel %vm1033_vm2, %v3816_v4, %v3806_v16  ;;  %v1078_v21 = vsel %vm1033_vm2, %v3807_v48, %v3817_v31 }
 0x12a   : > { %v5253_v55 = vpop.permute.xlu1 %3824  ;;  %v1083_v63 = vsel %vm1033_vm2, %v3822_v37, %v3811_v15  ;;  %v1079_v28 = vsel %vm1033_vm2, %v3817_v31, %v3821_v25 }
 0x12b   : > { %v3827_v26 = vunpack.i.h.bf16 %v5253_v55  ;;  %v3826_v44 = vunpack.i.l.bf16 %v5253_v55  ;;  %v3830_v32 = vpop.permute.xlu0 %3829  ;;  %v1237_v57 = vpack.c.bf16 %v1083_v63, %v1076_v10 }
 0x12c   : > { %v3832_v14 = vunpack.i.h.bf16 %v3830_v32  ;;  %v3831_v43 = vunpack.i.l.bf16 %v3830_v32 }
 0x12d   : > { %1313 = vmatpush1.bf16.msra.mxu0 %v1237_v57  ;;  %v1086_v16 = vsel %vm1033_vm2, %v3826_v44, %v3827_v26  ;;  %v1085_v15 = vsel %vm1033_vm2, %v3812_v11, %v3826_v44 }
 0x12e   : > { %v3835_v48 = vpop.permute.xlu1 %3834  ;;  %v1240_v60 = vpack.c.bf16 %v1086_v16, %v1079_v28  ;;  %v1239_v4 = vpack.c.bf16 %v1085_v15, %v1078_v21  ;;  %v1090_v50 = vsel %vm1033_vm2, %v3831_v43, %v3832_v14 }
 0x12f   : > { %v3837_v37 = vunpack.i.h.bf16 %v3835_v48  ;;  %v3836_v10 = vunpack.i.l.bf16 %v3835_v48  ;;  %v5267_v63 = vpop.permute.xlu0 %3839  ;;  %v1244_v31 = vpack.c.bf16 %v1090_v50, %v1090_v50  ;;  %v5282_v50 = vcombine.low %v4914_v8, %v4914_v8 }
 0x130   : > { %v3841_v32 = vunpack.i.l.bf16 %v5267_v63  ;;  %1353 = vmatprep.subr.bf16.mxu1 %v1240_v60  ;;  %v6487_v8 = vunpack.i.h.bf16 %v4937_v46 }
 0x131   : > { %1354 = vmatpush1.bf16.msra.mxu1 %v1239_v4  ;;  %v1091_v57 = vsel %vm1033_vm2, %v3832_v14, %v3836_v10  ;;  %v1092_v11 = vsel %vm1033_vm2, %v3836_v10, %v3837_v37  ;;  %v1270_v43 = vsel %vm1268_vm3, %v1244_v31, 0  ;;  %v4473_v14 = vld [vmem:[%s4586_s23 + $0x28] sm:$0xff]  ;;  %v4474_v10 = vld [vmem:[%s4586_s23 + $0x20] sm:$0xff] }
 0x132   : > { %v502_v44 = vpop.permute.xlu1 %501  ;;  %v1245_v28 = vpack.c.bf16 %v1091_v57, %v1091_v57  ;;  %v1093_v21 = vsel %vm1033_vm2, %v3837_v37, %v3841_v32  ;;  %v1246_v16 = vpack.c.bf16 %v1092_v11, %v1092_v11  ;;  %v1165_v4 = vpack.c.bf16 %v5050_v45, %v4473_v14  ;;  %v4475_v11 = vld [vmem:[%s4586_s23 + $0x30] sm:$0xff]  ;;  %s6507_s23 = smov 127  }
 0x133   : > { %v3845_v15 = vpop.permute.xlu0 %3844  ;;  %v1247_v48 = vpack.c.bf16 %v1093_v21, %v1093_v21  ;;  %v1164_v31 = vpack.c.bf16 %v4738_v30, %v4474_v10  ;;  %v1166_v45 = vpack.c.bf16 %v5040_v19, %v4475_v11  ;;  %v6488_v30 = vpack.c.bf16 %v5092_v53, %v5078_v29 }
 0x134   : > { %3231 = vmatprep.subr.msk.bf16.mxu0 %vm1268_vm3, %v1245_v28  ;;  %v1276_v60 = vsel %vm1268_vm3, %v1246_v16, 0  ;;  %v509_v28 = vsel %vm503_vm8, %v6487_v8, %v502_v44  ;;  %v3846_v46 = vunpack.i.l.bf16 %v3845_v15  ;;  %v6489_v16 = vpack.c.bf16 %v4777_v7, %v4768_v3 }
 0x135   : > { %3233 = vmatprep.subr.msk.bf16.mxu1 %vm1268_vm3, %v1247_v48  ;;  %1315 = vmatpush1.bf16.msra.mxu0 %v1270_v43  ;;  %v1179_v19 = vpack.c.bf16 %v5128_v23, %v509_v28  ;;  %v6490_v29 = vpack.c.bf16 %v5082_v22, %v5071_v33  ;;  %v1180_v48 = vpack.c.bf16 %v5122_v36, %v502_v44  ;;  %v6492_v3 = vunpack.i.h.bf16 %v4962_v17 }
 0x136   : > { %1356 = vmatpush1.bf16.msra.mxu1 %v1276_v60  ;;  %v3850_v37 = vpop.permute.xlu1 %3849  ;;  %1372 = vmatprep.subr.bf16.mxu0 %v1165_v4  ;;  %v3847_v60 = vunpack.i.h.bf16 %v3845_v15  ;;  %v6491_v4 = vpack.c.bf16 %v4820_v54, %v4959_v39  ;;  %v6493_v10 = vpack.c.bf16 %v5150_v49, %v5137_v47  ;;  %v6494_v39 = vunpack.i.h.bf16 %v4995_v61 }
 0x137   : > { %v3855_v57 = vpop.permute.xlu0 %3854  ;;  %1413 = vmatprep.subr.bf16.mxu1 %v6477_v52  ;;  %v3851_v23 = vunpack.i.l.bf16 %v3850_v37  ;;  %v664_v7 = vsel %vm658_vm9, %v6492_v3, %v3846_v46  ;;  %v3852_v33 = vunpack.i.h.bf16 %v3850_v37  ;;  %v6496_v47 = vunpack.i.h.bf16 %v5008_v13 }
 0x138   : > { %1323 = vmatmul.mubr.bf16.vlgmr.msra.gmra.mrb[0].mxu0 %v5282_v50  ;;  %v3857_v36 = vunpack.i.h.bf16 %v3855_v57  ;;  %v665_v44 = vsel %vm658_vm9, %v3846_v46, %v3847_v60  ;;  %v1193_v54 = vpack.c.bf16 %v664_v7, %v5217_v20  ;;  %v6497_v61 = vpack.c.bf16 %v5155_v56, %v5142_v41 }
 0x139   : > { %1364 = vmatmul.mubr.bf16.vlgmr.msra.gmra.mrb[0].mxu1 %v5282_v50  ;;  %1373 = vmatpush1.bf16.msra.mxu0 %v1164_v31  ;;  %v695_v17 = vsel %vm689_vm12, %v6494_v39, %v3851_v23  ;;  %v696_v8 = vsel %vm689_vm12, %v3851_v23, %v3852_v33  ;;  %v1194_v13 = vpack.c.bf16 %v665_v44, %v5212_v59  ;;  %v6500_v33 = vunpack.i.l.bf16 %v5053_v58 }
 0x13a   : > { %1414 = vmatpush1.bf16.msra.mxu1 %v1166_v45  ;;  %v3860_v21 = vpop.permute.xlu1 %3859  ;;  %1374 = vmatprep.subr.bf16.mxu0 %v6488_v30  ;;  %v6495_v45 = vpack.c.bf16 %v4879_v34, %v4862_v24  ;;  %v6498_v41 = vpack.c.bf16 %v4976_v42, %v4905_v2  ;;  %v6499_v7 = vpack.c.bf16 %v5022_v62, %v5013_v5 }
 0x13b   : > { %v3865_v43 = vpop.permute.xlu0 %3864  ;;  %1415 = vmatprep.subr.bf16.mxu1 %v6477_v52  ;;  %3236 = vmatprep.mubr.msk.bf16.mxu0 %vm1264_vm10, %v4920_v27  ;;  %v3861_v31 = vunpack.i.l.bf16 %v3860_v21  ;;  %v3862_v30 = vunpack.i.h.bf16 %v3860_v21 }
 0x13c   : > { %3237 = vmatprep.mubr.msk.bf16.mxu1 %vm1264_vm10, %v4920_v27  ;;  %v3856_v27 = vunpack.i.l.bf16 %v3855_v57  ;;  %v3867_v37 = vunpack.i.h.bf16 %v3865_v43  ;;  %v3866_v11 = vunpack.i.l.bf16 %v3865_v43  ;;  %v3672_v57 = vunpack.i.h.bf16 %v5053_v58 }
 0x13d   : > { %1375 = vmatpush1.bf16.msra.mxu0 %v6489_v16  ;;  %v758_v60 = vsel %vm751_vm13, %v3861_v31, %v3862_v30 }
 0x13e   : > { %1416 = vmatpush1.bf16.msra.mxu1 %v6490_v29  ;;  %v781_v53 = vpop.permute.xlu1 %780  ;;  %1376 = vmatprep.subr.bf16.mxu0 %v1179_v19  ;;  %v726_v49 = vsel %vm720_vm11, %v6496_v47, %v3856_v27  ;;  %v727_v28 = vsel %vm720_vm11, %v3856_v27, %v3857_v36  ;;  %v757_v56 = vsel %vm751_vm13, %v3672_v57, %v3861_v31  ;;  %v3842_v36 = vunpack.i.h.bf16 %v5267_v63 }
 0x13f   : > { %1417 = vmatprep.subr.bf16.mxu1 %v6477_v52  ;;  %v5312_v14 = vpop.permute.xlu0 %3869  ;;  %v1200_v43 = vpack.c.bf16 %v726_v49, %v695_v17  ;;  %v788_v16 = vsel %vm782_vm14, %v3866_v11, %v3867_v37  ;;  %v789_v59 = vsel %vm782_vm14, %v3867_v37, %v781_v53  ;;  %v787_v42 = vsel %vm782_vm14, %v5067_v6, %v3866_v11 }
 0x140   : > { %v3872_v24 = vunpack.i.h.bf16 %v5312_v14  ;;  %v3871_v19 = vunpack.i.l.bf16 %v5312_v14  ;;  %v1207_v14 = vpack.c.bf16 %v788_v16, %v757_v56  ;;  %v756_v53 = vsel %vm751_vm13, %v6500_v33, %v3672_v57 }
 0x141   : > { %1377 = vmatpush1.bf16.msra.mxu0 %v6491_v4  ;;  %v6501_v37 = vunpack.i.h.bf16 %v5169_v51  ;;  %v6502_v47 = vunpack.i.l.bf16 %v5175_v12  ;;  %v6506_v33 = vunpack.i.h.bf16 %v5227_v18  ;;  %vm1782_vm14 = vcmask 539648  }
 0x142   : > { %1418 = vmatpush1.bf16.msra.mxu1 %v1180_v48  ;;  %v3875_v22 = vpop.permute.xlu1 %3874  ;;  %1378 = vmatprep.subr.bf16.mxu0 %v6493_v10  ;;  %v1201_v48 = vpack.c.bf16 %v727_v28, %v696_v8  ;;  %v819_v23 = vsel %vm813_vm15, %v3871_v19, %v3872_v24  ;;  %v818_v39 = vsel %vm813_vm15, %v5099_v1, %v3871_v19  ;;  %v6504_v19 = vunpack.i.h.bf16 %v5197_v40 }
 0x143   : > { %1419 = vmatprep.subr.bf16.mxu1 %v6477_v52  ;;  %v812_v15 = vpop.permute.xlu0 %811  ;;  %v3877_v34 = vunpack.i.h.bf16 %v3875_v22  ;;  %v3876_v46 = vunpack.i.l.bf16 %v3875_v22  ;;  %v1208_v22 = vpack.c.bf16 %v789_v59, %v758_v60  ;;  %v1038_v49 = vsel %vm1033_vm2, %v6502_v47, %v3842_v36 }
 0x144   : > { %v820_v44 = vsel %vm813_vm15, %v3872_v24, %v812_v15 }
 0x145   : > { %1379 = vmatpush1.bf16.msra.mxu0 %v6495_v45  ;;  %v850_v2 = vsel %vm844_vm0, %v3876_v46, %v3877_v34  ;;  %v849_v5 = vsel %vm844_vm0, %v5116_v35, %v3876_v46 }
 0x146   : > { %1420 = vmatpush1.bf16.msra.mxu1 %v6497_v61  ;;  %v843_v20 = vpop.permute.xlu1 %842  ;;  %1380 = vmatprep.subr.bf16.mxu0 %v1193_v54  ;;  %v1214_v10 = vpack.c.bf16 %v850_v2, %v819_v23  ;;  %v1206_v54 = vpack.c.bf16 %v787_v42, %v756_v53  ;;  %v1213_v31 = vpack.c.bf16 %v849_v5, %v818_v39 }
 0x147   : > { %1421 = vmatprep.subr.bf16.mxu1 %v6477_v52  ;;  %v851_v6 = vsel %vm844_vm0, %v3877_v34, %v843_v20  ;;  %vm6508_vm0 = vcmask 1039360  }
 0x148   : > { %v1215_v17 = vpack.c.bf16 %v851_v6, %v820_v44  ;;  %vm6509_vm5 = vmmov %vm6508_vm0 }
 0x149   : > { %1381 = vmatpush1.bf16.msra.mxu0 %v6498_v41  ;;  %vm6510_vm6 = vmmov %vm6508_vm0 }
 0x14a   : > { %1422 = vmatpush1.bf16.msra.mxu1 %v1194_v13  ;;  %v3885_v21 = vpop.permute.xlu1 %3884  ;;  %v3880_v29 = vpop.permute.xlu0 %3879  ;;  %1382 = vmatprep.subr.bf16.mxu0 %v1200_v43  ;;  %v6503_v13 = vunpack.i.l.bf16 %v5190_v0  ;;  %vm6511_vm7 = vmmov %vm6508_vm0 }
 0x14b   : > { %1423 = vmatprep.subr.bf16.mxu1 %v6477_v52  ;;  %v3886_v27 = vunpack.i.l.bf16 %v3885_v21  ;;  %v3882_v4 = vunpack.i.h.bf16 %v3880_v29  ;;  %v3881_v3 = vunpack.i.l.bf16 %v3880_v29  ;;  %v3887_v15 = vunpack.i.h.bf16 %v3885_v21  ;;  %vm6512_vm9 = vmmov %vm6508_vm0 }
 0x14c   : > { %vm6513_vm11 = vmmov %vm6508_vm0 }
 0x14d   : > { %1383 = vmatpush1.bf16.msra.mxu0 %v6499_v7  ;;  %v1039_v62 = vsel %vm1033_vm2, %v3842_v36, %v3881_v3  ;;  %v1046_v58 = vsel %vm1033_vm2, %v3882_v4, %v3886_v27  ;;  %v1045_v11 = vsel %vm1033_vm2, %v6501_v37, %v3882_v4  ;;  %v1040_v8 = vsel %vm1033_vm2, %v3881_v3, %v3887_v15 }
 0x14e   : > { %1384 = vmatprep.subr.bf16.mxu0 %v1207_v14  ;;  %1424 = vmatpush1.bf16.msra.mxu1 %v1201_v48  ;;  %v1221_v35 = vpack.c.bf16 %v1046_v58, %v1039_v62  ;;  %v1220_v1 = vpack.c.bf16 %v1045_v11, %v1038_v49  ;;  %v6505_v3 = vunpack.i.l.bf16 %v5220_v9 }
 0x14f   : > { %1425 = vmatprep.subr.bf16.mxu1 %v6477_v52 }
 0x151   : > { %1385 = vmatpush1.bf16.msra.mxu0 %v1206_v54 }
 0x152   : > { %1386 = vmatprep.subr.bf16.mxu0 %v1214_v10  ;;  %1426 = vmatpush1.bf16.msra.mxu1 %v1208_v22 }
 0x153   : > { %1427 = vmatprep.subr.bf16.mxu1 %v6477_v52 }
 0x155   : > { %1387 = vmatpush1.bf16.msra.mxu0 %v1213_v31  ;;  %v3890_v45 = vpop.permute.xlu0 %3889 }
 0x156   : > { %v3891_v57 = vunpack.i.l.bf16 %v3890_v45  ;;  %1388 = vmatprep.subr.bf16.mxu0 %v1221_v35  ;;  %1428 = vmatpush1.bf16.msra.mxu1 %v1215_v17  ;;  %v3892_v61 = vunpack.i.h.bf16 %v3890_v45 }
 0x157   : > { %1429 = vmatprep.subr.bf16.mxu1 %v6477_v52 }
 0x158   : > { %v1047_v51 = vsel %vm1033_vm2, %v3886_v27, %v3891_v57  ;;  %v1052_v43 = vsel %vm1033_vm2, %v6503_v13, %v3892_v61 }
 0x159   : > { %1389 = vmatpush1.bf16.msra.mxu0 %v1220_v1  ;;  %v1222_v20 = vpack.c.bf16 %v1047_v51, %v1040_v8 }
 0x15a   : > { %v3895_v28 = vpop.permute.xlu1 %3894  ;;  %v3900_v30 = vpop.permute.xlu0 %3899 }
 0x15b   : > { %v3897_v24 = vunpack.i.h.bf16 %v3895_v28  ;;  %v3896_v34 = vunpack.i.l.bf16 %v3895_v28  ;;  %v3901_v12 = vunpack.i.l.bf16 %v3900_v30  ;;  %1430 = vmatpush1.bf16.msra.mxu1 %v1222_v20  ;;  %v3902_v41 = vunpack.i.h.bf16 %v3900_v30 }
 0x15c   : > { %1431 = vmatprep.subr.bf16.mxu1 %v6477_v52 }
 0x15d   : > { %v1059_v46 = vsel %vm1033_vm2, %v6504_v19, %v3897_v24  ;;  %v1053_v56 = vsel %vm1033_vm2, %v3892_v61, %v3896_v34  ;;  %v1060_v16 = vsel %vm1033_vm2, %v3897_v24, %v3901_v12  ;;  %v1054_v0 = vsel %vm1033_vm2, %v3896_v34, %v3902_v41 }
 0x15e   : > { %v3905_v21 = vpop.permute.xlu1 %3904  ;;  %v1228_v29 = vpack.c.bf16 %v1060_v16, %v1053_v56  ;;  %v1227_v48 = vpack.c.bf16 %v1059_v46, %v1052_v43 }
 0x15f   : > { %v3906_v60 = vunpack.i.l.bf16 %v3905_v21  ;;  %v3907_v2 = vunpack.i.h.bf16 %v3905_v21 }
 0x160   : > { %1390 = vmatprep.subr.bf16.mxu0 %v1228_v29 }
 0x161   : > { %v1061_v59 = vsel %vm1033_vm2, %v3901_v12, %v3906_v60  ;;  %1391 = vmatpush1.bf16.msra.mxu0 %v1227_v48  ;;  %v1066_v7 = vsel %vm1033_vm2, %v6505_v3, %v3907_v2 }
 0x162   : > { %v1229_v23 = vpack.c.bf16 %v1061_v59, %v1054_v0 }
 0x164   : > { %1432 = vmatpush1.bf16.msra.mxu1 %v1229_v23 }
 0x165   : > { %v3915_v40 = vpop.permute.xlu1 %3914  ;;  %v3910_v42 = vpop.permute.xlu0 %3909  ;;  %1433 = vmatprep.subr.bf16.mxu1 %v6477_v52 }
 0x166   : > { %v3916_v14 = vunpack.i.l.bf16 %v3915_v40  ;;  %v3912_v27 = vunpack.i.h.bf16 %v3910_v42  ;;  %v3911_v4 = vunpack.i.l.bf16 %v3910_v42  ;;  %v3917_v36 = vunpack.i.h.bf16 %v3915_v40 }
 0x168   : > { %v1073_v53 = vsel %vm1033_vm2, %v6506_v33, %v3912_v27  ;;  %v1067_v22 = vsel %vm1033_vm2, %v3907_v2, %v3911_v4  ;;  %v1074_v10 = vsel %vm1033_vm2, %v3912_v27, %v3916_v14  ;;  %v1068_v9 = vsel %vm1033_vm2, %v3911_v4, %v3917_v36 }
 0x169   : > { %v1235_v6 = vpack.c.bf16 %v1074_v10, %v1067_v22  ;;  %v1234_v44 = vpack.c.bf16 %v1073_v53, %v1066_v7 }
 0x16a   : > { %v3920_v54 = vpop.permute.xlu0 %3919 }
 0x16b   : > { %v3921_v5 = vunpack.i.l.bf16 %v3920_v54  ;;  %1392 = vmatprep.subr.bf16.mxu0 %v1235_v6  ;;  %v3922_v62 = vunpack.i.h.bf16 %v3920_v54 }
 0x16c   : > { %1393 = vmatpush1.bf16.msra.mxu0 %v1234_v44 }
 0x16d   : > { %v1075_v58 = vsel %vm1033_vm2, %v3916_v14, %v3921_v5  ;;  %v3925_v39 = vpop.permute.xlu1 %3924  ;;  %v1080_v11 = vsel %vm1033_vm2, %v3821_v25, %v3922_v62 }
 0x16e   : > { %v3927_v18 = vunpack.i.h.bf16 %v3925_v39  ;;  %v3926_v17 = vunpack.i.l.bf16 %v3925_v39  ;;  %v3930_v31 = vpop.permute.xlu0 %3929  ;;  %v1236_v15 = vpack.c.bf16 %v1075_v58, %v1068_v9 }
 0x16f   : > { %v3931_v37 = vunpack.i.l.bf16 %v3930_v31  ;;  %v3932_v1 = vunpack.i.h.bf16 %v3930_v31 }
 0x170   : > { %v1087_v35 = vsel %vm1033_vm2, %v3827_v26, %v3927_v18  ;;  %1434 = vmatpush1.bf16.msra.mxu1 %v1236_v15  ;;  %v1081_v45 = vsel %vm1033_vm2, %v3922_v62, %v3926_v17 }
 0x171   : > { %v1088_v47 = vsel %vm1033_vm2, %v3927_v18, %v3931_v37  ;;  %v1241_v49 = vpack.c.bf16 %v1087_v35, %v1080_v11  ;;  %1435 = vmatprep.subr.bf16.mxu1 %v6477_v52  ;;  %v1082_v26 = vsel %vm1033_vm2, %v3926_v17, %v3932_v1 }
 0x172   : > { %v1242_v57 = vpack.c.bf16 %v1088_v47, %v1081_v45 }
 0x174   : > { %1394 = vmatprep.subr.bf16.mxu0 %v1242_v57 }
 0x175   : > { %1395 = vmatpush1.bf16.msra.mxu0 %v1241_v49 }
 0x192   : > { %v3935_v8 = vpop.permute.xlu1 %3934  ;;  %v3940_v38 = vpop.permute.xlu0 %3939 }
 0x193   : > { %v3937_v61 = vunpack.i.h.bf16 %v3935_v8  ;;  %v3936_v25 = vunpack.i.l.bf16 %v3935_v8  ;;  %v3942_v51 = vunpack.i.h.bf16 %v3940_v38  ;;  %v3941_v55 = vunpack.i.l.bf16 %v3940_v38 }
 0x195   : > { %v1089_v20 = vsel %vm1033_vm2, %v3931_v37, %v3936_v25  ;;  %v1095_v28 = vsel %vm1033_vm2, %v3937_v61, %v3941_v55  ;;  %v1094_v30 = vsel %vm1033_vm2, %v3841_v32, %v3937_v61  ;;  %v1096_v24 = vsel %vm1033_vm2, %v3941_v55, %v3942_v51 }
 0x196   : > { %v1249_v34 = vpack.c.bf16 %v1095_v28, %v1095_v28  ;;  %v1243_v12 = vpack.c.bf16 %v1089_v20, %v1082_v26  ;;  %v1248_v13 = vpack.c.bf16 %v1094_v30, %v1094_v30  ;;  %v1250_v43 = vpack.c.bf16 %v1096_v24, %v1096_v24 }
 0x197   : > { %vm1704_vm2 = vcmask 474112  }
 0x198   : > { %3235 = vmatprep.subr.msk.bf16.mxu0 %vm1268_vm3, %v1249_v34  ;;  %1436 = vmatpush1.bf16.msra.mxu1 %v1243_v12  ;;  %v1282_v19 = vsel %vm1268_vm3, %v1248_v13, 0  ;;  %v1288_v46 = vsel %vm1268_vm3, %v1250_v43, 0 }
 0x199   : > { %1397 = vmatpush1.bf16.msra.mxu0 %v1282_v19  ;;  %1437 = vmatprep.subr.bf16.mxu1 %v6477_v52 }
 0x19c   : > { %1405 = vmatmul.mubr.bf16.vlgmr.msra.gmra.mrb[4].mxu0 %v5282_v50  ;;  %1438 = vmatpush1.bf16.msra.mxu1 %v1288_v46 }
 0x19f   : > { %1446 = vmatmul.mubr.bf16.vlgmr.msra.gmra.mrb[4].mxu1 %v5282_v50 }
 0x1a3   : > { %v1256_v63 = vpop.permute.xlu1 %1255 }
 0x20b   : > { %v1324_v32 = vpop.f32.mrb[0].mxu0 }
 0x20c   : > { %v1365_v41 = vpop.f32.mrb[0].mxu1  ;;  %v1326_v56 = vpop.f32.mrb[1].mxu0  ;;  %v1325_v44 = vadd.f32 %v1324_v32, %v1256_v63 }
 0x20d   : > { %v1366_v16 = vadd.f32 %v1365_v41, %v1256_v63  ;;  %v1367_v21 = vpop.f32.mrb[1].mxu1  ;;  %v1328_v29 = vpop.f32.mrb[2].mxu0  ;;  %v1327_v50 = vadd.f32 %v1326_v56, %v1256_v63 }
 0x20e   : > { %v1368_v48 = vadd.f32 %v1367_v21, %v1256_v63  ;;  %v1329_v60 = vpop.f32.mrb[3].mxu0  ;;  %v1369_v0 = vpop.f32.mrb[2].mxu1  ;;  %v1453_v39 = vmax.f32 %v1325_v44, 0.0 }
 0x20f   : > { %v1455_v59 = vmax.f32 %v1366_v16, 0.0  ;;  %v1370_v23 = vpop.f32.mrb[3].mxu1  ;;  %v1454_v54 = vmax.f32 %v1327_v50, 0.0 }
 0x210   : > { %v1456_v2 = vmax.f32 %v1368_v48, 0.0 }
 0x212   : > { %v3944_v40 = vpack.i.bf16 %v1456_v2, %v1455_v59 }
 0x214   : > { %3945 = vrot.lane.b32.xlu0 %v3944_v40, %s6507_s23 }
 0x26f   : > { %v1406_v42 = vpop.f32.mrb[4].mxu0 }
 0x270   : > { %v1407_v14 = vadd.f32 %v1406_v42, %v1256_v63  ;;  %v1408_v27 = vpop.f32.mrb[5].mxu0 }
 0x271   : > { %v1409_v4 = vadd.f32 %v1408_v27, %v1256_v63  ;;  %v1410_v3 = vpop.f32.mrb[6].mxu0 }
 0x272   : > { %v1457_v7 = vmax.f32 %v1407_v14, 0.0  ;;  %v1411_v33 = vpop.f32.mrb[7].mxu0  ;;  %v1447_v53 = vpop.f32.mrb[4].mxu1 }
 0x273   : > { %v1458_v22 = vmax.f32 %v1409_v4, 0.0  ;;  %v1448_v10 = vadd.f32 %v1447_v53, %v1256_v63  ;;  %v1449_v36 = vpop.f32.mrb[5].mxu1 }
 0x274   : > { %v1450_v6 = vpop.f32.mrb[6].mxu1 }
 0x275   : > { %v3949_v5 = vpack.i.bf16 %v1458_v22, %v1457_v7  ;;  %v1459_v62 = vmax.f32 %v1448_v10, 0.0  ;;  %v1451_v9 = vpop.f32.mrb[7].mxu1 }
 0x277   : > { %v3954_v58 = vpack.i.bf16 %v1454_v54, %v1459_v62  ;;  %3950 = vrot.lane.b32.xlu1 %v3949_v5, %s6507_s23 }
 0x279   : > { %3955 = vrot.lane.b32.xlu0 %v3954_v58, %s6507_s23 }
 0x27b   : > { %1467 = vrot.lane.b32.xlu1 %v1453_v39, %s6507_s23  ;;  %s4509_s23 = smov 112  }
 0x286   : > { %v3946_v18 = vpop.permute.xlu0 %3945 }
 0x287   : > { %v3948_v17 = vunpack.i.h.bf16 %v3946_v18  ;;  %v3947_v31 = vunpack.i.l.bf16 %v3946_v18 }
 0x289   : > { %v1483_v37 = vsel %vm6508_vm0, %v3947_v31, %v3948_v17  ;;  %vm1727_vm0 = vcmask 457728  }
 0x28a   : > { %v1496_v8 = vmax.f32 %v1455_v59, %v1483_v37 }
 0x2e9   : > { %v3951_v15 = vpop.permute.xlu1 %3950 }
 0x2ea   : > { %v3953_v11 = vunpack.i.h.bf16 %v3951_v15  ;;  %v3952_v35 = vunpack.i.l.bf16 %v3951_v15 }
 0x2eb   : > { %v3956_v45 = vpop.permute.xlu0 %3955 }
 0x2ec   : > { %v1484_v47 = vsel %vm6509_vm5, %v3948_v17, %v3952_v35  ;;  %v1485_v49 = vsel %vm6510_vm6, %v3952_v35, %v3953_v11  ;;  %v3958_v57 = vunpack.i.h.bf16 %v3956_v45  ;;  %v3957_v1 = vunpack.i.l.bf16 %v3956_v45 }
 0x2ed   : > { %v1497_v38 = vmax.f32 %v1456_v2, %v1484_v47  ;;  %v1468_v61 = vpop.permute.xlu1 %1467  ;;  %v1498_v25 = vmax.f32 %v1457_v7, %v1485_v49  ;;  %vm1615_vm5 = vcmask 982016  }
 0x2ee   : > { %v1486_v51 = vsel %vm6511_vm7, %v3953_v11, %v3957_v1  ;;  %v1481_v55 = vsel %vm6512_vm9, %v1468_v61, %v3958_v57  ;;  %v1482_v26 = vsel %vm6513_vm11, %v3958_v57, %v3947_v31  ;;  %v1500_v13 = vmax.f32 %v1459_v62, %v3957_v1 }
 0x2ef   : > { %v1499_v20 = vmax.f32 %v1458_v22, %v1486_v51  ;;  %v1494_v28 = vmax.f32 %v1453_v39, %v1481_v55  ;;  %v1495_v30 = vmax.f32 %v1454_v54, %v1482_v26  ;;  %v3959_v24 = vpack.i.bf16 %v1497_v38, %v1496_v8 }
 0x2f1   : > { %3960 = vrot.lane.b32.xlu0 %v3959_v24, %s4487_s27  ;;  %v3964_v34 = vpack.i.bf16 %v1499_v20, %v1498_v25  ;;  %v3969_v12 = vpack.i.bf16 %v1494_v28, %v1495_v30 }
 0x2f3   : > { %3965 = vrot.lane.b32.xlu1 %v3964_v34, %s4487_s27 }
 0x2f5   : > { %3970 = vrot.lane.b32.xlu0 %v3969_v12, %s4487_s27 }
 0x2f7   : > { %1520 = vrot.lane.b32.xlu1 %v1500_v13, %s4487_s27  ;;  %s4503_s27 = smov 66  }
 0x363   : > { %v3961_v43 = vpop.permute.xlu0 %3960 }
 0x364   : > { %v3963_v19 = vunpack.i.h.bf16 %v3961_v43  ;;  %v3962_v46 = vunpack.i.l.bf16 %v3961_v43 }
 0x365   : > { %v3966_v63 = vpop.permute.xlu1 %3965 }
 0x366   : > { %v1524_v32 = vsel %vm534_vm4, %v3962_v46, %v3963_v19  ;;  %v3968_v41 = vunpack.i.h.bf16 %v3966_v63  ;;  %v3967_v56 = vunpack.i.l.bf16 %v3966_v63 }
 0x367   : > { %v3971_v16 = vpop.permute.xlu0 %3970  ;;  %v5444_v60 = vmax.f32 %v1496_v8, %v1524_v32 }
 0x368   : > { %v1525_v21 = vsel %vm534_vm4, %v3963_v19, %v3967_v56  ;;  %v1526_v29 = vsel %vm534_vm4, %v3967_v56, %v3968_v41  ;;  %v3972_v48 = vunpack.i.l.bf16 %v3971_v16  ;;  %v3973_v3 = vunpack.i.h.bf16 %v3971_v16 }
 0x369   : > { %v5446_v0 = vmax.f32 %v1497_v38, %v1525_v21  ;;  %v5449_v23 = vmax.f32 %v1498_v25, %v1526_v29  ;;  %v1521_v14 = vpop.permute.xlu1 %1520 }
 0x36a   : > { %v1523_v59 = vsel %vm534_vm4, %v3972_v48, %v3962_v46  ;;  %v1527_v27 = vsel %vm534_vm4, %v3968_v41, %v1521_v14  ;;  %v1522_v33 = vsel %vm534_vm4, %v3973_v3, %v3972_v48  ;;  %v5488_v22 = vmax.f32 %v1500_v13, %v1521_v14 }
 0x36b   : > { %v5451_v2 = vmax.f32 %v1495_v30, %v1523_v59  ;;  %v3974_v40 = vpack.i.bf16 %v5446_v0, %v5444_v60  ;;  %v5464_v50 = vmax.f32 %v1499_v20, %v1527_v27  ;;  %v5485_v53 = vmax.f32 %v1494_v28, %v1522_v33 }
 0x36c   : > { %vm1595_vm4 = vcmask 998400  }
 0x36d   : > { %3975 = vrot.lane.b32.xlu0 %v3974_v40, %s4485_s25  ;;  %v3979_v42 = vpack.i.bf16 %v5451_v2, %v5449_v23  ;;  %v5471_v4 = vpack.i.bf16 %v5464_v50, %v5449_v23  ;;  %v4059_v7 = vpack.i.bf16 %v5444_v60, %v5451_v2  ;;  %v4064_v10 = vpack.i.bf16 %v5464_v50, %v5485_v53 }
 0x36e   : > { %v4079_v36 = vpack.i.bf16 %v5446_v0, %v5485_v53  ;;  %v4104_v6 = vpack.i.bf16 %v5488_v22, %v5464_v50 }
 0x36f   : > { %3980 = vrot.lane.b32.xlu1 %v3979_v42, %s4485_s25 }
 0x371   : > { %3985 = vrot.lane.b32.xlu0 %v3974_v40, %s4492_s13 }
 0x373   : > { %3990 = vrot.lane.b32.xlu1 %v3979_v42, %s4492_s13 }
 0x375   : > { %3995 = vrot.lane.b32.xlu0 %v3974_v40, %s4502_s24 }
 0x377   : > { %4000 = vrot.lane.b32.xlu1 %v3979_v42, %s4502_s24 }
 0x379   : > { %4005 = vrot.lane.b32.xlu0 %v3974_v40, %s4495_s16 }
 0x37b   : > { %4010 = vrot.lane.b32.xlu1 %v3979_v42, %s4495_s16 }
 0x37d   : > { %4015 = vrot.lane.b32.xlu0 %v3974_v40, %s4503_s27 }
 0x37f   : > { %4020 = vrot.lane.b32.xlu1 %v5471_v4, %s4503_s27 }
 0x381   : > { %4025 = vrot.lane.b32.xlu0 %v3974_v40, %s4497_s20 }
 0x383   : > { %4030 = vrot.lane.b32.xlu1 %v3979_v42, %s4497_s20 }
 0x385   : > { %4035 = vrot.lane.b32.xlu0 %v3974_v40, %s4498_s21 }
 0x387   : > { %4040 = vrot.lane.b32.xlu1 %v3979_v42, %s4498_s21 }
 0x389   : > { %4045 = vrot.lane.b32.xlu0 %v3974_v40, %s4504_s12 }
 0x38b   : > { %4050 = vrot.lane.b32.xlu1 %v3979_v42, %s4504_s12 }
 0x38d   : > { %4060 = vrot.lane.b32.xlu0 %v4059_v7, %s4505_s14 }
 0x38f   : > { %4055 = vrot.lane.b32.xlu1 %v4059_v7, %s4506_s15 }
 0x391   : > { %1715 = vrot.lane.b32.xlu0 %v5485_v53, %s4505_s14 }
 0x393   : > { %1763 = vrot.lane.b32.xlu1 %v5488_v22, %s4485_s25 }
 0x395   : > { %1766 = vrot.lane.b32.xlu0 %v5488_v22, %s4492_s13 }
 0x397   : > { %1769 = vrot.lane.b32.xlu1 %v5488_v22, %s4502_s24 }
 0x399   : > { %4065 = vrot.lane.b32.xlu0 %v4064_v10, %s4485_s25 }
 0x39b   : > { %4070 = vrot.lane.b32.xlu1 %v4064_v10, %s4492_s13 }
 0x39d   : > { %4075 = vrot.lane.b32.xlu0 %v4064_v10, %s4502_s24 }
 0x39f   : > { %4085 = vrot.lane.b32.xlu1 %v4064_v10, %s4495_s16 }
 0x3a1   : > { %4080 = vrot.lane.b32.xlu0 %v4079_v36, %s4506_s15 }
 0x3a3   : > { %4090 = vrot.lane.b32.xlu1 %v4064_v10, %s4498_s21 }
 0x3a7   : > { %4095 = vrot.lane.b32.xlu1 %v4064_v10, %s4504_s12 }
 0x3ab   : > { %1780 = vrot.lane.b32.xlu1 %v5488_v22, %s4503_s27 }
 0x3af   : > { %4105 = vrot.lane.b32.xlu1 %v4104_v6, %s4497_s20 }
 0x3df   : > { %v3976_v44 = vpop.permute.xlu0 %3975 }
 0x3e0   : > { %v3978_v54 = vunpack.i.h.bf16 %v3976_v44  ;;  %v3977_v5 = vunpack.i.l.bf16 %v3976_v44 }
 0x3e1   : > { %v5514_v62 = vpop.permute.xlu1 %3980 }
 0x3e2   : > { %v1559_v9 = vsel %vm447_vm1, %v3977_v5, %v3978_v54  ;;  %v3983_v58 = vunpack.i.h.bf16 %v5514_v62  ;;  %v5519_v39 = vunpack.i.l.bf16 %v5514_v62 }
 0x3e3   : > { %v3986_v18 = vpop.permute.xlu0 %3985  ;;  %v4099_v17 = vpack.i.bf16 %v1559_v9, %v5485_v53  ;;  %v5543_v45 = vpack.c.bf16 %v1559_v9, %v5444_v60 }
 0x3e4   : > { %v5525_v31 = vsel %vm447_vm1, %v3983_v58, %v3977_v5  ;;  %v5529_v15 = vsel %vm447_vm1, %v3978_v54, %v5519_v39  ;;  %v3987_v38 = vunpack.i.l.bf16 %v3986_v18  ;;  %v3988_v55 = vunpack.i.h.bf16 %v3986_v18 }
 0x3e5   : > { %v5531_v37 = vpop.permute.xlu1 %3990  ;;  %4100 = vrot.lane.b32.xlu0 %v4099_v17, %s4497_s20  ;;  %v5536_v11 = vpack.c.bf16 %v5525_v31, %v5451_v2  ;;  %v5540_v35 = vpack.c.bf16 %v5529_v15, %v5446_v0 }
 0x3e6   : > { %v3993_v49 = vunpack.i.h.bf16 %v5531_v37  ;;  %v5554_v61 = vunpack.i.l.bf16 %v5531_v37  ;;  %v1578_v19 = vsel %vm503_vm8, %v3987_v38, %v3988_v55 }
 0x3e7   : > { %v3996_v47 = vpop.permute.xlu0 %3995  ;;  %2070 = vmatprep.subr.bf16.mxu0 %v5536_v11  ;;  %2113 = vmatprep.subr.bf16.mxu1 %v5540_v35 }
 0x3e8   : > { %2114 = vmatpush1.bf16.msra.mxu1 %v5543_v45  ;;  %v3998_v57 = vunpack.i.h.bf16 %v3996_v47  ;;  %v3997_v1 = vunpack.i.l.bf16 %v3996_v47  ;;  %v5565_v20 = vsel %vm503_vm8, %v3993_v49, %v3987_v38  ;;  %v1579_v43 = vsel %vm503_vm8, %v3988_v55, %v5554_v61 }
 0x3e9   : > { %v5549_v8 = vpop.permute.xlu1 %4000  ;;  %1759 = vrot.lane.b32.xlu0 %v5488_v22, %s4495_s16  ;;  %v4129_v2 = vpack.i.bf16 %v1579_v43, %v1578_v19  ;;  %v4124_v47 = vpack.i.bf16 %v5525_v31, %v5529_v15 }
 0x3ea   : > { %v4003_v25 = vunpack.i.h.bf16 %v5549_v8  ;;  %v5558_v51 = vunpack.i.l.bf16 %v5549_v8  ;;  %v5575_v24 = vsel %vm1595_vm4, %v3997_v1, %v3998_v57 }
 0x3eb   : > { %v5560_v26 = vpop.permute.xlu0 %4005  ;;  %v5595_v32 = vpack.c.bf16 %v5575_v24, %v1578_v19 }
 0x3ec   : > { %v5570_v28 = vsel %vm1595_vm4, %v4003_v25, %v3997_v1  ;;  %v5585_v13 = vsel %vm1595_vm4, %v3998_v57, %v5558_v51  ;;  %v5598_v41 = vunpack.i.l.bf16 %v5560_v26  ;;  %v4008_v15 = vunpack.i.h.bf16 %v5560_v26 }
 0x3ed   : > { %v4109_v34 = vpack.i.bf16 %v5570_v28, %v5565_v20  ;;  %v5579_v12 = vpop.permute.xlu1 %4010  ;;  %1790 = vrot.lane.b32.xlu0 %v5488_v22, %s4498_s21  ;;  %v5591_v63 = vpack.c.bf16 %v5585_v13, %v1579_v43  ;;  %v5725_v30 = vpack.c.bf16 %v5570_v28, %v5565_v20  ;;  %s3301_s21 = sshll.u32 %s6531_s18, 4 }
 0x3ee   : > { %v6481_v1 = vunpack.i.l.bf16 %v5579_v12 }
 0x3ef   : > { %v4016_v46 = vpop.permute.xlu0 %4015  ;;  %4110 = vrot.lane.b32.xlu1 %v4109_v34, %s4497_s20  ;;  %2115 = vmatprep.subr.bf16.mxu1 %v5591_v63 }
 0x3f0   : > { %v4017_v56 = vunpack.i.l.bf16 %v4016_v46  ;;  %2116 = vmatpush1.bf16.msra.mxu1 %v5595_v32  ;;  %v4018_v60 = vunpack.i.h.bf16 %v4016_v46  ;;  %v4134_v46 = vpack.i.bf16 %v5585_v13, %v5575_v24  ;;  %v5688_v13 = vsel %vm689_vm12, %v5598_v41, %v4008_v15 }
 0x3f1   : > { %v5601_v16 = vpop.permute.xlu1 %4020  ;;  %1793 = vrot.lane.b32.xlu0 %v5488_v22, %s4504_s12 }
 0x3f2   : > { %v4114_v21 = vpack.i.bf16 %v5598_v41, %v4017_v56  ;;  %v6482_v29 = vunpack.i.l.bf16 %v5601_v16  ;;  %v1783_v7 = vsel %vm1782_vm14, %v4017_v56, %v4018_v60 }
 0x3f3   : > { %v4026_v48 = vpop.permute.xlu0 %4025 }
 0x3f4   : > { %4115 = vrot.lane.b32.xlu1 %v4114_v21, %s4497_s20  ;;  %v1784_v40 = vsel %vm1782_vm14, %v4018_v60, %v6482_v29  ;;  %v5614_v14 = vunpack.i.l.bf16 %v4026_v48  ;;  %v5676_v60 = vsel %vm689_vm12, %v4008_v15, %v6481_v1 }
 0x3f5   : > { %v5609_v59 = vpop.permute.xlu1 %4030  ;;  %v4139_v22 = vpack.i.bf16 %v1784_v40, %v1783_v7  ;;  %v4144_v7 = vpack.i.bf16 %v5676_v60, %v5688_v13 }
 0x3f7   : > { %v4036_v42 = vpop.permute.xlu0 %4035 }
 0x3f8   : > { %v4038_v27 = vunpack.i.h.bf16 %v4036_v42  ;;  %v5616_v3 = vunpack.i.l.bf16 %v4036_v42  ;;  %4130 = vrot.lane.b32.xlu1 %v4129_v2, %s4497_s20  ;;  %v6480_v2 = vunpack.i.l.bf16 %v5609_v59  ;;  %v4028_v42 = vunpack.i.h.bf16 %v4026_v48 }
 0x3f9   : > { %v5620_v33 = vpop.permute.xlu1 %4040 }
 0x3fa   : > { %v4119_v10 = vpack.i.bf16 %v5616_v3, %v5614_v14  ;;  %v6485_v36 = vunpack.i.l.bf16 %v5620_v33  ;;  %v5629_v44 = vsel %vm813_vm15, %v5616_v3, %v4038_v27 }
 0x3fb   : > { %v5625_v6 = vpop.permute.xlu0 %4045 }
 0x3fc   : > { %v5634_v54 = vsel %vm813_vm15, %v4038_v27, %v6485_v36  ;;  %v4048_v5 = vunpack.i.h.bf16 %v5625_v6  ;;  %v4047_v9 = vunpack.i.l.bf16 %v5625_v6  ;;  %4140 = vrot.lane.b32.xlu1 %v4139_v22, %s4497_s20  ;;  %4120 = vrot.lane.b32.xlu0 %v4119_v10, %s4497_s20  ;;  %v5695_v22 = vsel %vm751_vm13, %v4028_v42, %v6480_v2 }
 0x3fd   : > { %v4154_v18 = vpack.i.bf16 %v5634_v54, %v5629_v44  ;;  %v5642_v17 = vpop.permute.xlu1 %4050  ;;  %v5704_v6 = vsel %vm751_vm13, %v5614_v14, %v4028_v42  ;;  %v4043_v42 = vunpack.i.h.bf16 %v5620_v33 }
 0x3fe   : > { %v6484_v57 = vunpack.i.h.bf16 %v5642_v17  ;;  %v5649_v38 = vsel %vm1704_vm2, %v4047_v9, %v4048_v5 }
 0x3ff   : > { %v5651_v55 = vpop.permute.xlu0 %4060  ;;  %v4159_v56 = vpack.i.bf16 %v5649_v38, %v4047_v9  ;;  %v1683_v40 = vsel %vm813_vm15, %v4043_v42, %v5616_v3 }
 0x400   : > { %v6479_v34 = vunpack.i.h.bf16 %v5651_v55  ;;  %v4062_v43 = vunpack.i.l.bf16 %v5651_v55  ;;  %4155 = vrot.lane.b32.xlu1 %v4154_v18, %s4497_s20  ;;  %4125 = vrot.lane.b32.xlu0 %v4124_v47, %s4497_s20  ;;  %v5660_v31 = vsel %vm1704_vm2, %v6484_v57, %v4047_v9  ;;  %v4149_v9 = vpack.i.bf16 %v5695_v22, %v5704_v6 }
 0x401   : > { %v5663_v19 = vpop.permute.xlu1 %4055  ;;  %v6483_v18 = vunpack.i.l.bf16 %v5642_v17 }
 0x402   : > { %v5671_v21 = vsel %vm1727_vm0, %v4062_v43, %v6479_v34  ;;  %v4058_v15 = vunpack.i.h.bf16 %v5663_v19 }
 0x403   : > { %v1716_v26 = vpop.permute.xlu0 %1715 }
 0x404   : > { %v5682_v24 = vsel %vm1727_vm0, %v1716_v26, %v4062_v43  ;;  %4160 = vrot.lane.b32.xlu1 %v4159_v56, %s4497_s20  ;;  %4135 = vrot.lane.b32.xlu0 %v4134_v46, %s4497_s20  ;;  %v4013_v43 = vunpack.i.h.bf16 %v5579_v12 }
 0x405   : > { %v1764_v27 = vpop.permute.xlu1 %1763 }
 0x407   : > { %v5697_v10 = vpop.permute.xlu0 %1766 }
 0x408   : > { %4165 = vrot.lane.b32.xlu1 %v5471_v4, %s4506_s15  ;;  %4145 = vrot.lane.b32.xlu0 %v4144_v7, %s4497_s20  ;;  %v4057_v4 = vunpack.i.l.bf16 %v5663_v19  ;;  %v4169_v19 = vpack.i.bf16 %v5449_v23, %v5446_v0 }
 0x409   : > { %v5706_v48 = vpop.permute.xlu1 %1769 }
 0x40a   : > { %v1617_v0 = vsel %vm1615_vm5, %v4057_v4, %v4058_v15 }
 0x40b   : > { %v4066_v47 = vpop.permute.xlu0 %4065 }
 0x40c   : > { %v4067_v46 = vunpack.i.l.bf16 %v4066_v47  ;;  %1725 = vrot.lane.b32.xlu1 %v5464_v50, %s4505_s14  ;;  %4150 = vrot.lane.b32.xlu0 %v4149_v9, %s4497_s20  ;;  %v5717_v56 = vunpack.i.h.bf16 %v4066_v47  ;;  %v5732_v9 = vld [vmem:[%s6454_s3 + $0x4] ss:$8 sps:$4 sm:$0xff]  }
 0x40d   : > { %v4071_v26 = vpop.permute.xlu1 %4070  ;;  %3241 = vmatprep.mubr.msk.bf16.mxu0 %vm1264_vm10, %v5732_v9  ;;  %3243 = vmatprep.mubr.msk.bf16.mxu1 %vm1264_vm10, %v5732_v9 }
 0x40e   : > { %v1557_v7 = vsel %vm447_vm1, %v4067_v46, %v3983_v58  ;;  %v5735_v52 = vunpack.i.h.bf16 %v4071_v26  ;;  %v4072_v34 = vunpack.i.l.bf16 %v4071_v26  ;;  %v5740_v58 = vsel %vm1704_vm2, %v4048_v5, %v6483_v18 }
 0x40f   : > { %v1973_v47 = vpack.c.bf16 %v1557_v7, %v5485_v53  ;;  %v4076_v62 = vpop.permute.xlu0 %4075  ;;  %v1639_v53 = vsel %vm689_vm12, %v4013_v43, %v5598_v41  ;;  %v5754_v46 = vsel %vm447_vm1, %v5519_v39, %v5717_v56  ;;  %v1765_v5 = vsel %vm447_vm1, %v5717_v56, %v1764_v27 }
 0x410   : > { %v5742_v20 = vunpack.i.h.bf16 %v4076_v62  ;;  %v4077_v28 = vunpack.i.l.bf16 %v4076_v62  ;;  %1884 = vrot.lane.b32.xlu0 %v5740_v58, %s4497_s20  ;;  %v5761_v26 = vsel %vm503_vm8, %v5554_v61, %v5735_v52 }
 0x411   : > { %v5763_v7 = vpop.permute.xlu1 %4085  ;;  %2071 = vmatpush1.bf16.msra.mxu0 %v1973_v47  ;;  %v4179_v41 = vpack.i.bf16 %v5761_v26, %v1764_v27  ;;  %v4033_v47 = vunpack.i.h.bf16 %v5609_v59  ;;  %v1576_v27 = vsel %vm503_vm8, %v4072_v34, %v3993_v49  ;;  %v4174_v49 = vpack.i.bf16 %v1765_v5, %v5754_v46 }
 0x412   : > { %v1771_v62 = vsel %vm1595_vm4, %v5742_v20, %v5706_v48  ;;  %v5776_v2 = vsel %vm1595_vm4, %v5558_v51, %v5742_v20  ;;  %2072 = vmatprep.subr.bf16.mxu0 %v5725_v30  ;;  %v1596_v1 = vsel %vm1595_vm4, %v4077_v28, %v4003_v25  ;;  %v4087_v57 = vunpack.i.l.bf16 %v5763_v7 }
 0x413   : > { %v5786_v29 = vpop.permute.xlu0 %4080  ;;  %v1978_v18 = vpack.c.bf16 %v1596_v1, %v1576_v27  ;;  %4180 = vrot.lane.b32.xlu1 %v4179_v41, %s4497_s20  ;;  %v4189_v8 = vpack.i.bf16 %v5697_v10, %v1771_v62  ;;  %v5797_v34 = vpack.c.bf16 %v1639_v53, %v1617_v0  ;;  %v2000_v3 = vpack.c.bf16 %v5776_v2, %v5761_v26 }
 0x414   : > { %v4082_v37 = vunpack.i.l.bf16 %v5786_v29  ;;  %4170 = vrot.lane.b32.xlu0 %v4169_v19, %s4505_s14  ;;  %v1638_v1 = vsel %vm689_vm12, %v4087_v57, %v4013_v43  ;;  %v5806_v19 = vsel %vm751_vm13, %v4033_v47, %v5614_v14  ;;  %v6514_v0 = vunpack.i.h.bf16 %v5786_v29 }
 0x415   : > { %v4091_v25 = vpop.permute.xlu1 %4090  ;;  %2073 = vmatpush1.bf16.msra.mxu0 %v1978_v18  ;;  %v6515_v5 = vunpack.i.l.bf16 %v5620_v33  ;;  %v4023_v14 = vunpack.i.h.bf16 %v5601_v16  ;;  %v1989_v33 = vpack.c.bf16 %v1683_v40, %v5806_v19  ;;  %v6518_v40 = vunpack.i.l.bf16 %v5601_v16 }
 0x416   : > { %v1616_v28 = vsel %vm1615_vm5, %v4082_v37, %v4057_v4  ;;  %v4093_v41 = vunpack.i.h.bf16 %v4091_v25  ;;  %v4092_v27 = vunpack.i.l.bf16 %v4091_v25  ;;  %2074 = vmatprep.subr.bf16.mxu0 %v5797_v34  ;;  %v1618_v53 = vsel %vm1615_vm5, %v4058_v15, %v6514_v0 }
 0x417   : > { %v1983_v36 = vpack.c.bf16 %v1638_v1, %v1616_v28  ;;  %4190 = vrot.lane.b32.xlu1 %v4189_v8, %s4497_s20  ;;  %v5820_v18 = vpack.c.bf16 %v5688_v13, %v1618_v53  ;;  %v1768_v15 = vsel %vm503_vm8, %v5735_v52, %v5697_v10  ;;  %v6516_v13 = vunpack.i.h.bf16 %v5642_v17 }
 0x418   : > { %v5814_v57 = vsel %vm813_vm15, %v6515_v5, %v4093_v41  ;;  %v1682_v43 = vsel %vm813_vm15, %v4092_v27, %v4043_v42  ;;  %4175 = vrot.lane.b32.xlu0 %v4174_v49, %s4497_s20  ;;  %v4184_v62 = vpack.i.bf16 %v5776_v2, %v1768_v15  ;;  %v4088_v42 = vunpack.i.h.bf16 %v5763_v7 }
 0x419   : > { %v4096_v4 = vpop.permute.xlu1 %4095  ;;  %2075 = vmatpush1.bf16.msra.mxu0 %v1983_v36  ;;  %v6517_v25 = vunpack.i.l.bf16 %v5642_v17  ;;  %v1785_v1 = vsel %vm1782_vm14, %v6518_v40, %v4023_v14  ;;  %v6519_v27 = vunpack.i.l.bf16 %v5579_v12  ;;  %v6521_v40 = vpack.c.bf16 %v5671_v21, %v5660_v31 }
 0x41a   : > { %v4098_v37 = vunpack.i.h.bf16 %v4096_v4  ;;  %v4097_v8 = vunpack.i.l.bf16 %v4096_v4  ;;  %2076 = vmatprep.subr.bf16.mxu0 %v1989_v33  ;;  %v4194_v36 = vpack.i.bf16 %v1785_v1, %v5706_v48  ;;  %vm4511_vm8 = vmmov 0  }
 0x41b   : > { %v5846_v0 = vsel %vm689_vm12, %v6519_v27, %v4088_v42 }
 0x41c   : > { %v1705_v49 = vsel %vm1704_vm2, %v4097_v8, %v6516_v13  ;;  %4185 = vrot.lane.b32.xlu0 %v4184_v62, %s4497_s20  ;;  %v5836_v10 = vsel %vm1704_vm2, %v6517_v25, %v4098_v37 }
 0x41d   : > { %v1993_v7 = vpack.c.bf16 %v5682_v24, %v1705_v49  ;;  %v1781_v28 = vpop.permute.xlu1 %1780  ;;  %v6520_v24 = vunpack.i.l.bf16 %v5609_v59 }
 0x41e   : > { %v1786_v53 = vsel %vm1782_vm14, %v4023_v14, %v1781_v28 }
 0x41f   : > { %v4199_v17 = vpack.i.bf16 %v5846_v0, %v1786_v53 }
 0x420   : > { %4195 = vrot.lane.b32.xlu0 %v4194_v36, %s4497_s20 }
 0x421   : > { %v4106_v5 = vpop.permute.xlu1 %4105  ;;  %4200 = vrot.lane.b32.xlu1 %v4199_v17, %s4497_s20 }
 0x422   : > { %v4107_v16 = vunpack.i.l.bf16 %v4106_v5  ;;  %v4108_v33 = vunpack.i.h.bf16 %v4106_v5 }
 0x424   : > { %v5855_v15 = vsel %vm751_vm13, %v6520_v24, %v4107_v16  ;;  %v5866_v25 = vsel %vm751_vm13, %v4107_v16, %v4108_v33 }
 0x425   : > { %v1992_v12 = vpack.c.bf16 %v5814_v57, %v5855_v15 }
 0x457   : > { %v4101_v48 = vpop.permute.xlu0 %4100 }
 0x458   : > { %v4102_v4 = vunpack.i.l.bf16 %v4101_v48  ;;  %v4103_v5 = vunpack.i.h.bf16 %v4101_v48 }
 0x45a   : > { %v1660_v14 = vsel %vm751_vm13, %v4102_v4, %v4033_v47 }
 0x45b   : > { %v1988_v62 = vpack.c.bf16 %v1682_v43, %v1660_v14  ;;  %v1760_v8 = vpop.permute.xlu0 %1759 }
 0x45c   : > { %v5861_v13 = vsel %vm689_vm12, %v4088_v42, %v1760_v8  ;;  %v4209_v49 = vpack.i.bf16 %v5855_v15, %v1760_v8  ;;  %v4214_v42 = vpack.i.bf16 %v5814_v57, %v5866_v25 }
 0x45d   : > { %v4204_v59 = vpack.i.bf16 %v1781_v28, %v5861_v13  ;;  %2077 = vmatpush1.bf16.msra.mxu0 %v1988_v62 }
 0x45e   : > { %4210 = vrot.lane.b32.xlu1 %v4209_v49, %s4497_s20  ;;  %2078 = vmatprep.subr.bf16.mxu0 %v6521_v40 }
 0x45f   : > { %v1791_v47 = vpop.permute.xlu0 %1790  ;;  %4205 = vrot.lane.b32.xlu0 %v4204_v59, %s4497_s20 }
 0x460   : > { %v1792_v43 = vsel %vm813_vm15, %v4093_v41, %v1791_v47  ;;  %v4224_v21 = vpack.i.bf16 %v5836_v10, %v1791_v47  ;;  %vm3163_vm15 = vcmask 1024  }
 0x461   : > { %v4219_v1 = vpack.i.bf16 %v4108_v33, %v1792_v43  ;;  %v4111_v28 = vpop.permute.xlu1 %4110  ;;  %2079 = vmatpush1.bf16.msra.mxu0 %v1993_v7 }
 0x462   : > { %2080 = vmatprep.subr.bf16.mxu0 %v5543_v45  ;;  %v2032_v45 = vld [vmem:[%s6455_s4 + $0x8] sm:$0xff]  ;;  %v4113_v49 = vunpack.i.h.bf16 %v4111_v28  ;;  %v4112_v59 = vunpack.i.l.bf16 %v4111_v28 }
 0x463   : > { %v1794_v36 = vpop.permute.xlu0 %1793  ;;  %4220 = vrot.lane.b32.xlu1 %v4219_v1, %s4497_s20  ;;  %4215 = vrot.lane.b32.xlu0 %v4214_v42, %s4497_s20 }
 0x464   : > { %v1795_v31 = vsel %vm1704_vm2, %v4098_v37, %v1794_v36  ;;  %v2031_v37 = vld [vmem:[%s6455_s4] sm:$0xff] }
 0x465   : > { %v4229_v27 = vpack.i.bf16 %v1794_v36, %v1795_v31  ;;  %2081 = vmatpush1.bf16.msra.mxu0 %v5536_v11 }
 0x466   : > { %v4116_v41 = vpop.permute.xlu1 %4115  ;;  %2082 = vmatprep.subr.bf16.mxu0 %v5595_v32 }
 0x467   : > { %4230 = vrot.lane.b32.xlu1 %v4229_v27, %s4497_s20  ;;  %4225 = vrot.lane.b32.xlu0 %v4224_v21, %s4497_s20  ;;  %v4117_v31 = vunpack.i.l.bf16 %v4116_v41  ;;  %s388_s20 = scalar_lea.vmem %s6462_s11, %s3301_s21 }
 0x469   : > { %2083 = vmatpush1.bf16.msra.mxu0 %v5725_v30 }
 0x46a   : > { %v5892_v7 = vpop.permute.xlu1 %4130  ;;  %2084 = vmatprep.subr.bf16.mxu0 %v5820_v18 }
 0x46b   : > { %2040 = vperm.xlu1 %3943, %v2032_v45   ;;  %2035 = vperm.xlu0 %4234, %v2031_v37   ;;  %v6486_v24 = vunpack.i.h.bf16 %v5892_v7  ;;  %v4132_v4 = vunpack.i.l.bf16 %v5892_v7  ;;  %v6526_v57 = vunpack.i.h.bf16 %v5892_v7 }
 0x46d   : > { %2085 = vmatpush1.bf16.msra.mxu0 %v5797_v34  ;;  %v1897_v1 = vsel %vm751_vm13, %v4112_v59, %v4132_v4  ;;  %v1898_v36 = vsel %vm751_vm13, %v4132_v4, %v6486_v24 }
 0x46e   : > { %v5896_v11 = vpop.permute.xlu1 %4140  ;;  %v4121_v32 = vpop.permute.xlu0 %4120 }
 0x46f   : > { %v4143_v43 = vunpack.i.h.bf16 %v5896_v11  ;;  %v4142_v42 = vunpack.i.l.bf16 %v5896_v11 }
 0x471   : > { %v1907_v4 = vsel %vm751_vm13, %v4117_v31, %v4142_v42 }
 0x472   : > { %v5898_v53 = vpop.permute.xlu1 %4155  ;;  %v5900_v17 = vpop.permute.xlu0 %4125 }
 0x473   : > { %v4128_v16 = vunpack.i.h.bf16 %v5900_v17  ;;  %v4127_v30 = vunpack.i.l.bf16 %v5900_v17 }
 0x475   : > { %v1892_v33 = vsel %vm751_vm13, %v4128_v16, %v4103_v5  ;;  %v1893_v34 = vsel %vm751_vm13, %v4103_v5, %v4127_v30  ;;  %v4118_v5 = vunpack.i.h.bf16 %v4116_v41 }
 0x476   : > { %v2004_v14 = vpack.c.bf16 %v1892_v33, %v5806_v19  ;;  %v4161_v62 = vpop.permute.xlu1 %4160  ;;  %v5911_v8 = vpop.permute.xlu0 %4135  ;;  %v2005_v48 = vpack.c.bf16 %v1893_v34, %v5704_v6 }
 0x477   : > { %v4138_v40 = vunpack.i.h.bf16 %v5911_v8  ;;  %v4137_v47 = vunpack.i.l.bf16 %v5911_v8  ;;  %v4163_v59 = vunpack.i.h.bf16 %v4161_v62  ;;  %v4162_v41 = vunpack.i.l.bf16 %v4161_v62 }
 0x478   : > { %2086 = vmatprep.subr.bf16.mxu0 %v2005_v48  ;;  %v4157_v48 = vunpack.i.l.bf16 %v5898_v53 }
 0x479   : > { %v1902_v19 = vsel %vm751_vm13, %v4113_v49, %v4137_v47  ;;  %2087 = vmatpush1.bf16.msra.mxu0 %v2004_v14  ;;  %v1903_v28 = vsel %vm751_vm13, %v4137_v47, %v4138_v40  ;;  %v4158_v14 = vunpack.i.h.bf16 %v5898_v53  ;;  %v1908_v49 = vsel %vm751_vm13, %v4142_v42, %v4143_v43 }
 0x47a   : > { %v2009_v21 = vpack.c.bf16 %v1902_v19, %v1897_v1  ;;  %v5926_v27 = vpop.permute.xlu1 %4165  ;;  %v5928_v45 = vpop.permute.xlu0 %4145  ;;  %v2010_v37 = vpack.c.bf16 %v1903_v28, %v1898_v36  ;;  %v4123_v19 = vunpack.i.h.bf16 %v4121_v32  ;;  %v4122_v42 = vunpack.i.l.bf16 %v4121_v32 }
 0x47b   : > { %v5931_v16 = vunpack.i.l.bf16 %v5926_v27  ;;  %v4148_v33 = vunpack.i.h.bf16 %v5928_v45  ;;  %v4147_v34 = vunpack.i.l.bf16 %v5928_v45  ;;  %v1927_v32 = vsel %vm751_vm13, %v4162_v41, %v4163_v59 }
 0x47c   : > { %2088 = vmatprep.subr.bf16.mxu0 %v2010_v37  ;;  %v6522_v37 = vunpack.i.h.bf16 %v5786_v29  ;;  %v1923_v29 = vsel %vm751_vm13, %v4157_v48, %v4158_v14 }
 0x47d   : > { %v1912_v47 = vsel %vm751_vm13, %v4118_v5, %v4147_v34  ;;  %2089 = vmatpush1.bf16.msra.mxu0 %v2009_v21  ;;  %v1913_v1 = vsel %vm751_vm13, %v4147_v34, %v4148_v33  ;;  %v1922_v34 = vsel %vm751_vm13, %v4123_v19, %v4157_v48 }
 0x47e   : > { %v2014_v36 = vpack.c.bf16 %v1912_v47, %v1907_v4  ;;  %v5945_v28 = vpop.permute.xlu0 %4150  ;;  %v2015_v31 = vpack.c.bf16 %v1913_v1, %v1908_v49  ;;  %v1619_v24 = vsel %vm1615_vm5, %v6522_v37, %v5931_v16  ;;  %v1991_v4 = vpack.c.bf16 %v5634_v54, %v5695_v22 }
 0x47f   : > { %v4153_v62 = vunpack.i.h.bf16 %v5945_v28  ;;  %v4152_v5 = vunpack.i.l.bf16 %v5945_v28  ;;  %v5954_v21 = vpack.c.bf16 %v5676_v60, %v1619_v24  ;;  %v1990_v1 = vpack.c.bf16 %v5629_v44, %v5704_v6 }
 0x480   : > { %2090 = vmatprep.subr.bf16.mxu0 %v2015_v31  ;;  %v1726_v31 = vpop.permute.xlu1 %1725  ;;  %v6523_v44 = vunpack.i.h.bf16 %v5651_v55  ;;  %v1998_v55 = vpack.c.bf16 %v5754_v46, %v5449_v23 }
 0x481   : > { %v1917_v49 = vsel %vm751_vm13, %v4122_v42, %v4152_v5  ;;  %2117 = vmatprep.subr.bf16.mxu1 %v5954_v21  ;;  %2091 = vmatpush1.bf16.msra.mxu0 %v2014_v36  ;;  %v1918_v60 = vsel %vm751_vm13, %v4152_v5, %v4153_v62  ;;  %v2024_v36 = vpack.c.bf16 %v1927_v32, %v1927_v32 }
 0x482   : > { %v2019_v24 = vpack.c.bf16 %v1922_v34, %v1917_v49  ;;  %2118 = vmatpush1.bf16.msra.mxu1 %v5820_v18  ;;  %v5969_v47 = vpop.permute.xlu0 %1884  ;;  %v2020_v54 = vpack.c.bf16 %v1923_v29, %v1918_v60  ;;  %v6524_v60 = vmov 0   ;;  %v1977_v32 = vpack.c.bf16 %v5519_v39, %v5449_v23 }
 0x483   : > { %v1928_v48 = vsel %vm751_vm13, %v4163_v59, %v5969_v47  ;;  %2119 = vmatprep.subr.bf16.mxu1 %v1991_v4  ;;  %v2056_v42 = vsel %vm1268_vm3, %v2024_v36, 0  ;;  %v5980_v59 = vld [vmem:[%s6454_s3] ss:$8 sps:$4 sm:$0xff]   ;;  %v6525_v23 = vpack.c.bf16 %v5558_v51, %v5554_v61 }
 0x484   : > { %v2025_v19 = vpack.c.bf16 %v1928_v48, %v1928_v48  ;;  %2092 = vmatprep.subr.bf16.mxu0 %v2020_v54 }
 0x485   : > { %2093 = vmatpush1.bf16.msra.mxu0 %v2019_v24  ;;  %v5982_v5 = vpop.permute.xlu1 %4180  ;;  %v4168_v24 = vunpack.i.h.bf16 %v5926_v27 }
 0x486   : > { %2120 = vmatpush1.bf16.msra.mxu1 %v1990_v1  ;;  %v4171_v41 = vpop.permute.xlu0 %4170  ;;  %3240 = vmatprep.subr.msk.bf16.mxu0 %vm1268_vm3, %v2025_v19  ;;  %v4182_v8 = vunpack.i.l.bf16 %v5982_v5 }
 0x487   : > { %v4173_v18 = vunpack.i.h.bf16 %v4171_v41  ;;  %v4172_v37 = vunpack.i.l.bf16 %v4171_v41  ;;  %v1755_v46 = vsel %vm1615_vm5, %v5931_v16, %v4168_v24  ;;  %v2003_v7 = vpack.c.bf16 %v5861_v13, %v4168_v24 }
 0x488   : > { %v2002_v51 = vpack.c.bf16 %v5846_v0, %v1755_v46 }
 0x489   : > { %v1730_v6 = vsel %vm1727_vm0, %v6523_v44, %v4172_v37  ;;  %2095 = vmatpush1.bf16.msra.mxu0 %v2056_v42  ;;  %v1731_v34 = vsel %vm1727_vm0, %v4172_v37, %v4173_v18 }
 0x48a   : > { %v1995_v4 = vpack.c.bf16 %v1730_v6, %v5649_v38  ;;  %v5989_v29 = vpop.permute.xlu0 %4175  ;;  %v1996_v49 = vpack.c.bf16 %v1731_v34, %v5740_v58  ;;  %2156 = vmatprep.subr.bf16.mxu0 %v6524_v60  ;;  %v6002_v58 = vpop.permute.xlu1 %4190 }
 0x48b   : > { %v4178_v39 = vunpack.i.h.bf16 %v5989_v29  ;;  %v4177_v54 = vunpack.i.l.bf16 %v5989_v29  ;;  %v4192_v11 = vunpack.i.l.bf16 %v6002_v58 }
 0x48c   : > { %2103 = vmatmul.mubr.bf16.vlgmr.msra.gmra.mrb[8].mxu0 %v5980_v59  ;;  %2121 = vmatprep.subr.bf16.mxu1 %v1996_v49 }
 0x48d   : > { %2122 = vmatpush1.bf16.msra.mxu1 %v1995_v4  ;;  %2157 = vmatpush1.bf16.msra.mxu0 %v1977_v32  ;;  %v1895_v26 = vsel %vm751_vm13, %v4177_v54, %v4178_v39 }
 0x48e   : > { %v5999_v38 = vpop.permute.xlu0 %4185  ;;  %2123 = vmatprep.subr.bf16.mxu1 %v1998_v55  ;;  %2158 = vmatprep.subr.bf16.mxu0 %v6524_v60  ;;  %v2007_v45 = vpack.c.bf16 %v1895_v26, %v5855_v15 }
 0x48f   : > { %3244 = vmatprep.mubr.msk.bf16.mxu0 %vm1264_vm10, %v5732_v9  ;;  %v1987_v9 = vpack.c.bf16 %v5846_v0, %v5931_v16  ;;  %v4188_v1 = vunpack.i.h.bf16 %v5999_v38  ;;  %v4187_v19 = vunpack.i.l.bf16 %v5999_v38  ;;  %v4183_v0 = vunpack.i.h.bf16 %v5982_v5 }
 0x490   : > { %v1894_v16 = vsel %vm751_vm13, %v4127_v30, %v4177_v54  ;;  %vm3116_vm10 = vcmask 1041408  }
 0x491   : > { %2124 = vmatpush1.bf16.msra.mxu1 %v5540_v35  ;;  %2159 = vmatpush1.bf16.msra.mxu0 %v6525_v23  ;;  %v1905_v36 = vsel %vm751_vm13, %v4188_v1, %v4192_v11  ;;  %v2006_v17 = vpack.c.bf16 %v1894_v16, %v5695_v22  ;;  %v1904_v30 = vsel %vm751_vm13, %v4138_v40, %v4188_v1 }
 0x492   : > { %v6014_v27 = vpop.permute.xlu0 %4195  ;;  %2125 = vmatprep.subr.bf16.mxu1 %v2000_v3  ;;  %2160 = vmatprep.subr.bf16.mxu0 %v6524_v60  ;;  %v1899_v15 = vsel %vm751_vm13, %v6526_v57, %v4183_v0  ;;  %v6527_v22 = vpack.c.bf16 %v5742_v20, %v5735_v52  ;;  %v1896_v40 = vsel %vm751_vm13, %v4178_v39, %v4182_v8 }
 0x493   : > { %v4198_v35 = vunpack.i.h.bf16 %v6014_v27  ;;  %v6023_v48 = vpop.permute.xlu1 %4200  ;;  %v4197_v41 = vunpack.i.l.bf16 %v6014_v27 }
 0x494   : > { %v4203_v61 = vunpack.i.h.bf16 %v6023_v48  ;;  %v4202_v13 = vunpack.i.l.bf16 %v6023_v48 }
 0x495   : > { %v6034_v2 = vsel %vm751_vm13, %v4143_v43, %v4198_v35  ;;  %2126 = vmatpush1.bf16.msra.mxu1 %v5591_v63  ;;  %2161 = vmatpush1.bf16.msra.mxu0 %v1987_v9  ;;  %v1732_v43 = vsel %vm1727_vm0, %v4173_v18, %v1726_v31  ;;  %v1906_v52 = vsel %vm751_vm13, %v4192_v11, %v4197_v41 }
 0x496   : > { %v6043_v3 = vsel %vm751_vm13, %v4148_v33, %v4203_v61  ;;  %2127 = vmatprep.subr.bf16.mxu1 %v2002_v51  ;;  %2162 = vmatprep.subr.bf16.mxu0 %v6524_v60  ;;  %v1900_v33 = vsel %vm751_vm13, %v4183_v0, %v4187_v19  ;;  %v1997_v31 = vpack.c.bf16 %v1732_v43, %v5836_v10 }
 0x497   : > { %v2016_v63 = vpack.c.bf16 %v6043_v3, %v6034_v2  ;;  %v2011_v10 = vpack.c.bf16 %v1904_v30, %v1899_v15  ;;  %v1910_v6 = vsel %vm751_vm13, %v4198_v35, %v4202_v13 }
 0x499   : > { %2128 = vmatpush1.bf16.msra.mxu1 %v5954_v21  ;;  %2163 = vmatpush1.bf16.msra.mxu0 %v1992_v12  ;;  %v2012_v21 = vpack.c.bf16 %v1905_v36, %v1900_v33  ;;  %v1999_v12 = vpack.c.bf16 %v5717_v56, %v5464_v50  ;;  %v2008_v50 = vpack.c.bf16 %v1896_v40, %v5866_v25  ;;  %v4193_v56 = vunpack.i.h.bf16 %v6002_v58 }
 0x49a   : > { %2129 = vmatprep.subr.bf16.mxu1 %v2007_v45  ;;  %2164 = vmatprep.subr.bf16.mxu0 %v6524_v60 }
 0x49b   : > { %v1901_v20 = vsel %vm751_vm13, %v4187_v19, %v4193_v56 }
 0x49c   : > { %v2013_v18 = vpack.c.bf16 %v1906_v52, %v1901_v20 }
 0x49d   : > { %2130 = vmatpush1.bf16.msra.mxu1 %v2006_v17  ;;  %2165 = vmatpush1.bf16.msra.mxu0 %v1997_v31 }
 0x49e   : > { %2131 = vmatprep.subr.bf16.mxu1 %v2012_v21  ;;  %2166 = vmatprep.subr.bf16.mxu0 %v6524_v60 }
 0x4a1   : > { %2132 = vmatpush1.bf16.msra.mxu1 %v2011_v10  ;;  %2167 = vmatpush1.bf16.msra.mxu0 %v1999_v12 }
 0x4a2   : > { %2168 = vmatprep.subr.bf16.mxu0 %v6524_v60 }
 0x4a5   : > { %2169 = vmatpush1.bf16.msra.mxu0 %v6527_v22 }
 0x4a6   : > { %2170 = vmatprep.subr.bf16.mxu0 %v6524_v60 }
 0x4a9   : > { %2171 = vmatpush1.bf16.msra.mxu0 %v2003_v7 }
 0x4aa   : > { %2172 = vmatprep.subr.bf16.mxu0 %v6524_v60 }
 0x4ad   : > { %2173 = vmatpush1.bf16.msra.mxu0 %v2008_v50 }
 0x4ae   : > { %2174 = vmatprep.subr.bf16.mxu0 %v6524_v60 }
 0x4b1   : > { %2175 = vmatpush1.bf16.msra.mxu0 %v2013_v18 }
 0x4b2   : > { %2176 = vmatprep.subr.bf16.mxu0 %v6524_v60 }
 0x4d0   : > { %v4211_v37 = vpop.permute.xlu1 %4210 }
 0x4d1   : > { %v4212_v42 = vunpack.i.l.bf16 %v4211_v37  ;;  %v4206_v5 = vpop.permute.xlu0 %4205  ;;  %v4213_v34 = vunpack.i.h.bf16 %v4211_v37 }
 0x4d2   : > { %v4208_v44 = vunpack.i.h.bf16 %v4206_v5  ;;  %v4207_v25 = vunpack.i.l.bf16 %v4206_v5 }
 0x4d3   : > { %v1919_v46 = vsel %vm751_vm13, %v4153_v62, %v4213_v34 }
 0x4d4   : > { %v1911_v4 = vsel %vm751_vm13, %v4202_v13, %v4208_v44  ;;  %v1916_v29 = vsel %vm751_vm13, %v4207_v25, %v4212_v42  ;;  %v1915_v49 = vsel %vm751_vm13, %v4203_v61, %v4207_v25 }
 0x4d5   : > { %v2018_v32 = vpack.c.bf16 %v1916_v29, %v1911_v4  ;;  %v4221_v55 = vpop.permute.xlu1 %4220  ;;  %v4216_v24 = vpop.permute.xlu0 %4215  ;;  %v2017_v38 = vpack.c.bf16 %v1915_v49, %v1910_v6 }
 0x4d6   : > { %v4222_v58 = vunpack.i.l.bf16 %v4221_v55  ;;  %v4218_v39 = vunpack.i.h.bf16 %v4216_v24  ;;  %v4217_v54 = vunpack.i.l.bf16 %v4216_v24  ;;  %v4223_v23 = vunpack.i.h.bf16 %v4221_v55 }
 0x4d7   : > { %2133 = vmatprep.subr.bf16.mxu1 %v2017_v38  ;;  %2177 = vmatpush1.bf16.msra.mxu0 %v2018_v32 }
 0x4d8   : > { %v1924_v27 = vsel %vm751_vm13, %v4158_v14, %v4218_v39  ;;  %2134 = vmatpush1.bf16.msra.mxu1 %v2016_v63  ;;  %v1920_v9 = vsel %vm751_vm13, %v4213_v34, %v4217_v54  ;;  %v1925_v35 = vsel %vm751_vm13, %v4218_v39, %v4222_v58  ;;  %2178 = vmatprep.subr.bf16.mxu0 %v6524_v60 }
 0x4d9   : > { %v2021_v48 = vpack.c.bf16 %v1924_v27, %v1919_v46  ;;  %v4231_v61 = vpop.permute.xlu1 %4230  ;;  %v4226_v51 = vpop.permute.xlu0 %4225  ;;  %v2022_v1 = vpack.c.bf16 %v1925_v35, %v1920_v9  ;;  %v1921_v14 = vsel %vm751_vm13, %v4217_v54, %v4223_v23 }
 0x4da   : > { %v4233_v28 = vunpack.i.h.bf16 %v4231_v61  ;;  %v4232_v62 = vunpack.i.l.bf16 %v4231_v61  ;;  %v4228_v19 = vunpack.i.h.bf16 %v4226_v51  ;;  %v4227_v53 = vunpack.i.l.bf16 %v4226_v51 }
 0x4db   : > { %2135 = vmatprep.subr.bf16.mxu1 %v2022_v1 }
 0x4dc   : > { %v1930_v2 = vsel %vm751_vm13, %v4228_v19, %v4232_v62  ;;  %v1926_v26 = vsel %vm751_vm13, %v4222_v58, %v4227_v53  ;;  %2136 = vmatpush1.bf16.msra.mxu1 %v2021_v48  ;;  %v1929_v3 = vsel %vm751_vm13, %v5969_v47, %v4228_v19  ;;  %v1931_v0 = vsel %vm751_vm13, %v4232_v62, %v4233_v28 }
 0x4dd   : > { %v2027_v11 = vpack.c.bf16 %v1930_v2, %v1930_v2  ;;  %v2023_v63 = vpack.c.bf16 %v1926_v26, %v1921_v14  ;;  %v2026_v43 = vpack.c.bf16 %v1929_v3, %v1929_v3  ;;  %v2028_v16 = vpack.c.bf16 %v1931_v0, %v1931_v0 }
 0x4de   : > { %vm3161_vm13 = vcmask 7168  }
 0x4df   : > { %3242 = vmatprep.subr.msk.bf16.mxu1 %vm1268_vm3, %v2027_v11  ;;  %2179 = vmatpush1.bf16.msra.mxu0 %v2023_v63  ;;  %v2062_v45 = vsel %vm1268_vm3, %v2026_v43, 0  ;;  %v2068_v33 = vsel %vm1268_vm3, %v2028_v16, 0 }
 0x4e0   : > { %2138 = vmatpush1.bf16.msra.mxu1 %v2062_v45  ;;  %2180 = vmatprep.subr.bf16.mxu0 %v6524_v60 }
 0x4e3   : > { %2146 = vmatmul.mubr.bf16.vlgmr.msra.gmra.mrb[8].mxu1 %v5980_v59  ;;  %2181 = vmatpush1.bf16.msra.mxu0 %v2068_v33 }
 0x4e4   : > { %2816 = vmatprep.subr.bf16.mxu0 %v6524_v60 }
 0x4e6   : > { %2189 = vmatmul.mubr.bf16.vlgmr.msra.gmra.mrb[12].mxu0 %v5980_v59 }
 0x4ea   : > { %v2036_v21 = vpop.permute.xlu0 %2035  ;;  %v2041_v15 = vpop.permute.xlu1 %2040 }
 0x55f   : > { %v2104_v47 = vpop.f32.mrb[8].mxu0 }
 0x560   : > { %v2106_v36 = vpop.f32.mrb[9].mxu0  ;;  %v2105_v42 = vadd.f32 %v2104_v47, %v2036_v21 }
 0x561   : > { %v2108_v31 = vpop.f32.mrb[10].mxu0  ;;  %v2107_v20 = vadd.f32 %v2106_v36, %v2036_v21 }
 0x562   : > { %v2110_v17 = vpop.f32.mrb[11].mxu0  ;;  %v2109_v5 = vadd.f32 %v2108_v31, %v2041_v15  ;;  %v2197_v55 = vmax.f32 %v2105_v42, 0.0 }
 0x563   : > { %v2111_v44 = vadd.f32 %v2110_v17, %v2041_v15  ;;  %v2198_v29 = vmax.f32 %v2107_v20, 0.0 }
 0x564   : > { %v2202_v24 = vmax.f32 %v2109_v5, 0.0 }
 0x565   : > { %v2203_v38 = vmax.f32 %v2111_v44, 0.0 }
 0x566   : > { %v4255_v54 = vpack.i.bf16 %v2202_v24, %v2197_v55 }
 0x5b6   : > { %v2147_v30 = vpop.f32.mrb[8].mxu1 }
 0x5b7   : > { %v2149_v57 = vpop.f32.mrb[9].mxu1  ;;  %v2148_v7 = vadd.f32 %v2147_v30, %v2036_v21 }
 0x5b8   : > { %v2150_v12 = vadd.f32 %v2149_v57, %v2036_v21  ;;  %v2151_v10 = vpop.f32.mrb[10].mxu1 }
 0x5b9   : > { %v2153_v22 = vpop.f32.mrb[11].mxu1  ;;  %v2190_v8 = vpop.f32.mrb[12].mxu0  ;;  %v2152_v59 = vadd.f32 %v2151_v10, %v2041_v15  ;;  %v2199_v25 = vmax.f32 %v2148_v7, 0.0 }
 0x5ba   : > { %v2200_v40 = vmax.f32 %v2150_v12, 0.0  ;;  %v2154_v41 = vadd.f32 %v2153_v22, %v2041_v15  ;;  %v2191_v50 = vadd.f32 %v2190_v8, %v2036_v21  ;;  %v2192_v56 = vpop.f32.mrb[13].mxu0 }
 0x5bb   : > { %v2193_v52 = vpop.f32.mrb[14].mxu0  ;;  %v2204_v49 = vmax.f32 %v2152_v59, 0.0  ;;  %v4245_v58 = vpack.i.bf16 %v2199_v25, %v2198_v29 }
 0x5bc   : > { %v2201_v18 = vmax.f32 %v2191_v50, 0.0  ;;  %v2194_v13 = vadd.f32 %v2193_v52, %v2041_v15  ;;  %v2195_v37 = vpop.f32.mrb[15].mxu0  ;;  %v2205_v6 = vmax.f32 %v2154_v41, 0.0 }
 0x5bd   : > { %v4250_v39 = vpack.i.bf16 %v2204_v49, %v2203_v38 }
 0x5be   : > { %v4235_v34 = vpack.i.bf16 %v2201_v18, %v2200_v40  ;;  %v2206_v4 = vmax.f32 %v2194_v13, 0.0 }
 0x5c0   : > { %v4240_v32 = vpack.i.bf16 %v2206_v4, %v2205_v6  ;;  %4236 = vrot.lane.b32.xlu1 %v4235_v34, %s4485_s25 }
 0x5c2   : > { %4241 = vrot.lane.b32.xlu0 %v4240_v32, %s4485_s25 }
 0x5c4   : > { %4246 = vrot.lane.b32.xlu1 %v4245_v58, %s4485_s25 }
 0x5c6   : > { %4251 = vrot.lane.b32.xlu0 %v4250_v39, %s4485_s25 }
 0x5c8   : > { %4256 = vrot.lane.b32.xlu1 %v4255_v54, %s4485_s25  ;;  %s4507_s25 = smov 116  }
 0x632   : > { %v4237_v23 = vpop.permute.xlu1 %4236 }
 0x633   : > { %v4239_v46 = vunpack.i.h.bf16 %v4237_v23  ;;  %v4238_v27 = vunpack.i.l.bf16 %v4237_v23 }
 0x634   : > { %v4242_v9 = vpop.permute.xlu0 %4241 }
 0x635   : > { %v6128_v35 = vmax.f32 %v2201_v18, %v4239_v46  ;;  %v2240_v48 = vsel %vm447_vm1, %v4238_v27, %v4239_v46  ;;  %v4244_v61 = vunpack.i.h.bf16 %v4242_v9  ;;  %v4243_v51 = vunpack.i.l.bf16 %v4242_v9 }
 0x636   : > { %v2258_v1 = vmax.f32 %v2200_v40, %v2240_v48  ;;  %v4247_v28 = vpop.permute.xlu1 %4246 }
 0x637   : > { %v2264_v62 = vmax.f32 %v2206_v4, %v4244_v61  ;;  %v2244_v19 = vsel %vm447_vm1, %v4243_v51, %v4244_v61  ;;  %v4249_v53 = vunpack.i.h.bf16 %v4247_v28  ;;  %v4248_v14 = vunpack.i.l.bf16 %v4247_v28 }
 0x638   : > { %v4260_v2 = vpack.i.bf16 %v6128_v35, %v2258_v1  ;;  %v2263_v26 = vmax.f32 %v2205_v6, %v2244_v19  ;;  %v4252_v3 = vpop.permute.xlu0 %4251 }
 0x639   : > { %v2239_v0 = vsel %vm447_vm1, %v4249_v53, %v4238_v27  ;;  %v2238_v11 = vsel %vm447_vm1, %v4248_v14, %v4249_v53  ;;  %v4254_v63 = vunpack.i.h.bf16 %v4252_v3  ;;  %v4253_v43 = vunpack.i.l.bf16 %v4252_v3 }
 0x63a   : > { %v4265_v16 = vpack.i.bf16 %v2264_v62, %v2263_v26  ;;  %v2257_v45 = vmax.f32 %v2199_v25, %v2239_v0  ;;  %v2256_v33 = vmax.f32 %v2198_v29, %v2238_v11  ;;  %4261 = vrot.lane.b32.xlu0 %v4260_v2, %s4495_s16  ;;  %v4257_v47 = vpop.permute.xlu1 %4256 }
 0x63b   : > { %v2243_v36 = vsel %vm447_vm1, %v4254_v63, %v4243_v51  ;;  %v2242_v31 = vsel %vm447_vm1, %v4253_v43, %v4254_v63  ;;  %v4259_v17 = vunpack.i.h.bf16 %v4257_v47  ;;  %v4258_v30 = vunpack.i.l.bf16 %v4257_v47 }
 0x63c   : > { %v2262_v21 = vmax.f32 %v2204_v49, %v2243_v36  ;;  %v2261_v57 = vmax.f32 %v2203_v38, %v2242_v31  ;;  %4266 = vrot.lane.b32.xlu1 %v4265_v16, %s4495_s16  ;;  %v4270_v15 = vpack.i.bf16 %v2257_v45, %v2256_v33 }
 0x63d   : > { %v2241_v12 = vsel %vm447_vm1, %v4259_v17, %v4253_v43  ;;  %v2237_v10 = vsel %vm447_vm1, %v4258_v30, %v4248_v14  ;;  %vm2695_vm1 = vcmask 130048  }
 0x63e   : > { %v2260_v22 = vmax.f32 %v2202_v24, %v2241_v12  ;;  %v2255_v8 = vmax.f32 %v2197_v55, %v2237_v10  ;;  %4271 = vrot.lane.b32.xlu0 %v4270_v15, %s4495_s16  ;;  %v4275_v7 = vpack.i.bf16 %v2262_v21, %v2261_v57 }
 0x640   : > { %4276 = vrot.lane.b32.xlu1 %v4275_v7, %s4495_s16  ;;  %v4280_v40 = vpack.i.bf16 %v2260_v22, %v2255_v8 }
 0x642   : > { %4281 = vrot.lane.b32.xlu0 %v4280_v40, %s4495_s16  ;;  %s4508_s16 = smov 4  }
 0x6ac   : > { %v4262_v41 = vpop.permute.xlu0 %4261 }
 0x6ad   : > { %v4264_v50 = vunpack.i.h.bf16 %v4262_v41  ;;  %v4263_v56 = vunpack.i.l.bf16 %v4262_v41 }
 0x6ae   : > { %v4267_v52 = vpop.permute.xlu1 %4266 }
 0x6af   : > { %v2298_v20 = vsel %vm689_vm12, %v4263_v56, %v4264_v50  ;;  %v4269_v59 = vunpack.i.h.bf16 %v4267_v52  ;;  %v4268_v18 = vunpack.i.l.bf16 %v4267_v52  ;;  %v2317_v54 = vmax.f32 %v6128_v35, %v4264_v50 }
 0x6b0   : > { %v4272_v13 = vpop.permute.xlu0 %4271  ;;  %v6146_v5 = vmax.f32 %v2258_v1, %v2298_v20  ;;  %v4422_v20 = vld [vmem:[%s6456_s5 + $0x4] ss:$16 sps:$4 sm:$0xff]  }
 0x6b1   : > { %v2302_v37 = vsel %vm689_vm12, %v4268_v18, %v4269_v59  ;;  %v4274_v42 = vunpack.i.h.bf16 %v4272_v13  ;;  %v4273_v25 = vunpack.i.l.bf16 %v4272_v13  ;;  %v2322_v29 = vmax.f32 %v2264_v62, %v4269_v59  ;;  %2752 = vmatprep.mubr.bf16.mxu1 %v4422_v20 }
 0x6b2   : > { %v6148_v44 = vmax.f32 %v2263_v26, %v2302_v37  ;;  %v4277_v6 = vpop.permute.xlu1 %4276 }
 0x6b3   : > { %v4279_v34 = vunpack.i.h.bf16 %v4277_v6  ;;  %v4278_v4 = vunpack.i.l.bf16 %v4277_v6  ;;  %v2297_v49 = vsel %vm689_vm12, %v4274_v42, %v4263_v56  ;;  %v2296_v23 = vsel %vm689_vm12, %v4273_v25, %v4274_v42 }
 0x6b4   : > { %v4282_v32 = vpop.permute.xlu0 %4281  ;;  %v4285_v55 = vpack.i.bf16 %v6148_v44, %v6146_v5  ;;  %v6161_v27 = vmax.f32 %v2257_v45, %v2297_v49  ;;  %v4300_v28 = vpack.i.bf16 %v2322_v29, %v2317_v54  ;;  %v6169_v62 = vmax.f32 %v2256_v33, %v2296_v23 }
 0x6b5   : > { %v2300_v24 = vsel %vm689_vm12, %v4278_v4, %v4279_v34  ;;  %v2301_v38 = vsel %vm689_vm12, %v4279_v34, %v4268_v18  ;;  %v4284_v58 = vunpack.i.h.bf16 %v4282_v32  ;;  %v4283_v39 = vunpack.i.l.bf16 %v4282_v32 }
 0x6b6   : > { %v6157_v46 = vmax.f32 %v2262_v21, %v2301_v38  ;;  %4286 = vrot.lane.b32.xlu1 %v4285_v55, %s4492_s13  ;;  %4291 = vrot.lane.b32.xlu0 %v4285_v55, %s4506_s15  ;;  %v6163_v9 = vmax.f32 %v2261_v57, %v2300_v24  ;;  %v2494_v3 = vpack.c.bf16 %v6148_v44, %v6146_v5  ;;  %v4425_v5 = vld [vmem:[%s6456_s5 + $0x24] ss:$16 sps:$4 sm:$0xff]  }
 0x6b7   : > { %v2299_v48 = vsel %vm689_vm12, %v4284_v58, %v4278_v4  ;;  %v2295_v61 = vsel %vm689_vm12, %v4283_v39, %v4273_v25  ;;  %v4423_v4 = vld [vmem:[%s6456_s5 + $0xc] ss:$16 sps:$4 sm:$0xff]   ;;  %vm3112_vm12 = vcmask 687104  }
 0x6b8   : > { %v2318_v51 = vmax.f32 %v2260_v22, %v2299_v48  ;;  %v2313_v1 = vmax.f32 %v2255_v8, %v2295_v61  ;;  %v4360_v35 = vpack.i.bf16 %v6157_v46, %v6161_v27  ;;  %v6174_v14 = vpack.i.bf16 %v6163_v9, %v6169_v62  ;;  %3277 = vmatprep.mubr.msk.bf16.mxu0 %vm2695_vm1, %v4423_v4  ;;  %v4435_v4 = vld [vmem:[%s6456_s5 + $0x4c] ss:$16 sps:$4 sm:$0xff]  }
 0x6b9   : > { %v2489_v2 = vpack.c.bf16 %v6157_v46, %v6161_v27  ;;  %v2484_v26 = vpack.c.bf16 %v6163_v9, %v6169_v62 }
 0x6ba   : > { %4296 = vrot.lane.b32.xlu1 %v4285_v55, %s4507_s25  ;;  %4301 = vrot.lane.b32.xlu0 %v4300_v28, %s4508_s16  ;;  %v4370_v19 = vpack.i.bf16 %v2318_v51, %v2313_v1  ;;  %v2479_v53 = vpack.c.bf16 %v2318_v51, %v2313_v1 }
 0x6be   : > { %4306 = vrot.lane.b32.xlu1 %v4300_v28, %s4492_s13  ;;  %4311 = vrot.lane.b32.xlu0 %v4300_v28, %s4506_s15 }
 0x6c2   : > { %4316 = vrot.lane.b32.xlu1 %v4300_v28, %s4507_s25  ;;  %4321 = vrot.lane.b32.xlu0 %v6174_v14, %s4507_s25 }
 0x6c6   : > { %4326 = vrot.lane.b32.xlu1 %v6174_v14, %s4509_s23  ;;  %4331 = vrot.lane.b32.xlu0 %v4370_v19, %s4492_s13 }
 0x6ca   : > { %4341 = vrot.lane.b32.xlu1 %v4370_v19, %s4507_s25  ;;  %4336 = vrot.lane.b32.xlu0 %v4370_v19, %s4506_s15 }
 0x6ce   : > { %4346 = vrot.lane.b32.xlu0 %v4360_v35, %s4492_s13 }
 0x728   : > { %v4287_v0 = vpop.permute.xlu1 %4286  ;;  %v4292_v11 = vpop.permute.xlu0 %4291 }
 0x729   : > { %v4289_v63 = vunpack.i.h.bf16 %v4287_v0  ;;  %v4288_v43 = vunpack.i.l.bf16 %v4287_v0  ;;  %4351 = vrot.lane.b32.xlu1 %v4287_v0, %s4492_s13 }
 0x72b   : > { %v2495_v16 = vpack.c.bf16 %v4289_v63, %v4288_v43 }
 0x72c   : > { %v4297_v45 = vpop.permute.xlu1 %4296  ;;  %v4302_v33 = vpop.permute.xlu0 %4301 }
 0x72d   : > { %2817 = vmatpush1.bf16.msra.mxu0 %v2495_v16  ;;  %4356 = vrot.lane.b32.xlu1 %v4292_v11, %s4492_s13 }
 0x72e   : > { %2818 = vmatprep.subr.bf16.mxu0 %v6524_v60  ;;  %4366 = vrot.lane.b32.xlu0 %v4297_v45, %s4492_s13 }
 0x730   : > { %v4307_v47 = vpop.permute.xlu1 %4306  ;;  %v4312_v36 = vpop.permute.xlu0 %4311 }
 0x731   : > { %v4309_v31 = vunpack.i.h.bf16 %v4307_v47  ;;  %v4308_v17 = vunpack.i.l.bf16 %v4307_v47  ;;  %4361 = vrot.lane.b32.xlu1 %v4360_v35, %s4506_s15 }
 0x732   : > { %4371 = vrot.lane.b32.xlu0 %v4370_v19, %s4509_s23 }
 0x733   : > { %v6197_v30 = vpack.c.bf16 %v4309_v31, %v4308_v17 }
 0x734   : > { %v4317_v21 = vpop.permute.xlu1 %4316  ;;  %v4322_v57 = vpop.permute.xlu0 %4321 }
 0x735   : > { %v4324_v15 = vunpack.i.h.bf16 %v4322_v57  ;;  %v4323_v12 = vunpack.i.l.bf16 %v4322_v57  ;;  %4376 = vrot.lane.b32.xlu1 %v4302_v33, %s4492_s13 }
 0x736   : > { %4381 = vrot.lane.b32.xlu0 %v4360_v35, %s4507_s25 }
 0x737   : > { %v2487_v10 = vpack.c.bf16 %v4324_v15, %v4323_v12 }
 0x738   : > { %v4327_v22 = vpop.permute.xlu1 %4326  ;;  %v4332_v8 = vpop.permute.xlu0 %4331 }
 0x739   : > { %v4329_v7 = vunpack.i.h.bf16 %v4327_v22  ;;  %v4328_v40 = vunpack.i.l.bf16 %v4327_v22  ;;  %v4334_v41 = vunpack.i.h.bf16 %v4332_v8  ;;  %v4333_v50 = vunpack.i.l.bf16 %v4332_v8  ;;  %3302 = vmatprep.subr.bf16.mxu1 %v2487_v10  ;;  %4386 = vrot.lane.b32.xlu1 %v4360_v35, %s4509_s23 }
 0x73a   : > { %3303 = vmatpush3.bf16.msra.mxu1 %v2479_v53  ;;  %4391 = vrot.lane.b32.xlu0 %v6174_v14, %s4492_s13 }
 0x73b   : > { %v2488_v56 = vpack.c.bf16 %v4329_v7, %v4328_v40  ;;  %v2480_v52 = vpack.c.bf16 %v4334_v41, %v4333_v50 }
 0x73c   : > { %v4337_v59 = vpop.permute.xlu0 %4336  ;;  %v4342_v18 = vpop.permute.xlu1 %4341 }
 0x73d   : > { %v4339_v13 = vunpack.i.h.bf16 %v4337_v59  ;;  %v4338_v37 = vunpack.i.l.bf16 %v4337_v59  ;;  %3304 = vmatprep.subr.bf16.mxu1 %v2488_v56  ;;  %v4344_v25 = vunpack.i.h.bf16 %v4342_v18  ;;  %v4343_v6 = vunpack.i.l.bf16 %v4342_v18  ;;  %4396 = vrot.lane.b32.xlu1 %v4307_v47, %s4492_s13 }
 0x73e   : > { %3305 = vmatpush3.bf16.msra.mxu1 %v2480_v52  ;;  %4401 = vrot.lane.b32.xlu0 %v6174_v14, %s4506_s15 }
 0x73f   : > { %v2481_v42 = vpack.c.bf16 %v4339_v13, %v4338_v37  ;;  %3306 = vmatprep.subr.bf16.mxu1 %v2489_v2  ;;  %v2482_v55 = vpack.c.bf16 %v4344_v25, %v4343_v6  ;;  %v4429_v25 = vld [vmem:[%s6456_s5 + $0x2c] ss:$16 sps:$4 sm:$0xff]   ;;  %v4428_v6 = vld [vmem:[%s6456_s5 + $0x20] ss:$16 sps:$4 sm:$0xff]  }
 0x740   : > { %v4347_v34 = vpop.permute.xlu0 %4346 }
 0x741   : > { %v4349_v29 = vunpack.i.h.bf16 %v4347_v34  ;;  %v4348_v49 = vunpack.i.l.bf16 %v4347_v34  ;;  %4406 = vrot.lane.b32.xlu1 %v4312_v36, %s4492_s13  ;;  %v4431_v34 = vld [vmem:[%s6456_s5 + $0x44] ss:$16 sps:$4 sm:$0xff]  }
 0x742   : > { %3307 = vmatpush3.bf16.msra.mxu1 %v2481_v42  ;;  %4411 = vrot.lane.b32.xlu0 %v4317_v21, %s4492_s13 }
 0x743   : > { %v2490_v32 = vpack.c.bf16 %v4349_v29, %v4348_v49  ;;  %v4434_v29 = vld [vmem:[%s6456_s5 + $0x40] ss:$16 sps:$4 sm:$0xff]   ;;  %v4437_v49 = vld [vmem:[%s6456_s5 + $0x64] ss:$16 sps:$4 sm:$0xff]  }
 0x745   : > { %3308 = vmatprep.subr.bf16.mxu1 %v2490_v32  ;;  %v4439_v32 = vld [vmem:[%s6456_s5 + $0x48] ss:$16 sps:$4 sm:$0xff]  }
 0x746   : > { %3309 = vmatpush3.bf16.msra.mxu1 %v2482_v55  ;;  %v4441_v55 = vld [vmem:[%s6456_s5 + $0x6c] ss:$16 sps:$4 sm:$0xff]  }
 0x79b   : > { %v4352_v24 = vpop.permute.xlu1 %4351 }
 0x79c   : > { %v4354_v38 = vunpack.i.h.bf16 %v4352_v24  ;;  %v4353_v58 = vunpack.i.l.bf16 %v4352_v24  ;;  %v4440_v24 = vld [vmem:[%s6456_s5 + $0x60] ss:$16 sps:$4 sm:$0xff]  }
 0x79e   : > { %v2496_v39 = vpack.c.bf16 %v4354_v38, %v4353_v58  ;;  %v4443_v38 = vld [vmem:[%s6456_s5 + $0x84] ss:$16 sps:$4 sm:$0xff]   ;;  %v4445_v58 = vld [vmem:[%s6456_s5 + $0x68] ss:$16 sps:$4 sm:$0xff]  }
 0x79f   : > { %v4357_v54 = vpop.permute.xlu1 %4356 }
 0x7a0   : > { %v4367_v23 = vpop.permute.xlu0 %4366  ;;  %v4359_v46 = vunpack.i.h.bf16 %v4357_v54  ;;  %v4358_v27 = vunpack.i.l.bf16 %v4357_v54  ;;  %2819 = vmatpush1.bf16.msra.mxu0 %v2496_v39  ;;  %v4447_v39 = vld [vmem:[%s6456_s5 + $0x8c] ss:$16 sps:$4 sm:$0xff]   ;;  %v4446_v54 = vld [vmem:[%s6456_s5 + $0x80] ss:$16 sps:$4 sm:$0xff]  }
 0x7a1   : > { %2820 = vmatprep.subr.bf16.mxu0 %v6524_v60  ;;  %v4369_v61 = vunpack.i.h.bf16 %v4367_v23  ;;  %v4368_v51 = vunpack.i.l.bf16 %v4367_v23  ;;  %v4449_v23 = vld [vmem:[%s6456_s5 + $0xa4] ss:$16 sps:$4 sm:$0xff]  }
 0x7a2   : > { %v2497_v48 = vpack.c.bf16 %v4359_v46, %v4358_v27  ;;  %v4451_v46 = vld [vmem:[%s6456_s5 + $0x88] ss:$16 sps:$4 sm:$0xff]   ;;  %v4453_v27 = vld [vmem:[%s6456_s5 + $0xac] ss:$16 sps:$4 sm:$0xff]  }
 0x7a3   : > { %v4362_v1 = vpop.permute.xlu1 %4361  ;;  %v2498_v2 = vpack.c.bf16 %v4369_v61, %v4368_v51  ;;  %v4455_v61 = vld [vmem:[%s6456_s5 + $0xc4] ss:$16 sps:$4 sm:$0xff]   ;;  %v4457_v51 = vld [vmem:[%s6456_s5 + $0xa8] ss:$16 sps:$4 sm:$0xff]  }
 0x7a4   : > { %v4372_v28 = vpop.permute.xlu0 %4371  ;;  %v4364_v35 = vunpack.i.h.bf16 %v4362_v1  ;;  %v4363_v19 = vunpack.i.l.bf16 %v4362_v1  ;;  %2821 = vmatpush1.bf16.msra.mxu0 %v2497_v48  ;;  %v4452_v48 = vld [vmem:[%s6456_s5 + $0xa0] ss:$16 sps:$4 sm:$0xff]  }
 0x7a5   : > { %v4374_v53 = vunpack.i.h.bf16 %v4372_v28  ;;  %v4373_v14 = vunpack.i.l.bf16 %v4372_v28  ;;  %2822 = vmatprep.subr.bf16.mxu0 %v6524_v60  ;;  %v2532_v1 = vld [vmem:[%s6456_s5 + $0xe0] sm:$0xff]  ;;  %v4459_v28 = vld [vmem:[%s6456_s5 + $0xcc] ss:$16 sps:$4 sm:$0xff]  }
 0x7a6   : > { %v2491_v0 = vpack.c.bf16 %v4364_v35, %v4363_v19  ;;  %v4458_v35 = vld [vmem:[%s6456_s5 + $0xc0] ss:$16 sps:$4 sm:$0xff]   ;;  %v3274_v19 = vcombine.high %v2532_v1, %v2532_v1 }
 0x7a7   : > { %v2483_v11 = vpack.c.bf16 %v4374_v53, %v4373_v14  ;;  %v4377_v63 = vpop.permute.xlu1 %4376  ;;  %v2533_v53 = vld [vmem:[%s6456_s5 + $0xe8] sm:$0xff] }
 0x7a8   : > { %v4379_v43 = vunpack.i.h.bf16 %v4377_v63  ;;  %v4378_v16 = vunpack.i.l.bf16 %v4377_v63  ;;  %v4382_v45 = vpop.permute.xlu0 %4381  ;;  %3310 = vmatprep.subr.bf16.mxu1 %v2491_v0  ;;  %2823 = vmatpush1.bf16.msra.mxu0 %v2498_v2  ;;  %v4461_v14 = vld [vmem:[%s6456_s5 + $0xc8] ss:$16 sps:$4 sm:$0xff]   ;;  %v3276_v2 = vcombine.high %v2533_v53, %v2533_v53  ;;  %v3273_v0 = vcombine.low %v2532_v1, %v2532_v1  ;;  %v4466_v63 = vld [vmem:[%s6458_s7] sm:$0xff]  }
 0x7a9   : > { %v4384_v33 = vunpack.i.h.bf16 %v4382_v45  ;;  %v4383_v47 = vunpack.i.l.bf16 %v4382_v45  ;;  %3311 = vmatpush3.bf16.msra.mxu1 %v2483_v11  ;;  %2824 = vmatprep.subr.bf16.mxu0 %v6524_v60  ;;  %v3275_v11 = vcombine.low %v2533_v53, %v2533_v53  ;;  %v2534_v45 = vld [vmem:[%s6457_s6] sm:$0xff] }
 0x7aa   : > { %v2499_v36 = vpack.c.bf16 %v4379_v43, %v4378_v16 }
 0x7ab   : > { %v2492_v31 = vpack.c.bf16 %v4384_v33, %v4383_v47  ;;  %v4387_v17 = vpop.permute.xlu1 %4386 }
 0x7ac   : > { %v4389_v21 = vunpack.i.h.bf16 %v4387_v17  ;;  %v4388_v57 = vunpack.i.l.bf16 %v4387_v17  ;;  %v4392_v15 = vpop.permute.xlu0 %4391  ;;  %2825 = vmatpush1.bf16.msra.mxu0 %v2499_v36 }
 0x7ad   : > { %v4394_v12 = vunpack.i.h.bf16 %v4392_v15  ;;  %v4393_v10 = vunpack.i.l.bf16 %v4392_v15  ;;  %3312 = vmatprep.subr.bf16.mxu1 %v2492_v31  ;;  %2826 = vmatprep.subr.bf16.mxu0 %v6524_v60 }
 0x7ae   : > { %v2493_v22 = vpack.c.bf16 %v4389_v21, %v4388_v57  ;;  %3313 = vmatpush3.bf16.msra.mxu1 %v2484_v26  ;;  %v2535_v21 = vld [vmem:[%s6457_s6 + $0x8] sm:$0xff] }
 0x7af   : > { %v2485_v8 = vpack.c.bf16 %v4394_v12, %v4393_v10  ;;  %v4397_v7 = vpop.permute.xlu1 %4396 }
 0x7b0   : > { %v4399_v40 = vunpack.i.h.bf16 %v4397_v7  ;;  %v4398_v41 = vunpack.i.l.bf16 %v4397_v7  ;;  %v4402_v50 = vpop.permute.xlu0 %4401  ;;  %3314 = vmatprep.subr.bf16.mxu1 %v2493_v22  ;;  %2827 = vmatpush1.bf16.msra.mxu0 %v6197_v30  ;;  %v4420_v30 = vld [vmem:[%s6456_s5] ss:$16 sps:$4 sm:$0xff]  }
 0x7b1   : > { %v4404_v56 = vunpack.i.h.bf16 %v4402_v50  ;;  %v4403_v52 = vunpack.i.l.bf16 %v4402_v50  ;;  %2828 = vmatprep.subr.bf16.mxu0 %v6524_v60  ;;  %v2536_v50 = vld [vmem:[%s6457_s6 + $0x10] sm:$0xff] }
 0x7b2   : > { %v2501_v20 = vpack.c.bf16 %v4399_v40, %v4398_v41  ;;  %3315 = vmatpush3.bf16.msra.mxu1 %v2485_v8 }
 0x7b3   : > { %v2486_v59 = vpack.c.bf16 %v4404_v56, %v4403_v52  ;;  %3316 = vmatprep.subr.bf16.mxu1 %v2494_v3  ;;  %v4407_v9 = vpop.permute.xlu1 %4406  ;;  %v4427_v3 = vld [vmem:[%s6456_s5 + $0x8] ss:$16 sps:$4 sm:$0xff]  }
 0x7b4   : > { %v4409_v62 = vunpack.i.h.bf16 %v4407_v9  ;;  %v4408_v26 = vunpack.i.l.bf16 %v4407_v9  ;;  %v4412_v18 = vpop.permute.xlu0 %4411  ;;  %2829 = vmatpush1.bf16.msra.mxu0 %v2501_v20 }
 0x7b5   : > { %2830 = vmatprep.subr.bf16.mxu0 %v6524_v60  ;;  %v4414_v37 = vunpack.i.h.bf16 %v4412_v18  ;;  %v4413_v42 = vunpack.i.l.bf16 %v4412_v18  ;;  %v2537_v18 = vld [vmem:[%s6457_s6 + $0x18] sm:$0xff] }
 0x7b6   : > { %v2502_v13 = vpack.c.bf16 %v4409_v62, %v4408_v26  ;;  %3317 = vmatpush3.bf16.msra.mxu1 %v2486_v59 }
 0x7b7   : > { %v2503_v44 = vpack.c.bf16 %v4414_v37, %v4413_v42 }
 0x7b8   : > { %2831 = vmatpush1.bf16.msra.mxu0 %v2502_v13 }
 0x7b9   : > { %2753 = vmatmul.mubr.bf16.vlgmr.msra.gmra.mrb[12].mxu1 %v4420_v30  ;;  %2832 = vmatprep.subr.bf16.mxu0 %v6524_v60  ;;  %v4433_v60 = vld [vmem:[%s6456_s5 + $0x28] ss:$16 sps:$4 sm:$0xff]  }
 0x7ba   : > { %2760 = vmatprep.mubr.bf16.mxu1 %v4425_v5 }
 0x7bc   : > { %2833 = vmatpush1.bf16.msra.mxu0 %v2503_v44 }
 0x7bf   : > { %2849 = vmatmul.mubr.bf16.vlgmr.msra.gmra.mrb[16].mxu0 %v4427_v3 }
 0x7c0   : > { %3278 = vmatprep.mubr.msk.bf16.mxu0 %vm2695_vm1, %v4429_v25 }
 0x7c1   : > { %2761 = vmatmul.mubr.bf16.gmra.mrb[16].mxu1 %v4428_v6 }
 0x7c2   : > { %2768 = vmatprep.mubr.bf16.mxu1 %v4431_v34 }
 0x7c7   : > { %2857 = vmatmul.mubr.bf16.gmra.mrb[20].mxu0 %v4433_v60  ;;  %v2538_v60 = vld [vmem:[%s6457_s6 + $0x20] sm:$0xff] }
 0x7c8   : > { %3279 = vmatprep.mubr.msk.bf16.mxu0 %vm2695_vm1, %v4435_v4 }
 0x7c9   : > { %2769 = vmatmul.mubr.bf16.gmra.mrb[20].mxu1 %v4434_v29 }
 0x7ca   : > { %2776 = vmatprep.mubr.bf16.mxu1 %v4437_v49 }
 0x7cf   : > { %2865 = vmatmul.mubr.bf16.gmra.mrb[24].mxu0 %v4439_v32 }
 0x7d0   : > { %3280 = vmatprep.mubr.msk.bf16.mxu0 %vm2695_vm1, %v4441_v55 }
 0x7d1   : > { %2777 = vmatmul.mubr.bf16.gmra.mrb[24].mxu1 %v4440_v24 }
 0x7d2   : > { %2784 = vmatprep.mubr.bf16.mxu1 %v4443_v38 }
 0x7d7   : > { %2873 = vmatmul.mubr.bf16.gmra.mrb[28].mxu0 %v4445_v58  ;;  %v2539_v58 = vld [vmem:[%s6457_s6 + $0x28] sm:$0xff] }
 0x7d8   : > { %3281 = vmatprep.mubr.msk.bf16.mxu0 %vm2695_vm1, %v4447_v39 }
 0x7d9   : > { %2785 = vmatmul.mubr.bf16.gmra.mrb[28].mxu1 %v4446_v54 }
 0x7da   : > { %2792 = vmatprep.mubr.bf16.mxu1 %v4449_v23 }
 0x7df   : > { %2881 = vmatmul.mubr.bf16.gmra.mrb[32].mxu0 %v4451_v46 }
 0x7e0   : > { %3282 = vmatprep.mubr.msk.bf16.mxu0 %vm2695_vm1, %v4453_v27 }
 0x7e1   : > { %2793 = vmatmul.mubr.bf16.gmra.mrb[32].mxu1 %v4452_v48 }
 0x7e2   : > { %2800 = vmatprep.mubr.bf16.mxu1 %v4455_v61 }
 0x7e7   : > { %2889 = vmatmul.mubr.bf16.gmra.mrb[36].mxu0 %v4457_v51 }
 0x7e8   : > { %3283 = vmatprep.mubr.msk.bf16.mxu0 %vm2695_vm1, %v4459_v28 }
 0x7e9   : > { %2801 = vmatmul.mubr.bf16.gmra.mrb[36].mxu1 %v4458_v35  ;;  %v2540_v35 = vld [vmem:[%s6457_s6 + $0x30] sm:$0xff] }
 0x7ea   : > { %2808 = vmatprep.mubr.bf16.mxu1 %v3274_v19 }
 0x7ef   : > { %2897 = vmatmul.mubr.bf16.gmra.mrb[40].mxu0 %v4461_v14 }
 0x7f0   : > { %3284 = vmatprep.mubr.msk.bf16.mxu0 %vm2695_vm1, %v3276_v2 }
 0x7f1   : > { %2809 = vmatmul.mubr.bf16.gmra.mrb[40].mxu1 %v3273_v0 }
 0x7f2   : > { %3403 = vmatprep.mubr.msk.bf16.mxu1 %vm1615_vm5, %v4466_v63 }
 0x7f7   : > { %2905 = vmatmul.mubr.bf16.gmra.mrb[44].mxu0 %v3275_v11 }
 0x88c   : > { %v3318_v43 = vpop.f32.mrb[12].mxu1 }
 0x88d   : > { %v3319_v16 = vpop.f32.mrb[13].mxu1 }
 0x88e   : > { %v3320_v33 = vadd.f32 %v3319_v16, %v3318_v43  ;;  %v3321_v47 = vpop.f32.mrb[14].mxu1  ;;  %v2541_v43 = vld [vmem:[%s6457_s6 + $0x38] sm:$0xff] }
 0x88f   : > { %v3322_v36 = vpop.f32.mrb[15].mxu1 }
 0x890   : > { %v3323_v31 = vadd.f32 %v3322_v36, %v3321_v47  ;;  %v2755_v17 = vadd.f32 %v3320_v33, %v2534_v45 }
 0x892   : > { %v2850_v57 = vpop.f32.mrb[16].mxu0  ;;  %v2758_v10 = vadd.f32 %v3323_v31, %v2535_v21 }
 0x893   : > { %v2851_v15 = vadd.f32 %v2850_v57, %v2755_v17  ;;  %v2852_v12 = vpop.f32.mrb[17].mxu0 }
 0x894   : > { %v3324_v22 = vpop.f32.mrb[16].mxu1  ;;  %v2853_v8 = vpop.f32.mrb[18].mxu0  ;;  %v2542_v12 = vld [vmem:[%s6457_s6 + $0x40] sm:$0xff] }
 0x895   : > { %v3325_v7 = vpop.f32.mrb[17].mxu1  ;;  %v2854_v40 = vadd.f32 %v2853_v8, %v2758_v10  ;;  %v2855_v41 = vpop.f32.mrb[19].mxu0  ;;  %v2912_v20 = vmax.f32 %v2851_v15, 0.0 }
 0x896   : > { %v3326_v56 = vadd.f32 %v3325_v7, %v3324_v22  ;;  %v3327_v52 = vpop.f32.mrb[18].mxu1 }
 0x897   : > { %v2913_v59 = vmax.f32 %v2854_v40, 0.0  ;;  %v3328_v9 = vpop.f32.mrb[19].mxu1 }
 0x898   : > { %v3329_v62 = vadd.f32 %v3328_v9, %v3327_v52  ;;  %v2763_v26 = vadd.f32 %v3326_v56, %v2536_v50  ;;  %v2543_v56 = vld [vmem:[%s6457_s6 + $0x48] sm:$0xff] }
 0x899   : > { %v2938_v30 = vpack.c.bf16 %v2913_v59, %v2912_v20 }
 0x89a   : > { %v2858_v13 = vpop.f32.mrb[20].mxu0  ;;  %v2766_v5 = vadd.f32 %v3329_v62, %v2537_v18 }
 0x89b   : > { %v2859_v37 = vadd.f32 %v2858_v13, %v2763_v26  ;;  %v2860_v42 = vpop.f32.mrb[21].mxu0  ;;  %3387 = vmatprep.subr.bf16.mxu1 %v2938_v30 }
 0x89c   : > { %v3330_v44 = vpop.f32.mrb[20].mxu1  ;;  %v2861_v3 = vpop.f32.mrb[22].mxu0  ;;  %3388 = vmatpush3.bf16.msra.mxu1 %v2938_v30  ;;  %v2544_v42 = vld [vmem:[%s6457_s6 + $0x50] sm:$0xff] }
 0x89d   : > { %v3331_v25 = vpop.f32.mrb[21].mxu1  ;;  %v2862_v6 = vadd.f32 %v2861_v3, %v2766_v5  ;;  %v2863_v34 = vpop.f32.mrb[23].mxu0  ;;  %v2914_v49 = vmax.f32 %v2859_v37, 0.0 }
 0x89e   : > { %v3332_v4 = vadd.f32 %v3331_v25, %v3330_v44  ;;  %v3333_v29 = vpop.f32.mrb[22].mxu1 }
 0x89f   : > { %v2915_v32 = vmax.f32 %v2862_v6, 0.0  ;;  %v3334_v55 = vpop.f32.mrb[23].mxu1 }
 0x8a0   : > { %v3335_v24 = vadd.f32 %v3334_v55, %v3333_v29  ;;  %v2771_v38 = vadd.f32 %v3332_v4, %v2538_v60  ;;  %v2545_v4 = vld [vmem:[%s6457_s6 + $0x58] sm:$0xff] }
 0x8a1   : > { %v2939_v39 = vpack.c.bf16 %v2915_v32, %v2914_v49 }
 0x8a2   : > { %v2866_v54 = vpop.f32.mrb[24].mxu0  ;;  %v2774_v27 = vadd.f32 %v3335_v24, %v2539_v58 }
 0x8a3   : > { %v2867_v23 = vadd.f32 %v2866_v54, %v2771_v38  ;;  %v2868_v46 = vpop.f32.mrb[25].mxu0  ;;  %3389 = vmatprep.subr.bf16.mxu1 %v2939_v39 }
 0x8a4   : > { %v3336_v48 = vpop.f32.mrb[24].mxu1  ;;  %v2869_v61 = vpop.f32.mrb[26].mxu0  ;;  %3390 = vmatpush3.bf16.msra.mxu1 %v2939_v39  ;;  %v2546_v46 = vld [vmem:[%s6457_s6 + $0x60] sm:$0xff] }
 0x8a5   : > { %v3337_v51 = vpop.f32.mrb[25].mxu1  ;;  %v2870_v1 = vadd.f32 %v2869_v61, %v2774_v27  ;;  %v2871_v28 = vpop.f32.mrb[27].mxu0  ;;  %v2916_v14 = vmax.f32 %v2867_v23, 0.0 }
 0x8a6   : > { %v3338_v19 = vadd.f32 %v3337_v51, %v3336_v48  ;;  %v3339_v53 = vpop.f32.mrb[26].mxu1 }
 0x8a7   : > { %v2917_v2 = vmax.f32 %v2870_v1, 0.0  ;;  %v3340_v0 = vpop.f32.mrb[27].mxu1 }
 0x8a8   : > { %v3341_v11 = vadd.f32 %v3340_v0, %v3339_v53  ;;  %v2779_v63 = vadd.f32 %v3338_v19, %v2540_v35  ;;  %v2547_v19 = vld [vmem:[%s6457_s6 + $0x68] sm:$0xff] }
 0x8a9   : > { %v2940_v16 = vpack.c.bf16 %v2917_v2, %v2916_v14 }
 0x8aa   : > { %v2874_v45 = vpop.f32.mrb[28].mxu0  ;;  %v2782_v36 = vadd.f32 %v3341_v11, %v2541_v43 }
 0x8ab   : > { %v2875_v33 = vadd.f32 %v2874_v45, %v2779_v63  ;;  %v2876_v47 = vpop.f32.mrb[29].mxu0  ;;  %3391 = vmatprep.subr.bf16.mxu1 %v2940_v16 }
 0x8ac   : > { %v3342_v31 = vpop.f32.mrb[28].mxu1  ;;  %v2877_v17 = vpop.f32.mrb[30].mxu0  ;;  %3392 = vmatpush3.bf16.msra.mxu1 %v2940_v16  ;;  %v2548_v47 = vld [vmem:[%s6457_s6 + $0x70] sm:$0xff] }
 0x8ad   : > { %v3343_v21 = vpop.f32.mrb[29].mxu1  ;;  %v2878_v57 = vadd.f32 %v2877_v17, %v2782_v36  ;;  %v2879_v15 = vpop.f32.mrb[31].mxu0  ;;  %v2918_v8 = vmax.f32 %v2875_v33, 0.0 }
 0x8ae   : > { %v3344_v10 = vadd.f32 %v3343_v21, %v3342_v31  ;;  %v3345_v22 = vpop.f32.mrb[30].mxu1 }
 0x8af   : > { %v2919_v7 = vmax.f32 %v2878_v57, 0.0  ;;  %v3346_v40 = vpop.f32.mrb[31].mxu1 }
 0x8b0   : > { %v3347_v41 = vadd.f32 %v3346_v40, %v3345_v22  ;;  %v2787_v50 = vadd.f32 %v3344_v10, %v2542_v12 }
 0x8b1   : > { %v2941_v52 = vpack.c.bf16 %v2919_v7, %v2918_v8 }
 0x8b2   : > { %v2882_v20 = vpop.f32.mrb[32].mxu0  ;;  %v2790_v62 = vadd.f32 %v3347_v41, %v2543_v56 }
 0x8b3   : > { %v2883_v59 = vadd.f32 %v2882_v20, %v2787_v50  ;;  %v2884_v9 = vpop.f32.mrb[33].mxu0  ;;  %3393 = vmatprep.subr.bf16.mxu1 %v2941_v52  ;;  %v4468_v20 = vld [vmem:[%s6458_s7 + $0x10] sm:$0xff]  }
 0x8b4   : > { %v3348_v26 = vpop.f32.mrb[32].mxu1  ;;  %v2885_v18 = vpop.f32.mrb[34].mxu0  ;;  %3394 = vmatpush3.bf16.msra.mxu1 %v2941_v52  ;;  %v4467_v52 = vld [vmem:[%s6458_s7 + $0x8] sm:$0xff]   ;;  %v4470_v9 = vld [vmem:[%s6458_s7 + $0x20] sm:$0xff]  }
 0x8b5   : > { %v3349_v30 = vpop.f32.mrb[33].mxu1  ;;  %v2886_v13 = vadd.f32 %v2885_v18, %v2790_v62  ;;  %v2887_v37 = vpop.f32.mrb[35].mxu0  ;;  %v2920_v3 = vmax.f32 %v2883_v59, 0.0  ;;  %v4469_v59 = vld [vmem:[%s6458_s7 + $0x18] sm:$0xff]   ;;  %v2948_v18 = vld [vmem:[%s6459_s8 + $0x10] sm:$0xff] }
 0x8b6   : > { %v3350_v5 = vadd.f32 %v3349_v30, %v3348_v26  ;;  %v3351_v44 = vpop.f32.mrb[34].mxu1  ;;  %v4471_v62 = vld [vmem:[%s6458_s7 + $0x28] ss:$0 sps:$4 sm:$0x33]   ;;  %v4510_v26 = vmov 0.0   ;;  %v2946_v30 = vld [vmem:[%s6459_s8] sm:$0xff] }
 0x8b7   : > { %v2921_v25 = vmax.f32 %v2886_v13, 0.0  ;;  %v3352_v6 = vpop.f32.mrb[35].mxu1  ;;  %v2949_v37 = vld [vmem:[%s6459_s8 + $0x18] sm:$0xff] }
 0x8b8   : > { %v3353_v34 = vadd.f32 %v3352_v6, %v3351_v44  ;;  %v2795_v60 = vadd.f32 %v3350_v5, %v2544_v42  ;;  %v2947_v44 = vld [vmem:[%s6459_s8 + $0x8] sm:$0xff] }
 0x8b9   : > { %v2942_v29 = vpack.c.bf16 %v2921_v25, %v2920_v3 }
 0x8ba   : > { %v2890_v49 = vpop.f32.mrb[36].mxu0  ;;  %v2798_v24 = vadd.f32 %v3353_v34, %v2545_v4 }
 0x8bb   : > { %v2891_v32 = vadd.f32 %v2890_v49, %v2795_v60  ;;  %v2892_v55 = vpop.f32.mrb[37].mxu0  ;;  %3395 = vmatprep.subr.bf16.mxu1 %v2942_v29 }
 0x8bc   : > { %v3354_v38 = vpop.f32.mrb[36].mxu1  ;;  %v2893_v58 = vpop.f32.mrb[38].mxu0  ;;  %3396 = vmatpush3.bf16.msra.mxu1 %v2942_v29  ;;  %v2952_v55 = vld [vmem:[%s6459_s8 + $0x30] sm:$0xff] }
 0x8bd   : > { %v3355_v39 = vpop.f32.mrb[37].mxu1  ;;  %v2894_v54 = vadd.f32 %v2893_v58, %v2798_v24  ;;  %v2895_v23 = vpop.f32.mrb[39].mxu0  ;;  %v2922_v61 = vmax.f32 %v2891_v32, 0.0 }
 0x8be   : > { %v3356_v27 = vadd.f32 %v3355_v39, %v3354_v38  ;;  %v3357_v48 = vpop.f32.mrb[38].mxu1  ;;  %v2950_v38 = vld [vmem:[%s6459_s8 + $0x20] sm:$0xff] }
 0x8bf   : > { %v2923_v51 = vmax.f32 %v2894_v54, 0.0  ;;  %v3358_v1 = vpop.f32.mrb[39].mxu1  ;;  %v2953_v54 = vld [vmem:[%s6459_s8 + $0x38] sm:$0xff] }
 0x8c0   : > { %v3359_v28 = vadd.f32 %v3358_v1, %v3357_v48  ;;  %v2803_v35 = vadd.f32 %v3356_v27, %v2546_v46  ;;  %v2951_v27 = vld [vmem:[%s6459_s8 + $0x28] sm:$0xff] }
 0x8c1   : > { %v2943_v53 = vpack.c.bf16 %v2923_v51, %v2922_v61 }
 0x8c2   : > { %v2898_v14 = vpop.f32.mrb[40].mxu0  ;;  %v2806_v11 = vadd.f32 %v3359_v28, %v2547_v19 }
 0x8c3   : > { %v2899_v2 = vadd.f32 %v2898_v14, %v2803_v35  ;;  %v2900_v0 = vpop.f32.mrb[41].mxu0  ;;  %3397 = vmatprep.subr.bf16.mxu1 %v2943_v53 }
 0x8c4   : > { %v3360_v63 = vpop.f32.mrb[40].mxu1  ;;  %v2901_v43 = vpop.f32.mrb[42].mxu0  ;;  %3398 = vmatpush3.bf16.msra.mxu1 %v2943_v53 }
 0x8c5   : > { %v2902_v16 = vadd.f32 %v2901_v43, %v2806_v11  ;;  %v3361_v45 = vpop.f32.mrb[41].mxu1  ;;  %v2903_v33 = vpop.f32.mrb[43].mxu0  ;;  %v2924_v17 = vmax.f32 %v2899_v2, 0.0  ;;  %v2956_v2 = vld [vmem:[%s6459_s8 + $0x50] sm:$0xf]  ;;  %v2954_v11 = vld [vmem:[%s6459_s8 + $0x40] sm:$0xff] }
 0x8c6   : > { %v3362_v36 = vadd.f32 %v3361_v45, %v3360_v63  ;;  %v3363_v31 = vpop.f32.mrb[42].mxu1  ;;  %v2955_v33 = vld [vmem:[%s6459_s8 + $0x48] sm:$0xff] }
 0x8c7   : > { %v2925_v21 = vmax.f32 %v2902_v16, 0.0  ;;  %v3364_v57 = vpop.f32.mrb[43].mxu1 }
 0x8c8   : > { %v2811_v15 = vadd.f32 %v3362_v36, %v2548_v47 }
 0x8c9   : > { %v2944_v12 = vpack.c.bf16 %v2925_v21, %v2924_v17 }
 0x8ca   : > { %v2906_v10 = vpop.f32.mrb[44].mxu0 }
 0x8cb   : > { %v2907_v22 = vadd.f32 %v2906_v10, %v2811_v15  ;;  %v2908_v8 = vpop.f32.mrb[45].mxu0  ;;  %3399 = vmatprep.subr.bf16.mxu1 %v2944_v12 }
 0x8cc   : > { %v2909_v7 = vpop.f32.mrb[46].mxu0  ;;  %3400 = vmatpush3.bf16.msra.mxu1 %v2944_v12  ;;  %v4472_v8 = vld [vmem:[%s6460_s9] sm:$0x1f]  }
 0x8cd   : > { %v2926_v40 = vmax.f32 %v2907_v22, 0.0  ;;  %v2910_v41 = vpop.f32.mrb[47].mxu0  ;;  %v3105_v7 = vld [vmem:[%s6461_s10] sm:$0xff] }
 0x8ce   : > { %v3106_v41 = vld [vmem:[%s6461_s10 + $0x8] sm:$0x3] }
 0x8cf   : > { %v2945_v50 = vpack.c.bf16 %v2926_v40, %v2926_v40 }
 0x8d1   : > { %3431 = vmatprep.subr.msk.bf16.mxu1 %vm1268_vm3, %v2945_v50  ;;  %v3004_v56 = vsel %vm1268_vm3, %v2945_v50, 0 }
 0x8d2   : > { %3402 = vmatpush3.bf16.msra.mxu1 %v3004_v56 }
 0x8d3   : > { %3415 = vmatprep.subr.bf16.mxu1 %v4510_v26 }
 0x8d5   : > { %3404 = vmatmul.mubr.msk.bf16.vlgmr.msra.gmra.mrb[44].mxu1 %vm1615_vm5, %v4467_v52 }
 0x8d6   : > { %3407 = vmatprep.mubr.msk.bf16.mxu1 %vm1615_vm5, %v4468_v20 }
 0x8dd   : > { %3408 = vmatmul.mubr.msk.bf16.gmra.mrb[48].mxu1 %vm1615_vm5, %v4469_v59 }
 0x8de   : > { %3411 = vmatprep.mubr.msk.bf16.mxu1 %vm1615_vm5, %v4470_v9 }
 0x8e5   : > { %3412 = vmatmul.mubr.msk.bf16.gmra.mrb[52].mxu1 %vm1615_vm5, %v4471_v62 }
 0x8e6   : > { %3427 = vmatprep.mubr.msk.bf16.mxu1 %vm4511_vm8, %v4510_v26 }
 0x9a8   : > { %v3405_v13 = vpop.f32.mrb[44].mxu1 }
 0x9a9   : > { %v3049_v42 = vadd.f32 %v3405_v13, %v2948_v18  ;;  %v3040_v5 = vpop.f32.mrb[45].mxu1 }
 0x9aa   : > { %v3041_v3 = vadd.f32 %v3040_v5, %v2946_v30  ;;  %v3406_v25 = vpop.f32.mrb[46].mxu1 }
 0x9ab   : > { %v3052_v6 = vadd.f32 %v3406_v25, %v2949_v37  ;;  %v3043_v34 = vpop.f32.mrb[47].mxu1  ;;  %v3088_v4 = vmax.f32 %v3049_v42, 0.0 }
 0x9ac   : > { %v3044_v60 = vadd.f32 %v3043_v34, %v2947_v44  ;;  %v3086_v49 = vmax.f32 %v3041_v3, 0.0 }
 0x9ad   : > { %v3089_v29 = vmax.f32 %v3052_v6, 0.0 }
 0x9ae   : > { %v3087_v32 = vmax.f32 %v3044_v60, 0.0 }
 0x9af   : > { %v3100_v24 = vpack.c.bf16 %v3089_v29, %v3088_v4 }
 0x9b0   : > { %v3099_v58 = vpack.c.bf16 %v3087_v32, %v3086_v49  ;;  %v3409_v39 = vpop.f32.mrb[48].mxu1 }
 0x9b1   : > { %v3065_v23 = vadd.f32 %v3409_v39, %v2952_v55  ;;  %v3056_v46 = vpop.f32.mrb[49].mxu1 }
 0x9b2   : > { %v3057_v48 = vadd.f32 %v3056_v46, %v2950_v38  ;;  %v3410_v61 = vpop.f32.mrb[50].mxu1  ;;  %3416 = vmatpush3.bf16.msra.mxu1 %v3099_v58 }
 0x9b3   : > { %v3068_v51 = vadd.f32 %v3410_v61, %v2953_v54  ;;  %v3059_v1 = vpop.f32.mrb[51].mxu1  ;;  %3417 = vmatprep.subr.bf16.mxu1 %v4510_v26  ;;  %v3092_v35 = vmax.f32 %v3065_v23, 0.0 }
 0x9b4   : > { %v3060_v28 = vadd.f32 %v3059_v1, %v2951_v27  ;;  %v3090_v53 = vmax.f32 %v3057_v48, 0.0 }
 0x9b5   : > { %v3093_v19 = vmax.f32 %v3068_v51, 0.0 }
 0x9b6   : > { %v3091_v14 = vmax.f32 %v3060_v28, 0.0  ;;  %3418 = vmatpush3.bf16.msra.mxu1 %v3100_v24 }
 0x9b7   : > { %v3102_v0 = vpack.c.bf16 %v3093_v19, %v3092_v35  ;;  %3419 = vmatprep.subr.bf16.mxu1 %v4510_v26 }
 0x9b8   : > { %v3101_v63 = vpack.c.bf16 %v3091_v14, %v3090_v53  ;;  %v3413_v43 = vpop.f32.mrb[52].mxu1 }
 0x9b9   : > { %v3081_v16 = vadd.f32 %v3413_v43, %v2956_v2  ;;  %v3072_v45 = vpop.f32.mrb[53].mxu1 }
 0x9ba   : > { %v3073_v47 = vadd.f32 %v3072_v45, %v2954_v11  ;;  %v3414_v36 = vpop.f32.mrb[54].mxu1  ;;  %3420 = vmatpush3.bf16.msra.mxu1 %v3101_v63 }
 0x9bb   : > { %v3075_v31 = vpop.f32.mrb[55].mxu1  ;;  %3421 = vmatprep.subr.bf16.mxu1 %v4510_v26  ;;  %v3096_v21 = vmax.f32 %v3081_v16, 0.0 }
 0x9bc   : > { %v3076_v17 = vadd.f32 %v3075_v31, %v2955_v33  ;;  %v3094_v57 = vmax.f32 %v3073_v47, 0.0 }
 0x9bd   : > { %v3104_v10 = vpack.c.bf16 %v3096_v21, %v3096_v21 }
 0x9be   : > { %v3095_v15 = vmax.f32 %v3076_v17, 0.0  ;;  %3422 = vmatpush3.bf16.msra.mxu1 %v3102_v0 }
 0x9bf   : > { %3423 = vmatprep.subr.bf16.mxu1 %v4510_v26  ;;  %v3118_v22 = vsel %vm3116_vm10, %v3104_v10, 0 }
 0x9c0   : > { %v3103_v12 = vpack.c.bf16 %v3095_v15, %v3094_v57 }
 0x9c2   : > { %3424 = vmatpush3.bf16.msra.mxu1 %v3103_v12 }
 0x9c3   : > { %3425 = vmatprep.subr.bf16.mxu1 %v4510_v26 }
 0x9c6   : > { %3426 = vmatpush3.bf16.msra.mxu1 %v3118_v22 }
 0x9c9   : > { %3428 = vmatmul.mubr.msk.bf16.vlgmr.msra.gmra.mrb[56].mxu1 %vm3112_vm12, %v4472_v8 }
 0xa9c   : > { %v3154_v40 = vpop.f32.mrb[56].mxu1 }
 0xa9d   : > { %v3155_v50 = vadd.f32 %v3154_v40, %v3105_v7  ;;  %v3429_v56 = vpop.f32.mrb[57].mxu1 }
 0xa9e   : > { %v3157_v52 = vpop.f32.mrb[58].mxu1 }
 0xa9f   : > { %3162 = vst.msk [vmem:[%s388_s20] sm:$0xff] %vm3161_vm13, %v3155_v50  ;;  %v3158_v20 = vadd.f32 %v3157_v52, %v3106_v41  ;;  %v3430_v59 = vpop.f32.mrb[59].mxu1 }
 0xaa1   : > { %3164 = vst.msk [vmem:[%s388_s20 + $0x8] sm:$0x3] %vm3163_vm15, %v3158_v20 }
 0xaa2 PF: > { %s21_s17 = sadd.s32 1, %s4482_s17  }
 0xaa3   : > { %p18_p5 = scmp.ge.s32.totalorder %s21_s17, 4  }
 0xaa5   :  { %20 = sbr.rel (!%p18_p5) target bundleno = 1 (0x1), region = 94 }

</bundles_post_ra>
